<compile_context>
chip_gen: v7x
topology: tpu7x:2x2x1
jax: 0.10.0
libtpu: 0.0.40
codegen_flags: <defaults>
</compile_context>

<pallas_src>
import math
import functools

import jax
import jax.numpy as jnp
from jax.experimental import pallas as pl
from jax.experimental.pallas import tpu as pltpu


# ---------------------------------------------------------------------------
# in-kernel helpers
# ---------------------------------------------------------------------------
def _layer_norm(x, g, b, eps=1e-5):
    mu = jnp.mean(x, axis=-1, keepdims=True)
    xc = x - mu
    var = jnp.mean(xc * xc, axis=-1, keepdims=True)
    return xc * jax.lax.rsqrt(var + eps) * g + b


def _gelu_exact(x):
    # nn.GELU() default = exact (erf-based) gelu, kept in f32
    return 0.5 * x * (1.0 + jax.lax.erf(x * (1.0 / math.sqrt(2.0))))


_PARAM_ORDER = (
    "pre_g", "pre_b",
    "m1_wq", "m1_bq", "m1_wk", "m1_bk", "m1_wv", "m1_bv", "m1_wo", "m1_bo",
    "ln1_g", "ln1_b",
    "m2_wq", "m2_bq", "m2_wk", "m2_bk", "m2_wv", "m2_bv", "m2_wo", "m2_bo",
    "ffn_w1T", "ffn_b1", "ffn_w2T", "ffn_b2",
    "ln3_g", "ln3_b",
)


# ---------------------------------------------------------------------------
# kernel: one grid step = one block of batch elements, full decoder layer in VMEM
# ---------------------------------------------------------------------------
def _decoder_layer_kernel(num_heads, want_attn, ff_chunk, *refs):
    tgt_ref, enc_ref, causal_ref, decpb_ref, encpb_ref = refs[:5]
    prm = dict(zip(_PARAM_ORDER, refs[5:5 + len(_PARAM_ORDER)]))
    rest = refs[5 + len(_PARAM_ORDER):]
    if want_attn:
        out_ref, a1_ref, a2_ref, ctx_scr = rest
    else:
        out_ref, ctx_scr = rest
        a1_ref = a2_ref = None

    Bb, T, D = tgt_ref.shape
    S = enc_ref.shape[1]
    H = num_heads
    Hd = D // H
    f32, bf16 = jnp.float32, jnp.bfloat16
    inv_h = 1.0 / H

    # Additive biases are broadcast per head from the tiny per-key vectors; the dense
    # (Bb,T,T)/(Bb,T,S) bias is never a live traced value.
    def self_bias(s):
        return s + causal_ref[...][None, :, :] + decpb_ref[...]

    def cross_bias(s):
        return s + encpb_ref[...]

    def mha(xq, xkv, Lk, wq, bq, wk, bk, wv, bv, wo, bo, bias_fn, a_ref):
        # xq: (Bb*T, D) f32 queries, xkv: (Bb*Lk, D) f32 keys/values source
        xq_bf = xq.astype(bf16)
        xkv_bf = xkv.astype(bf16)
        if a_ref is not None:
            a_ref[...] = jnp.zeros_like(a_ref)

        # Head loop: num_heads is small & static, accumulation goes through VMEM refs
        # (ctx_scr / a_ref), so each unrolled iteration's temporaries die at its stores.
        for h in range(H):
            lo = h * Hd
            # Per-head projections: contraction depth D keeps the MXU fed; operands are
            # tile-aligned full blocks (head-major (H, D, Hd) weights from the wrapper).
            qh = (jnp.dot(xq_bf, wq[h], preferred_element_type=f32) + bq[h]).astype(bf16)
            kh = (jnp.dot(xkv_bf, wk[h], preferred_element_type=f32) + bk[h]).astype(bf16)
            vh = (jnp.dot(xkv_bf, wv[h], preferred_element_type=f32) + bv[h]).astype(bf16)

            s = jnp.einsum("bqh,bkh->bqk",
                           qh.reshape(Bb, T, Hd), kh.reshape(Bb, Lk, Hd),
                           preferred_element_type=f32)
            s = bias_fn(s)                                     # -1e9 masking (see notes)
            m = jnp.max(s, axis=-1, keepdims=True)
            e = jnp.exp(s - m)
            denom = jnp.sum(e, axis=-1, keepdims=True)
            # Exact divide when attention weights are returned (PyTorch parity);
            # EUP approx reciprocal otherwise (VALU-free).
            p = e * pl.reciprocal(denom, approx=(a_ref is None))

            if a_ref is not None:
                # Head-averaged weights accumulated directly into the VMEM output block.
                a_ref[...] = (a_ref[...].astype(f32) + p * inv_h).astype(a_ref.dtype)

            pv = jnp.einsum("bqk,bkh->bqh",
                            p.astype(bf16), vh.reshape(Bb, Lk, Hd),
                            preferred_element_type=f32)        # (Bb, T, Hd) f32
            ctx_scr[:, lo:lo + Hd] = pv.reshape(Bb * T, Hd).astype(bf16)

        # Single D-deep output projection over the concatenated heads.
        return jnp.dot(ctx_scr[...], wo[...], preferred_element_type=f32) + bo[...]

    # ---- forward (dropout layers are identity in eval mode) ------------------
    x0 = tgt_ref[...].reshape(Bb * T, D)                 # f32 residual stream
    enc2d = enc_ref[...].reshape(Bb * S, D)

    x_norm = _layer_norm(x0, prm["pre_g"][...], prm["pre_b"][...])
    o1 = mha(x_norm, x_norm, T,
             prm["m1_wq"], prm["m1_bq"], prm["m1_wk"], prm["m1_bk"],
             prm["m1_wv"], prm["m1_bv"], prm["m1_wo"], prm["m1_bo"],
             self_bias, a1_ref)
    x = x0 + o1                                          # dropout1: identity
    x = _layer_norm(x, prm["ln1_g"][...], prm["ln1_b"][...])

    o2 = mha(x, enc2d, S,
             prm["m2_wq"], prm["m2_bq"], prm["m2_wk"], prm["m2_bk"],
             prm["m2_wv"], prm["m2_bv"], prm["m2_wo"], prm["m2_bo"],
             cross_bias, a2_ref)
    x = x + o2                                           # dropout2: identity

    # FFN tiled over d_ff; residual + per-chunk contribution accumulated directly in the
    # VMEM-backed output block (no (Bb*T, d_ff) intermediate ever live). dropout3: identity.
    out_ref[...] = x.reshape(Bb, T, D)
    x_bf = x.astype(bf16)
    d_ff = prm["ffn_w1T"].shape[1]
    for c0 in range(0, d_ff, ff_chunk):
        c1 = min(c0 + ff_chunk, d_ff)
        hc = (jnp.dot(x_bf, prm["ffn_w1T"][:, c0:c1], preferred_element_type=f32)
              + prm["ffn_b1"][:, c0:c1])
        hc = _gelu_exact(hc)
        out_ref[...] += jnp.dot(hc.astype(bf16), prm["ffn_w2T"][c0:c1, :],
                                preferred_element_type=f32).reshape(Bb, T, D)

    out_ref[...] = _layer_norm(out_ref[...].reshape(Bb * T, D),
                               prm["ln3_g"][...],
                               prm["ln3_b"][...]).reshape(Bb, T, D)


# ---------------------------------------------------------------------------
# wrapper: mask -> tiny biases, bf16 / head-major weight prep, pallas_call
# ---------------------------------------------------------------------------
def decoder_layer_forward(padded_targets, enc_output, pad_mask_enc, pad_mask_dec,
                          slf_attn_mask, params, num_heads,
                          return_attn_weights=True, block_b=None, ff_chunk=512,
                          attn_weights_dtype=jnp.float32,
                          vmem_limit_bytes=48 * 1024 * 1024):
    B, T, D = padded_targets.shape
    S = enc_output.shape[1]
    assert D % num_heads == 0
    Hd = D // num_heads

    if block_b is None:
        # Default to >= 2 grid steps when possible: gives the BlockSpec pipeline DMA/compute
        # overlap on every generation and lets v7x shard the "parallel" axis over its 2 TCs.
        block_b = B
        for d in range(B // 2, 0, -1):
            if B % d == 0:
                block_b = d
                break
    assert B % block_b == 0
    nb = B // block_b
    ff_chunk = max(1, min(ff_chunk, params["ffn_w1T"].shape[1]))

    f32, bf16 = jnp.float32, jnp.bfloat16

    # Tiny additive bias vectors (cheap glue); dense biases are broadcast in-kernel.
    # -1e9 instead of -inf: a fully-masked key row yields a uniform distribution instead
    # of PyTorch's NaN (documented, safer divergence).
    causal_bias = jnp.where(slf_attn_mask, -1e9, 0.0).astype(f32)                 # (T, T)
    dec_pad_bias = jnp.where(pad_mask_dec, -1e9, 0.0).astype(f32)[:, None, :]     # (B, 1, T)
    enc_pad_bias = jnp.where(pad_mask_enc, -1e9, 0.0).astype(f32)[:, None, :]     # (B, 1, S)

    # Weights -> bf16 MXU operands (f32 accumulation in-kernel); biases / LN params f32.
    # q/k/v projections go head-major: (D, D) -> (H, D, Hd), (1, D) -> (H, 1, Hd).
    # 1/sqrt(head_dim) folded into the Q projection once.
    scale = 1.0 / math.sqrt(Hd)

    def head_major_w(w):                                   # (D, D) -> (H, D, Hd)
        return w.reshape(D, num_heads, Hd).transpose(1, 0, 2)

    def head_major_b(b):                                   # (1, D) -> (H, 1, Hd)
        return b.reshape(num_heads, Hd)[:, None, :]

    pp = {}
    for n in ("pre_g", "pre_b", "ln1_g", "ln1_b", "ffn_b1", "ffn_b2", "ln3_g", "ln3_b"):
        pp[n] = params[n].astype(f32)
    for m in ("m1", "m2"):
        pp[f"{m}_wq"] = head_major_w((params[f"{m}_wq"].astype(f32) * scale).astype(bf16))
        pp[f"{m}_bq"] = head_major_b(params[f"{m}_bq"].astype(f32) * scale)
        pp[f"{m}_wk"] = head_major_w(params[f"{m}_wk"].astype(bf16))
        pp[f"{m}_bk"] = head_major_b(params[f"{m}_bk"].astype(f32))
        pp[f"{m}_wv"] = head_major_w(params[f"{m}_wv"].astype(bf16))
        pp[f"{m}_bv"] = head_major_b(params[f"{m}_bv"].astype(f32))
        pp[f"{m}_wo"] = params[f"{m}_wo"].astype(bf16)
        pp[f"{m}_bo"] = params[f"{m}_bo"].astype(f32)
    pp["ffn_w1T"] = params["ffn_w1T"].astype(bf16)
    pp["ffn_w2T"] = params["ffn_w2T"].astype(bf16)
    param_arrays = [pp[name] for name in _PARAM_ORDER]

    def bspec(shape):                      # batched over dim 0
        nd = len(shape)
        return pl.BlockSpec((block_b,) + tuple(shape[1:]),
                            lambda b, n=nd: (b,) + (0,) * (n - 1))

    def fspec(shape):                      # full array, constant index (weights / causal)
        nd = len(shape)
        return pl.BlockSpec(tuple(shape), lambda b, n=nd: (0,) * n)

    in_specs = [
        bspec((B, T, D)),                  # padded_targets
        bspec((B, S, D)),                  # enc_output
        fspec((T, T)),                     # causal bias
        bspec((B, 1, T)),                  # dec key-padding bias
        bspec((B, 1, S)),                  # enc key-padding bias
    ] + [fspec(p.shape) for p in param_arrays]

    out_shape = [jax.ShapeDtypeStruct((B, T, D), f32)]
    out_specs = [bspec((B, T, D))]
    if return_attn_weights:
        out_shape += [jax.ShapeDtypeStruct((B, T, T), attn_weights_dtype),
                      jax.ShapeDtypeStruct((B, T, S), attn_weights_dtype)]
        out_specs += [bspec((B, T, T)), bspec((B, T, S))]

    # Single bf16 scratch (reused by both attentions) for the concatenated per-head context.
    scratch_shapes = [pltpu.VMEM((block_b * T, D), bf16)]

    outs = pl.pallas_call(
        functools.partial(_decoder_layer_kernel, num_heads, return_attn_weights, ff_chunk),
        out_shape=tuple(out_shape),
        grid=(nb,),
        in_specs=in_specs,
        out_specs=tuple(out_specs),
        scratch_shapes=scratch_shapes,
        compiler_params=pltpu.CompilerParams(
            dimension_semantics=("parallel",),
            vmem_limit_bytes=vmem_limit_bytes,   # tune per generation (raise on v6e, keep
                                                 # tighter + smaller block_b on v7x 64 MiB)
        ),
    )(padded_targets.astype(f32), enc_output.astype(f32),
      causal_bias, dec_pad_bias, enc_pad_bias, *param_arrays)

    if return_attn_weights:
        return outs[0], outs[1], outs[2]
    return outs[0]


# ---------------------------------------------------------------------------
# deterministic parameter init (shapes per nn.Module __init__; weights stored (in, out))
# ---------------------------------------------------------------------------
def init_params(key, d_model, d_ff):
    ks = iter(jax.random.split(key, 24))

    def w(shape):
        return 0.05 * jax.random.normal(next(ks), shape, jnp.float32)

    p = {}
    p["pre_g"] = jnp.ones((1, d_model), jnp.float32)
    p["pre_b"] = jnp.zeros((1, d_model), jnp.float32)
    for m in ("m1", "m2"):
        # PyTorch in_proj (3D, D) split into q/k/v thirds, stored transposed (D, D)
        p[f"{m}_wq"] = w((d_model, d_model)); p[f"{m}_bq"] = w((1, d_model))
        p[f"{m}_wk"] = w((d_model, d_model)); p[f"{m}_bk"] = w((1, d_model))
        p[f"{m}_wv"] = w((d_model, d_model)); p[f"{m}_bv"] = w((1, d_model))
        p[f"{m}_wo"] = w((d_model, d_model)); p[f"{m}_bo"] = w((1, d_model))
    p["ln1_g"] = jnp.ones((1, d_model), jnp.float32)
    p["ln1_b"] = jnp.zeros((1, d_model), jnp.float32)
    p["ffn_w1T"] = w((d_model, d_ff)); p["ffn_b1"] = w((1, d_ff))
    p["ffn_w2T"] = w((d_ff, d_model)); p["ffn_b2"] = w((1, d_model))
    p["ln3_g"] = jnp.ones((1, d_model), jnp.float32)
    p["ln3_b"] = jnp.zeros((1, d_model), jnp.float32)
    return p


if __name__ == "__main__":
    B, T, S = 2, 8, 16
    d_model, num_heads, d_ff = 32, 4, 64

    key = jax.random.PRNGKey(0)
    k_tgt, k_enc, k_par = jax.random.split(key, 3)

    padded_targets = jax.random.normal(k_tgt, (B, T, d_model), jnp.float32)
    enc_output = jax.random.normal(k_enc, (B, S, d_model), jnp.float32)

    # causal self-attention mask: True above the diagonal (disallowed)
    slf_attn_mask = jnp.triu(jnp.ones((T, T), dtype=bool), k=1)
    # key padding masks: True = padded position
    dec_lens = jnp.array([T, T - 2], dtype=jnp.int32)
    pad_mask_dec = jnp.arange(T)[None, :] >= dec_lens[:, None]
    enc_lens = jnp.array([S, S - 4], dtype=jnp.int32)
    pad_mask_enc = jnp.arange(S)[None, :] >= enc_lens[:, None]

    params = init_params(k_par, d_model, d_ff)

    out, attn1_w, attn2_w = decoder_layer_forward(
        padded_targets, enc_output, pad_mask_enc, pad_mask_dec,
        slf_attn_mask, params, num_heads, return_attn_weights=True)
    jax.block_until_ready((out, attn1_w, attn2_w))

    assert out.shape == (B, T, d_model)
    assert attn1_w.shape == (B, T, T)
    assert attn2_w.shape == (B, T, S)
    assert bool(jnp.all(jnp.isfinite(out)))
    assert bool(jnp.all(jnp.isfinite(attn1_w))) and bool(jnp.all(jnp.isfinite(attn2_w)))
    # head-averaged softmax rows must sum to ~1 (exact divide is used on this path)
    assert bool(jnp.all(jnp.abs(jnp.sum(attn1_w, axis=-1) - 1.0) < 1e-3))
    assert bool(jnp.all(jnp.abs(jnp.sum(attn2_w, axis=-1) - 1.0) < 1e-3))
    print("KERNEL_OK")
</pallas_src>

<mosaic_0001>
module attributes {stable_mosaic.version = 11 : i64} {
  func.func @_decoder_layer_kernel(%arg0: i32, %arg1: memref<1x8x32xf32, #tpu.memory_space<vmem>>, %arg2: memref<1x16x32xf32, #tpu.memory_space<vmem>>, %arg3: memref<8x8xf32, #tpu.memory_space<vmem>>, %arg4: memref<1x1x8xf32, #tpu.memory_space<vmem>>, %arg5: memref<1x1x16xf32, #tpu.memory_space<vmem>>, %arg6: memref<1x32xf32, #tpu.memory_space<vmem>>, %arg7: memref<1x32xf32, #tpu.memory_space<vmem>>, %arg8: memref<4x32x8xbf16, #tpu.memory_space<vmem>>, %arg9: memref<4x1x8xf32, #tpu.memory_space<vmem>>, %arg10: memref<4x32x8xbf16, #tpu.memory_space<vmem>>, %arg11: memref<4x1x8xf32, #tpu.memory_space<vmem>>, %arg12: memref<4x32x8xbf16, #tpu.memory_space<vmem>>, %arg13: memref<4x1x8xf32, #tpu.memory_space<vmem>>, %arg14: memref<32x32xbf16, #tpu.memory_space<vmem>>, %arg15: memref<1x32xf32, #tpu.memory_space<vmem>>, %arg16: memref<1x32xf32, #tpu.memory_space<vmem>>, %arg17: memref<1x32xf32, #tpu.memory_space<vmem>>, %arg18: memref<4x32x8xbf16, #tpu.memory_space<vmem>>, %arg19: memref<4x1x8xf32, #tpu.memory_space<vmem>>, %arg20: memref<4x32x8xbf16, #tpu.memory_space<vmem>>, %arg21: memref<4x1x8xf32, #tpu.memory_space<vmem>>, %arg22: memref<4x32x8xbf16, #tpu.memory_space<vmem>>, %arg23: memref<4x1x8xf32, #tpu.memory_space<vmem>>, %arg24: memref<32x32xbf16, #tpu.memory_space<vmem>>, %arg25: memref<1x32xf32, #tpu.memory_space<vmem>>, %arg26: memref<32x64xbf16, #tpu.memory_space<vmem>>, %arg27: memref<1x64xf32, #tpu.memory_space<vmem>>, %arg28: memref<64x32xbf16, #tpu.memory_space<vmem>>, %arg29: memref<1x32xf32, #tpu.memory_space<vmem>>, %arg30: memref<1x32xf32, #tpu.memory_space<vmem>>, %arg31: memref<1x32xf32, #tpu.memory_space<vmem>>, %arg32: memref<1x8x32xf32, #tpu.memory_space<vmem>>, %arg33: memref<1x8x8xf32, #tpu.memory_space<vmem>>, %arg34: memref<1x8x16xf32, #tpu.memory_space<vmem>>, %arg35: memref<8x32xbf16, #tpu.memory_space<vmem>>) attributes {dimension_semantics = [#tpu.dimension_semantics<parallel>], iteration_bounds = array<i64: 2>, scalar_prefetch = 0 : i64, scratch_operands = 1 : i64, tpu.core_type = #tpu.core_type<tc>, window_params = [{transform_indices = @transform_0, window_bounds = array<i64: 1, 8, 32>}, {transform_indices = @transform_1, window_bounds = array<i64: 1, 16, 32>}, {pipeline_mode = #tpu.pipeline_mode<synchronous>, transform_indices = @transform_2, window_bounds = array<i64: 8, 8>}, {transform_indices = @transform_3, window_bounds = array<i64: 1, 1, 8>}, {transform_indices = @transform_4, window_bounds = array<i64: 1, 1, 16>}, {pipeline_mode = #tpu.pipeline_mode<synchronous>, transform_indices = @transform_5, window_bounds = array<i64: 1, 32>}, {pipeline_mode = #tpu.pipeline_mode<synchronous>, transform_indices = @transform_6, window_bounds = array<i64: 1, 32>}, {pipeline_mode = #tpu.pipeline_mode<synchronous>, transform_indices = @transform_7, window_bounds = array<i64: 4, 32, 8>}, {pipeline_mode = #tpu.pipeline_mode<synchronous>, transform_indices = @transform_8, window_bounds = array<i64: 4, 1, 8>}, {pipeline_mode = #tpu.pipeline_mode<synchronous>, transform_indices = @transform_9, window_bounds = array<i64: 4, 32, 8>}, {pipeline_mode = #tpu.pipeline_mode<synchronous>, transform_indices = @transform_10, window_bounds = array<i64: 4, 1, 8>}, {pipeline_mode = #tpu.pipeline_mode<synchronous>, transform_indices = @transform_11, window_bounds = array<i64: 4, 32, 8>}, {pipeline_mode = #tpu.pipeline_mode<synchronous>, transform_indices = @transform_12, window_bounds = array<i64: 4, 1, 8>}, {pipeline_mode = #tpu.pipeline_mode<synchronous>, transform_indices = @transform_13, window_bounds = array<i64: 32, 32>}, {pipeline_mode = #tpu.pipeline_mode<synchronous>, transform_indices = @transform_14, window_bounds = array<i64: 1, 32>}, {pipeline_mode = #tpu.pipeline_mode<synchronous>, transform_indices = @transform_15, window_bounds = array<i64: 1, 32>}, {pipeline_mode = #tpu.pipeline_mode<synchronous>, transform_indices = @transform_16, window_bounds = array<i64: 1, 32>}, {pipeline_mode = #tpu.pipeline_mode<synchronous>, transform_indices = @transform_17, window_bounds = array<i64: 4, 32, 8>}, {pipeline_mode = #tpu.pipeline_mode<synchronous>, transform_indices = @transform_18, window_bounds = array<i64: 4, 1, 8>}, {pipeline_mode = #tpu.pipeline_mode<synchronous>, transform_indices = @transform_19, window_bounds = array<i64: 4, 32, 8>}, {pipeline_mode = #tpu.pipeline_mode<synchronous>, transform_indices = @transform_20, window_bounds = array<i64: 4, 1, 8>}, {pipeline_mode = #tpu.pipeline_mode<synchronous>, transform_indices = @transform_21, window_bounds = array<i64: 4, 32, 8>}, {pipeline_mode = #tpu.pipeline_mode<synchronous>, transform_indices = @transform_22, window_bounds = array<i64: 4, 1, 8>}, {pipeline_mode = #tpu.pipeline_mode<synchronous>, transform_indices = @transform_23, window_bounds = array<i64: 32, 32>}, {pipeline_mode = #tpu.pipeline_mode<synchronous>, transform_indices = @transform_24, window_bounds = array<i64: 1, 32>}, {pipeline_mode = #tpu.pipeline_mode<synchronous>, transform_indices = @transform_25, window_bounds = array<i64: 32, 64>}, {pipeline_mode = #tpu.pipeline_mode<synchronous>, transform_indices = @transform_26, window_bounds = array<i64: 1, 64>}, {pipeline_mode = #tpu.pipeline_mode<synchronous>, transform_indices = @transform_27, window_bounds = array<i64: 64, 32>}, {pipeline_mode = #tpu.pipeline_mode<synchronous>, transform_indices = @transform_28, window_bounds = array<i64: 1, 32>}, {pipeline_mode = #tpu.pipeline_mode<synchronous>, transform_indices = @transform_29, window_bounds = array<i64: 1, 32>}, {pipeline_mode = #tpu.pipeline_mode<synchronous>, transform_indices = @transform_30, window_bounds = array<i64: 1, 32>}, {transform_indices = @transform_31, window_bounds = array<i64: 1, 8, 32>}, {transform_indices = @transform_32, window_bounds = array<i64: 1, 8, 8>}, {transform_indices = @transform_33, window_bounds = array<i64: 1, 8, 16>}]} {
    %c0 = arith.constant 0 : index
    %c0_0 = arith.constant 0 : index
    %c0_1 = arith.constant 0 : index
    %0 = vector.load %arg1[%c0, %c0_0, %c0_1] : memref<1x8x32xf32, #tpu.memory_space<vmem>>, vector<1x8x32xf32>
    %1 = vector.shape_cast %0 : vector<1x8x32xf32> to vector<8x32xf32>
    %c0_2 = arith.constant 0 : index
    %c0_3 = arith.constant 0 : index
    %c0_4 = arith.constant 0 : index
    %2 = vector.load %arg2[%c0_2, %c0_3, %c0_4] : memref<1x16x32xf32, #tpu.memory_space<vmem>>, vector<1x16x32xf32>
    %3 = vector.shape_cast %2 : vector<1x16x32xf32> to vector<16x32xf32>
    %c0_5 = arith.constant 0 : index
    %c0_6 = arith.constant 0 : index
    %4 = vector.load %arg6[%c0_5, %c0_6] : memref<1x32xf32, #tpu.memory_space<vmem>>, vector<1x32xf32>
    %c0_7 = arith.constant 0 : index
    %c0_8 = arith.constant 0 : index
    %5 = vector.load %arg7[%c0_7, %c0_8] : memref<1x32xf32, #tpu.memory_space<vmem>>, vector<1x32xf32>
    %cst = arith.constant dense<0.000000e+00> : vector<8xf32>
    %6 = vector.multi_reduction <add>, %1, %cst [1] : vector<8x32xf32> to vector<8xf32>
    %7 = vector.shape_cast %6 : vector<8xf32> to vector<8x1xf32>
    %cst_9 = arith.constant 3.200000e+01 : f32
    %8 = vector.broadcast %cst_9 : f32 to vector<8x1xf32>
    %9 = arith.divf %7, %8 : vector<8x1xf32>
    %10 = vector.broadcast %9 : vector<8x1xf32> to vector<8x32xf32>
    %11 = arith.subf %1, %10 : vector<8x32xf32>
    %12 = arith.mulf %11, %11 : vector<8x32xf32>
    %cst_10 = arith.constant dense<0.000000e+00> : vector<8xf32>
    %13 = vector.multi_reduction <add>, %12, %cst_10 [1] : vector<8x32xf32> to vector<8xf32>
    %14 = vector.shape_cast %13 : vector<8xf32> to vector<8x1xf32>
    %cst_11 = arith.constant 3.200000e+01 : f32
    %15 = vector.broadcast %cst_11 : f32 to vector<8x1xf32>
    %16 = arith.divf %14, %15 : vector<8x1xf32>
    %cst_12 = arith.constant 9.99999974E-6 : f32
    %17 = vector.broadcast %cst_12 : f32 to vector<8x1xf32>
    %18 = arith.addf %16, %17 : vector<8x1xf32>
    %19 = math.rsqrt %18 : vector<8x1xf32>
    %20 = vector.broadcast %19 : vector<8x1xf32> to vector<8x32xf32>
    %21 = arith.mulf %11, %20 : vector<8x32xf32>
    %22 = vector.broadcast %4 : vector<1x32xf32> to vector<8x32xf32>
    %23 = arith.mulf %21, %22 : vector<8x32xf32>
    %24 = vector.broadcast %5 : vector<1x32xf32> to vector<8x32xf32>
    %25 = arith.addf %23, %24 : vector<8x32xf32>
    %26 = arith.truncf %25 : vector<8x32xf32> to vector<8x32xbf16>
    %27 = arith.truncf %25 : vector<8x32xf32> to vector<8x32xbf16>
    %cst_13 = arith.constant 0.000000e+00 : f32
    %28 = vector.broadcast %cst_13 : f32 to vector<1x8x8xf32>
    %c0_14 = arith.constant 0 : index
    %c0_15 = arith.constant 0 : index
    %c0_16 = arith.constant 0 : index
    %29 = vector.load %arg33[%c0_14, %c0_15, %c0_16] : memref<1x8x8xf32, #tpu.memory_space<vmem>>, vector<1x8x8xf32>
    tpu.vector_store %arg33[%c0_14, %c0_15, %c0_16], %28 {strides = array<i32>} : memref<1x8x8xf32, #tpu.memory_space<vmem>>, vector<1x8x8xf32>,
    %c0_17 = arith.constant 0 : index
    %c0_18 = arith.constant 0 : index
    %c0_19 = arith.constant 0 : index
    %30 = vector.load %arg8[%c0_17, %c0_18, %c0_19] : memref<4x32x8xbf16, #tpu.memory_space<vmem>>, vector<1x32x8xbf16>
    %31 = vector.shape_cast %30 : vector<1x32x8xbf16> to vector<32x8xbf16>
    %cst_20 = arith.constant dense<0.000000e+00> : vector<8x8xf32>
    %32 = tpu.matmul %26, %31, %cst_20 {dimension_numbers = #tpu.dot_dimension_numbers<[1], [0], [0], [1], [0, 0, 1, 1], [], []>} : vector<8x32xbf16>, vector<32x8xbf16>, vector<8x8xf32> -> vector<8x8xf32>
    %c0_21 = arith.constant 0 : index
    %c0_22 = arith.constant 0 : index
    %c0_23 = arith.constant 0 : index
    %33 = vector.load %arg9[%c0_21, %c0_22, %c0_23] : memref<4x1x8xf32, #tpu.memory_space<vmem>>, vector<1x1x8xf32>
    %34 = vector.shape_cast %33 : vector<1x1x8xf32> to vector<1x8xf32>
    %35 = vector.broadcast %34 : vector<1x8xf32> to vector<8x8xf32>
    %36 = arith.addf %32, %35 : vector<8x8xf32>
    %37 = arith.truncf %36 : vector<8x8xf32> to vector<8x8xbf16>
    %c0_24 = arith.constant 0 : index
    %c0_25 = arith.constant 0 : index
    %c0_26 = arith.constant 0 : index
    %38 = vector.load %arg10[%c0_24, %c0_25, %c0_26] : memref<4x32x8xbf16, #tpu.memory_space<vmem>>, vector<1x32x8xbf16>
    %39 = vector.shape_cast %38 : vector<1x32x8xbf16> to vector<32x8xbf16>
    %cst_27 = arith.constant dense<0.000000e+00> : vector<8x8xf32>
    %40 = tpu.matmul %27, %39, %cst_27 {dimension_numbers = #tpu.dot_dimension_numbers<[1], [0], [0], [1], [0, 0, 1, 1], [], []>} : vector<8x32xbf16>, vector<32x8xbf16>, vector<8x8xf32> -> vector<8x8xf32>
    %c0_28 = arith.constant 0 : index
    %c0_29 = arith.constant 0 : index
    %c0_30 = arith.constant 0 : index
    %41 = vector.load %arg11[%c0_28, %c0_29, %c0_30] : memref<4x1x8xf32, #tpu.memory_space<vmem>>, vector<1x1x8xf32>
    %42 = vector.shape_cast %41 : vector<1x1x8xf32> to vector<1x8xf32>
    %43 = vector.broadcast %42 : vector<1x8xf32> to vector<8x8xf32>
    %44 = arith.addf %40, %43 : vector<8x8xf32>
    %45 = arith.truncf %44 : vector<8x8xf32> to vector<8x8xbf16>
    %c0_31 = arith.constant 0 : index
    %c0_32 = arith.constant 0 : index
    %c0_33 = arith.constant 0 : index
    %46 = vector.load %arg12[%c0_31, %c0_32, %c0_33] : memref<4x32x8xbf16, #tpu.memory_space<vmem>>, vector<1x32x8xbf16>
    %47 = vector.shape_cast %46 : vector<1x32x8xbf16> to vector<32x8xbf16>
    %cst_34 = arith.constant dense<0.000000e+00> : vector<8x8xf32>
    %48 = tpu.matmul %27, %47, %cst_34 {dimension_numbers = #tpu.dot_dimension_numbers<[1], [0], [0], [1], [0, 0, 1, 1], [], []>} : vector<8x32xbf16>, vector<32x8xbf16>, vector<8x8xf32> -> vector<8x8xf32>
    %c0_35 = arith.constant 0 : index
    %c0_36 = arith.constant 0 : index
    %c0_37 = arith.constant 0 : index
    %49 = vector.load %arg13[%c0_35, %c0_36, %c0_37] : memref<4x1x8xf32, #tpu.memory_space<vmem>>, vector<1x1x8xf32>
    %50 = vector.shape_cast %49 : vector<1x1x8xf32> to vector<1x8xf32>
    %51 = vector.broadcast %50 : vector<1x8xf32> to vector<8x8xf32>
    %52 = arith.addf %48, %51 : vector<8x8xf32>
    %53 = arith.truncf %52 : vector<8x8xf32> to vector<8x8xbf16>
    %54 = vector.shape_cast %37 : vector<8x8xbf16> to vector<1x8x8xbf16>
    %55 = vector.shape_cast %45 : vector<8x8xbf16> to vector<1x8x8xbf16>
    "tpu.trace_start"() <{level = 10 : i32, message = "bqh,bkh->bqk"}> : () -> ()
    %cst_38 = arith.constant dense<0.000000e+00> : vector<1x8x8xf32>
    %56 = tpu.matmul %54, %55, %cst_38 {dimension_numbers = #tpu.dot_dimension_numbers<[2], [2], [1], [1], [0, 0, 0, 1, 1, 1], [0], [0]>} : vector<1x8x8xbf16>, vector<1x8x8xbf16>, vector<1x8x8xf32> -> vector<1x8x8xf32>
    "tpu.trace_stop"() : () -> ()
    %c0_39 = arith.constant 0 : index
    %c0_40 = arith.constant 0 : index
    %57 = vector.load %arg3[%c0_39, %c0_40] : memref<8x8xf32, #tpu.memory_space<vmem>>, vector<8x8xf32>
    %58 = vector.shape_cast %57 : vector<8x8xf32> to vector<1x8x8xf32>
    %59 = arith.addf %56, %58 : vector<1x8x8xf32>
    %c0_41 = arith.constant 0 : index
    %c0_42 = arith.constant 0 : index
    %c0_43 = arith.constant 0 : index
    %60 = vector.load %arg4[%c0_41, %c0_42, %c0_43] : memref<1x1x8xf32, #tpu.memory_space<vmem>>, vector<1x1x8xf32>
    %61 = vector.broadcast %60 : vector<1x1x8xf32> to vector<1x8x8xf32>
    %62 = arith.addf %59, %61 : vector<1x8x8xf32>
    %cst_44 = arith.constant dense<0xFF800000> : vector<1x8xf32>
    %63 = vector.multi_reduction <maximumf>, %62, %cst_44 [2] : vector<1x8x8xf32> to vector<1x8xf32>
    %64 = vector.shape_cast %63 : vector<1x8xf32> to vector<1x8x1xf32>
    %65 = vector.broadcast %64 : vector<1x8x1xf32> to vector<1x8x8xf32>
    %66 = arith.subf %62, %65 : vector<1x8x8xf32>
    %67 = math.exp %66 : vector<1x8x8xf32>
    %cst_45 = arith.constant dense<0.000000e+00> : vector<1x8xf32>
    %68 = vector.multi_reduction <add>, %67, %cst_45 [2] : vector<1x8x8xf32> to vector<1x8xf32>
    %69 = vector.shape_cast %68 : vector<1x8xf32> to vector<1x8x1xf32>
    %70 = tpu.reciprocal %69 : vector<1x8x1xf32> -> vector<1x8x1xf32>
    %71 = vector.broadcast %70 : vector<1x8x1xf32> to vector<1x8x8xf32>
    %72 = arith.mulf %67, %71 : vector<1x8x8xf32>
    %c0_46 = arith.constant 0 : index
    %c0_47 = arith.constant 0 : index
    %c0_48 = arith.constant 0 : index
    %73 = vector.load %arg33[%c0_46, %c0_47, %c0_48] : memref<1x8x8xf32, #tpu.memory_space<vmem>>, vector<1x8x8xf32>
    %cst_49 = arith.constant 2.500000e-01 : f32
    %74 = vector.broadcast %cst_49 : f32 to vector<1x8x8xf32>
    %75 = arith.mulf %72, %74 : vector<1x8x8xf32>
    %76 = arith.addf %73, %75 : vector<1x8x8xf32>
    %c0_50 = arith.constant 0 : index
    %c0_51 = arith.constant 0 : index
    %c0_52 = arith.constant 0 : index
    %77 = vector.load %arg33[%c0_50, %c0_51, %c0_52] : memref<1x8x8xf32, #tpu.memory_space<vmem>>, vector<1x8x8xf32>
    tpu.vector_store %arg33[%c0_50, %c0_51, %c0_52], %76 {strides = array<i32>} : memref<1x8x8xf32, #tpu.memory_space<vmem>>, vector<1x8x8xf32>,
    %78 = arith.truncf %72 : vector<1x8x8xf32> to vector<1x8x8xbf16>
    %79 = vector.shape_cast %53 : vector<8x8xbf16> to vector<1x8x8xbf16>
    "tpu.trace_start"() <{level = 10 : i32, message = "bqk,bkh->bqh"}> : () -> ()
    %cst_53 = arith.constant dense<0.000000e+00> : vector<1x8x8xf32>
    %80 = tpu.matmul %78, %79, %cst_53 {dimension_numbers = #tpu.dot_dimension_numbers<[2], [1], [1], [2], [0, 0, 0, 1, 1, 2], [0], [0]>} : vector<1x8x8xbf16>, vector<1x8x8xbf16>, vector<1x8x8xf32> -> vector<1x8x8xf32>
    "tpu.trace_stop"() : () -> ()
    %81 = vector.shape_cast %80 : vector<1x8x8xf32> to vector<8x8xf32>
    %82 = arith.truncf %81 : vector<8x8xf32> to vector<8x8xbf16>
    %c0_54 = arith.constant 0 : index
    %c0_55 = arith.constant 0 : index
    %83 = vector.load %arg35[%c0_54, %c0_55] : memref<8x32xbf16, #tpu.memory_space<vmem>>, vector<8x8xbf16>
    tpu.vector_store %arg35[%c0_54, %c0_55], %82 {strides = array<i32>} : memref<8x32xbf16, #tpu.memory_space<vmem>>, vector<8x8xbf16>,
    %c1 = arith.constant 1 : index
    %c0_56 = arith.constant 0 : index
    %c0_57 = arith.constant 0 : index
    %84 = vector.load %arg8[%c1, %c0_56, %c0_57] : memref<4x32x8xbf16, #tpu.memory_space<vmem>>, vector<1x32x8xbf16>
    %85 = vector.shape_cast %84 : vector<1x32x8xbf16> to vector<32x8xbf16>
    %cst_58 = arith.constant dense<0.000000e+00> : vector<8x8xf32>
    %86 = tpu.matmul %26, %85, %cst_58 {dimension_numbers = #tpu.dot_dimension_numbers<[1], [0], [0], [1], [0, 0, 1, 1], [], []>} : vector<8x32xbf16>, vector<32x8xbf16>, vector<8x8xf32> -> vector<8x8xf32>
    %c1_59 = arith.constant 1 : index
    %c0_60 = arith.constant 0 : index
    %c0_61 = arith.constant 0 : index
    %87 = vector.load %arg9[%c1_59, %c0_60, %c0_61] : memref<4x1x8xf32, #tpu.memory_space<vmem>>, vector<1x1x8xf32>
    %88 = vector.shape_cast %87 : vector<1x1x8xf32> to vector<1x8xf32>
    %89 = vector.broadcast %88 : vector<1x8xf32> to vector<8x8xf32>
    %90 = arith.addf %86, %89 : vector<8x8xf32>
    %91 = arith.truncf %90 : vector<8x8xf32> to vector<8x8xbf16>
    %c1_62 = arith.constant 1 : index
    %c0_63 = arith.constant 0 : index
    %c0_64 = arith.constant 0 : index
    %92 = vector.load %arg10[%c1_62, %c0_63, %c0_64] : memref<4x32x8xbf16, #tpu.memory_space<vmem>>, vector<1x32x8xbf16>
    %93 = vector.shape_cast %92 : vector<1x32x8xbf16> to vector<32x8xbf16>
    %cst_65 = arith.constant dense<0.000000e+00> : vector<8x8xf32>
    %94 = tpu.matmul %27, %93, %cst_65 {dimension_numbers = #tpu.dot_dimension_numbers<[1], [0], [0], [1], [0, 0, 1, 1], [], []>} : vector<8x32xbf16>, vector<32x8xbf16>, vector<8x8xf32> -> vector<8x8xf32>
    %c1_66 = arith.constant 1 : index
    %c0_67 = arith.constant 0 : index
    %c0_68 = arith.constant 0 : index
    %95 = vector.load %arg11[%c1_66, %c0_67, %c0_68] : memref<4x1x8xf32, #tpu.memory_space<vmem>>, vector<1x1x8xf32>
    %96 = vector.shape_cast %95 : vector<1x1x8xf32> to vector<1x8xf32>
    %97 = vector.broadcast %96 : vector<1x8xf32> to vector<8x8xf32>
    %98 = arith.addf %94, %97 : vector<8x8xf32>
    %99 = arith.truncf %98 : vector<8x8xf32> to vector<8x8xbf16>
    %c1_69 = arith.constant 1 : index
    %c0_70 = arith.constant 0 : index
    %c0_71 = arith.constant 0 : index
    %100 = vector.load %arg12[%c1_69, %c0_70, %c0_71] : memref<4x32x8xbf16, #tpu.memory_space<vmem>>, vector<1x32x8xbf16>
    %101 = vector.shape_cast %100 : vector<1x32x8xbf16> to vector<32x8xbf16>
    %cst_72 = arith.constant dense<0.000000e+00> : vector<8x8xf32>
    %102 = tpu.matmul %27, %101, %cst_72 {dimension_numbers = #tpu.dot_dimension_numbers<[1], [0], [0], [1], [0, 0, 1, 1], [], []>} : vector<8x32xbf16>, vector<32x8xbf16>, vector<8x8xf32> -> vector<8x8xf32>
    %c1_73 = arith.constant 1 : index
    %c0_74 = arith.constant 0 : index
    %c0_75 = arith.constant 0 : index
    %103 = vector.load %arg13[%c1_73, %c0_74, %c0_75] : memref<4x1x8xf32, #tpu.memory_space<vmem>>, vector<1x1x8xf32>
    %104 = vector.shape_cast %103 : vector<1x1x8xf32> to vector<1x8xf32>
    %105 = vector.broadcast %104 : vector<1x8xf32> to vector<8x8xf32>
    %106 = arith.addf %102, %105 : vector<8x8xf32>
    %107 = arith.truncf %106 : vector<8x8xf32> to vector<8x8xbf16>
    %108 = vector.shape_cast %91 : vector<8x8xbf16> to vector<1x8x8xbf16>
    %109 = vector.shape_cast %99 : vector<8x8xbf16> to vector<1x8x8xbf16>
    "tpu.trace_start"() <{level = 10 : i32, message = "bqh,bkh->bqk"}> : () -> ()
    %cst_76 = arith.constant dense<0.000000e+00> : vector<1x8x8xf32>
    %110 = tpu.matmul %108, %109, %cst_76 {dimension_numbers = #tpu.dot_dimension_numbers<[2], [2], [1], [1], [0, 0, 0, 1, 1, 1], [0], [0]>} : vector<1x8x8xbf16>, vector<1x8x8xbf16>, vector<1x8x8xf32> -> vector<1x8x8xf32>
    "tpu.trace_stop"() : () -> ()
    %c0_77 = arith.constant 0 : index
    %c0_78 = arith.constant 0 : index
    %111 = vector.load %arg3[%c0_77, %c0_78] : memref<8x8xf32, #tpu.memory_space<vmem>>, vector<8x8xf32>
    %112 = vector.shape_cast %111 : vector<8x8xf32> to vector<1x8x8xf32>
    %113 = arith.addf %110, %112 : vector<1x8x8xf32>
    %c0_79 = arith.constant 0 : index
    %c0_80 = arith.constant 0 : index
    %c0_81 = arith.constant 0 : index
    %114 = vector.load %arg4[%c0_79, %c0_80, %c0_81] : memref<1x1x8xf32, #tpu.memory_space<vmem>>, vector<1x1x8xf32>
    %115 = vector.broadcast %114 : vector<1x1x8xf32> to vector<1x8x8xf32>
    %116 = arith.addf %113, %115 : vector<1x8x8xf32>
    %cst_82 = arith.constant dense<0xFF800000> : vector<1x8xf32>
    %117 = vector.multi_reduction <maximumf>, %116, %cst_82 [2] : vector<1x8x8xf32> to vector<1x8xf32>
    %118 = vector.shape_cast %117 : vector<1x8xf32> to vector<1x8x1xf32>
    %119 = vector.broadcast %118 : vector<1x8x1xf32> to vector<1x8x8xf32>
    %120 = arith.subf %116, %119 : vector<1x8x8xf32>
    %121 = math.exp %120 : vector<1x8x8xf32>
    %cst_83 = arith.constant dense<0.000000e+00> : vector<1x8xf32>
    %122 = vector.multi_reduction <add>, %121, %cst_83 [2] : vector<1x8x8xf32> to vector<1x8xf32>
    %123 = vector.shape_cast %122 : vector<1x8xf32> to vector<1x8x1xf32>
    %124 = tpu.reciprocal %123 : vector<1x8x1xf32> -> vector<1x8x1xf32>
    %125 = vector.broadcast %124 : vector<1x8x1xf32> to vector<1x8x8xf32>
    %126 = arith.mulf %121, %125 : vector<1x8x8xf32>
    %c0_84 = arith.constant 0 : index
    %c0_85 = arith.constant 0 : index
    %c0_86 = arith.constant 0 : index
    %127 = vector.load %arg33[%c0_84, %c0_85, %c0_86] : memref<1x8x8xf32, #tpu.memory_space<vmem>>, vector<1x8x8xf32>
    %cst_87 = arith.constant 2.500000e-01 : f32
    %128 = vector.broadcast %cst_87 : f32 to vector<1x8x8xf32>
    %129 = arith.mulf %126, %128 : vector<1x8x8xf32>
    %130 = arith.addf %127, %129 : vector<1x8x8xf32>
    %c0_88 = arith.constant 0 : index
    %c0_89 = arith.constant 0 : index
    %c0_90 = arith.constant 0 : index
    %131 = vector.load %arg33[%c0_88, %c0_89, %c0_90] : memref<1x8x8xf32, #tpu.memory_space<vmem>>, vector<1x8x8xf32>
    tpu.vector_store %arg33[%c0_88, %c0_89, %c0_90], %130 {strides = array<i32>} : memref<1x8x8xf32, #tpu.memory_space<vmem>>, vector<1x8x8xf32>,
    %132 = arith.truncf %126 : vector<1x8x8xf32> to vector<1x8x8xbf16>
    %133 = vector.shape_cast %107 : vector<8x8xbf16> to vector<1x8x8xbf16>
    "tpu.trace_start"() <{level = 10 : i32, message = "bqk,bkh->bqh"}> : () -> ()
    %cst_91 = arith.constant dense<0.000000e+00> : vector<1x8x8xf32>
    %134 = tpu.matmul %132, %133, %cst_91 {dimension_numbers = #tpu.dot_dimension_numbers<[2], [1], [1], [2], [0, 0, 0, 1, 1, 2], [0], [0]>} : vector<1x8x8xbf16>, vector<1x8x8xbf16>, vector<1x8x8xf32> -> vector<1x8x8xf32>
    "tpu.trace_stop"() : () -> ()
    %135 = vector.shape_cast %134 : vector<1x8x8xf32> to vector<8x8xf32>
    %136 = arith.truncf %135 : vector<8x8xf32> to vector<8x8xbf16>
    %c0_92 = arith.constant 0 : index
    %c8 = arith.constant 8 : index
    %137 = vector.load %arg35[%c0_92, %c8] : memref<8x32xbf16, #tpu.memory_space<vmem>>, vector<8x8xbf16>
    tpu.vector_store %arg35[%c0_92, %c8], %136 {strides = array<i32>} : memref<8x32xbf16, #tpu.memory_space<vmem>>, vector<8x8xbf16>,
    %c2 = arith.constant 2 : index
    %c0_93 = arith.constant 0 : index
    %c0_94 = arith.constant 0 : index
    %138 = vector.load %arg8[%c2, %c0_93, %c0_94] : memref<4x32x8xbf16, #tpu.memory_space<vmem>>, vector<1x32x8xbf16>
    %139 = vector.shape_cast %138 : vector<1x32x8xbf16> to vector<32x8xbf16>
    %cst_95 = arith.constant dense<0.000000e+00> : vector<8x8xf32>
    %140 = tpu.matmul %26, %139, %cst_95 {dimension_numbers = #tpu.dot_dimension_numbers<[1], [0], [0], [1], [0, 0, 1, 1], [], []>} : vector<8x32xbf16>, vector<32x8xbf16>, vector<8x8xf32> -> vector<8x8xf32>
    %c2_96 = arith.constant 2 : index
    %c0_97 = arith.constant 0 : index
    %c0_98 = arith.constant 0 : index
    %141 = vector.load %arg9[%c2_96, %c0_97, %c0_98] : memref<4x1x8xf32, #tpu.memory_space<vmem>>, vector<1x1x8xf32>
    %142 = vector.shape_cast %141 : vector<1x1x8xf32> to vector<1x8xf32>
    %143 = vector.broadcast %142 : vector<1x8xf32> to vector<8x8xf32>
    %144 = arith.addf %140, %143 : vector<8x8xf32>
    %145 = arith.truncf %144 : vector<8x8xf32> to vector<8x8xbf16>
    %c2_99 = arith.constant 2 : index
    %c0_100 = arith.constant 0 : index
    %c0_101 = arith.constant 0 : index
    %146 = vector.load %arg10[%c2_99, %c0_100, %c0_101] : memref<4x32x8xbf16, #tpu.memory_space<vmem>>, vector<1x32x8xbf16>
    %147 = vector.shape_cast %146 : vector<1x32x8xbf16> to vector<32x8xbf16>
    %cst_102 = arith.constant dense<0.000000e+00> : vector<8x8xf32>
    %148 = tpu.matmul %27, %147, %cst_102 {dimension_numbers = #tpu.dot_dimension_numbers<[1], [0], [0], [1], [0, 0, 1, 1], [], []>} : vector<8x32xbf16>, vector<32x8xbf16>, vector<8x8xf32> -> vector<8x8xf32>
    %c2_103 = arith.constant 2 : index
    %c0_104 = arith.constant 0 : index
    %c0_105 = arith.constant 0 : index
    %149 = vector.load %arg11[%c2_103, %c0_104, %c0_105] : memref<4x1x8xf32, #tpu.memory_space<vmem>>, vector<1x1x8xf32>
    %150 = vector.shape_cast %149 : vector<1x1x8xf32> to vector<1x8xf32>
    %151 = vector.broadcast %150 : vector<1x8xf32> to vector<8x8xf32>
    %152 = arith.addf %148, %151 : vector<8x8xf32>
    %153 = arith.truncf %152 : vector<8x8xf32> to vector<8x8xbf16>
    %c2_106 = arith.constant 2 : index
    %c0_107 = arith.constant 0 : index
    %c0_108 = arith.constant 0 : index
    %154 = vector.load %arg12[%c2_106, %c0_107, %c0_108] : memref<4x32x8xbf16, #tpu.memory_space<vmem>>, vector<1x32x8xbf16>
    %155 = vector.shape_cast %154 : vector<1x32x8xbf16> to vector<32x8xbf16>
    %cst_109 = arith.constant dense<0.000000e+00> : vector<8x8xf32>
    %156 = tpu.matmul %27, %155, %cst_109 {dimension_numbers = #tpu.dot_dimension_numbers<[1], [0], [0], [1], [0, 0, 1, 1], [], []>} : vector<8x32xbf16>, vector<32x8xbf16>, vector<8x8xf32> -> vector<8x8xf32>
    %c2_110 = arith.constant 2 : index
    %c0_111 = arith.constant 0 : index
    %c0_112 = arith.constant 0 : index
    %157 = vector.load %arg13[%c2_110, %c0_111, %c0_112] : memref<4x1x8xf32, #tpu.memory_space<vmem>>, vector<1x1x8xf32>
    %158 = vector.shape_cast %157 : vector<1x1x8xf32> to vector<1x8xf32>
    %159 = vector.broadcast %158 : vector<1x8xf32> to vector<8x8xf32>
    %160 = arith.addf %156, %159 : vector<8x8xf32>
    %161 = arith.truncf %160 : vector<8x8xf32> to vector<8x8xbf16>
    %162 = vector.shape_cast %145 : vector<8x8xbf16> to vector<1x8x8xbf16>
    %163 = vector.shape_cast %153 : vector<8x8xbf16> to vector<1x8x8xbf16>
    "tpu.trace_start"() <{level = 10 : i32, message = "bqh,bkh->bqk"}> : () -> ()
    %cst_113 = arith.constant dense<0.000000e+00> : vector<1x8x8xf32>
    %164 = tpu.matmul %162, %163, %cst_113 {dimension_numbers = #tpu.dot_dimension_numbers<[2], [2], [1], [1], [0, 0, 0, 1, 1, 1], [0], [0]>} : vector<1x8x8xbf16>, vector<1x8x8xbf16>, vector<1x8x8xf32> -> vector<1x8x8xf32>
    "tpu.trace_stop"() : () -> ()
    %c0_114 = arith.constant 0 : index
    %c0_115 = arith.constant 0 : index
    %165 = vector.load %arg3[%c0_114, %c0_115] : memref<8x8xf32, #tpu.memory_space<vmem>>, vector<8x8xf32>
    %166 = vector.shape_cast %165 : vector<8x8xf32> to vector<1x8x8xf32>
    %167 = arith.addf %164, %166 : vector<1x8x8xf32>
    %c0_116 = arith.constant 0 : index
    %c0_117 = arith.constant 0 : index
    %c0_118 = arith.constant 0 : index
    %168 = vector.load %arg4[%c0_116, %c0_117, %c0_118] : memref<1x1x8xf32, #tpu.memory_space<vmem>>, vector<1x1x8xf32>
    %169 = vector.broadcast %168 : vector<1x1x8xf32> to vector<1x8x8xf32>
    %170 = arith.addf %167, %169 : vector<1x8x8xf32>
    %cst_119 = arith.constant dense<0xFF800000> : vector<1x8xf32>
    %171 = vector.multi_reduction <maximumf>, %170, %cst_119 [2] : vector<1x8x8xf32> to vector<1x8xf32>
    %172 = vector.shape_cast %171 : vector<1x8xf32> to vector<1x8x1xf32>
    %173 = vector.broadcast %172 : vector<1x8x1xf32> to vector<1x8x8xf32>
    %174 = arith.subf %170, %173 : vector<1x8x8xf32>
    %175 = math.exp %174 : vector<1x8x8xf32>
    %cst_120 = arith.constant dense<0.000000e+00> : vector<1x8xf32>
    %176 = vector.multi_reduction <add>, %175, %cst_120 [2] : vector<1x8x8xf32> to vector<1x8xf32>
    %177 = vector.shape_cast %176 : vector<1x8xf32> to vector<1x8x1xf32>
    %178 = tpu.reciprocal %177 : vector<1x8x1xf32> -> vector<1x8x1xf32>
    %179 = vector.broadcast %178 : vector<1x8x1xf32> to vector<1x8x8xf32>
    %180 = arith.mulf %175, %179 : vector<1x8x8xf32>
    %c0_121 = arith.constant 0 : index
    %c0_122 = arith.constant 0 : index
    %c0_123 = arith.constant 0 : index
    %181 = vector.load %arg33[%c0_121, %c0_122, %c0_123] : memref<1x8x8xf32, #tpu.memory_space<vmem>>, vector<1x8x8xf32>
    %cst_124 = arith.constant 2.500000e-01 : f32
    %182 = vector.broadcast %cst_124 : f32 to vector<1x8x8xf32>
    %183 = arith.mulf %180, %182 : vector<1x8x8xf32>
    %184 = arith.addf %181, %183 : vector<1x8x8xf32>
    %c0_125 = arith.constant 0 : index
    %c0_126 = arith.constant 0 : index
    %c0_127 = arith.constant 0 : index
    %185 = vector.load %arg33[%c0_125, %c0_126, %c0_127] : memref<1x8x8xf32, #tpu.memory_space<vmem>>, vector<1x8x8xf32>
    tpu.vector_store %arg33[%c0_125, %c0_126, %c0_127], %184 {strides = array<i32>} : memref<1x8x8xf32, #tpu.memory_space<vmem>>, vector<1x8x8xf32>,
    %186 = arith.truncf %180 : vector<1x8x8xf32> to vector<1x8x8xbf16>
    %187 = vector.shape_cast %161 : vector<8x8xbf16> to vector<1x8x8xbf16>
    "tpu.trace_start"() <{level = 10 : i32, message = "bqk,bkh->bqh"}> : () -> ()
    %cst_128 = arith.constant dense<0.000000e+00> : vector<1x8x8xf32>
    %188 = tpu.matmul %186, %187, %cst_128 {dimension_numbers = #tpu.dot_dimension_numbers<[2], [1], [1], [2], [0, 0, 0, 1, 1, 2], [0], [0]>} : vector<1x8x8xbf16>, vector<1x8x8xbf16>, vector<1x8x8xf32> -> vector<1x8x8xf32>
    "tpu.trace_stop"() : () -> ()
    %189 = vector.shape_cast %188 : vector<1x8x8xf32> to vector<8x8xf32>
    %190 = arith.truncf %189 : vector<8x8xf32> to vector<8x8xbf16>
    %c0_129 = arith.constant 0 : index
    %c16 = arith.constant 16 : index
    %191 = vector.load %arg35[%c0_129, %c16] : memref<8x32xbf16, #tpu.memory_space<vmem>>, vector<8x8xbf16>
    tpu.vector_store %arg35[%c0_129, %c16], %190 {strides = array<i32>} : memref<8x32xbf16, #tpu.memory_space<vmem>>, vector<8x8xbf16>,
    %c3 = arith.constant 3 : index
    %c0_130 = arith.constant 0 : index
    %c0_131 = arith.constant 0 : index
    %192 = vector.load %arg8[%c3, %c0_130, %c0_131] : memref<4x32x8xbf16, #tpu.memory_space<vmem>>, vector<1x32x8xbf16>
    %193 = vector.shape_cast %192 : vector<1x32x8xbf16> to vector<32x8xbf16>
    %cst_132 = arith.constant dense<0.000000e+00> : vector<8x8xf32>
    %194 = tpu.matmul %26, %193, %cst_132 {dimension_numbers = #tpu.dot_dimension_numbers<[1], [0], [0], [1], [0, 0, 1, 1], [], []>} : vector<8x32xbf16>, vector<32x8xbf16>, vector<8x8xf32> -> vector<8x8xf32>
    %c3_133 = arith.constant 3 : index
    %c0_134 = arith.constant 0 : index
    %c0_135 = arith.constant 0 : index
    %195 = vector.load %arg9[%c3_133, %c0_134, %c0_135] : memref<4x1x8xf32, #tpu.memory_space<vmem>>, vector<1x1x8xf32>
    %196 = vector.shape_cast %195 : vector<1x1x8xf32> to vector<1x8xf32>
    %197 = vector.broadcast %196 : vector<1x8xf32> to vector<8x8xf32>
    %198 = arith.addf %194, %197 : vector<8x8xf32>
    %199 = arith.truncf %198 : vector<8x8xf32> to vector<8x8xbf16>
    %c3_136 = arith.constant 3 : index
    %c0_137 = arith.constant 0 : index
    %c0_138 = arith.constant 0 : index
    %200 = vector.load %arg10[%c3_136, %c0_137, %c0_138] : memref<4x32x8xbf16, #tpu.memory_space<vmem>>, vector<1x32x8xbf16>
    %201 = vector.shape_cast %200 : vector<1x32x8xbf16> to vector<32x8xbf16>
    %cst_139 = arith.constant dense<0.000000e+00> : vector<8x8xf32>
    %202 = tpu.matmul %27, %201, %cst_139 {dimension_numbers = #tpu.dot_dimension_numbers<[1], [0], [0], [1], [0, 0, 1, 1], [], []>} : vector<8x32xbf16>, vector<32x8xbf16>, vector<8x8xf32> -> vector<8x8xf32>
    %c3_140 = arith.constant 3 : index
    %c0_141 = arith.constant 0 : index
    %c0_142 = arith.constant 0 : index
    %203 = vector.load %arg11[%c3_140, %c0_141, %c0_142] : memref<4x1x8xf32, #tpu.memory_space<vmem>>, vector<1x1x8xf32>
    %204 = vector.shape_cast %203 : vector<1x1x8xf32> to vector<1x8xf32>
    %205 = vector.broadcast %204 : vector<1x8xf32> to vector<8x8xf32>
    %206 = arith.addf %202, %205 : vector<8x8xf32>
    %207 = arith.truncf %206 : vector<8x8xf32> to vector<8x8xbf16>
    %c3_143 = arith.constant 3 : index
    %c0_144 = arith.constant 0 : index
    %c0_145 = arith.constant 0 : index
    %208 = vector.load %arg12[%c3_143, %c0_144, %c0_145] : memref<4x32x8xbf16, #tpu.memory_space<vmem>>, vector<1x32x8xbf16>
    %209 = vector.shape_cast %208 : vector<1x32x8xbf16> to vector<32x8xbf16>
    %cst_146 = arith.constant dense<0.000000e+00> : vector<8x8xf32>
    %210 = tpu.matmul %27, %209, %cst_146 {dimension_numbers = #tpu.dot_dimension_numbers<[1], [0], [0], [1], [0, 0, 1, 1], [], []>} : vector<8x32xbf16>, vector<32x8xbf16>, vector<8x8xf32> -> vector<8x8xf32>
    %c3_147 = arith.constant 3 : index
    %c0_148 = arith.constant 0 : index
    %c0_149 = arith.constant 0 : index
    %211 = vector.load %arg13[%c3_147, %c0_148, %c0_149] : memref<4x1x8xf32, #tpu.memory_space<vmem>>, vector<1x1x8xf32>
    %212 = vector.shape_cast %211 : vector<1x1x8xf32> to vector<1x8xf32>
    %213 = vector.broadcast %212 : vector<1x8xf32> to vector<8x8xf32>
    %214 = arith.addf %210, %213 : vector<8x8xf32>
    %215 = arith.truncf %214 : vector<8x8xf32> to vector<8x8xbf16>
    %216 = vector.shape_cast %199 : vector<8x8xbf16> to vector<1x8x8xbf16>
    %217 = vector.shape_cast %207 : vector<8x8xbf16> to vector<1x8x8xbf16>
    "tpu.trace_start"() <{level = 10 : i32, message = "bqh,bkh->bqk"}> : () -> ()
    %cst_150 = arith.constant dense<0.000000e+00> : vector<1x8x8xf32>
    %218 = tpu.matmul %216, %217, %cst_150 {dimension_numbers = #tpu.dot_dimension_numbers<[2], [2], [1], [1], [0, 0, 0, 1, 1, 1], [0], [0]>} : vector<1x8x8xbf16>, vector<1x8x8xbf16>, vector<1x8x8xf32> -> vector<1x8x8xf32>
    "tpu.trace_stop"() : () -> ()
    %c0_151 = arith.constant 0 : index
    %c0_152 = arith.constant 0 : index
    %219 = vector.load %arg3[%c0_151, %c0_152] : memref<8x8xf32, #tpu.memory_space<vmem>>, vector<8x8xf32>
    %220 = vector.shape_cast %219 : vector<8x8xf32> to vector<1x8x8xf32>
    %221 = arith.addf %218, %220 : vector<1x8x8xf32>
    %c0_153 = arith.constant 0 : index
    %c0_154 = arith.constant 0 : index
    %c0_155 = arith.constant 0 : index
    %222 = vector.load %arg4[%c0_153, %c0_154, %c0_155] : memref<1x1x8xf32, #tpu.memory_space<vmem>>, vector<1x1x8xf32>
    %223 = vector.broadcast %222 : vector<1x1x8xf32> to vector<1x8x8xf32>
    %224 = arith.addf %221, %223 : vector<1x8x8xf32>
    %cst_156 = arith.constant dense<0xFF800000> : vector<1x8xf32>
    %225 = vector.multi_reduction <maximumf>, %224, %cst_156 [2] : vector<1x8x8xf32> to vector<1x8xf32>
    %226 = vector.shape_cast %225 : vector<1x8xf32> to vector<1x8x1xf32>
    %227 = vector.broadcast %226 : vector<1x8x1xf32> to vector<1x8x8xf32>
    %228 = arith.subf %224, %227 : vector<1x8x8xf32>
    %229 = math.exp %228 : vector<1x8x8xf32>
    %cst_157 = arith.constant dense<0.000000e+00> : vector<1x8xf32>
    %230 = vector.multi_reduction <add>, %229, %cst_157 [2] : vector<1x8x8xf32> to vector<1x8xf32>
    %231 = vector.shape_cast %230 : vector<1x8xf32> to vector<1x8x1xf32>
    %232 = tpu.reciprocal %231 : vector<1x8x1xf32> -> vector<1x8x1xf32>
    %233 = vector.broadcast %232 : vector<1x8x1xf32> to vector<1x8x8xf32>
    %234 = arith.mulf %229, %233 : vector<1x8x8xf32>
    %c0_158 = arith.constant 0 : index
    %c0_159 = arith.constant 0 : index
    %c0_160 = arith.constant 0 : index
    %235 = vector.load %arg33[%c0_158, %c0_159, %c0_160] : memref<1x8x8xf32, #tpu.memory_space<vmem>>, vector<1x8x8xf32>
    %cst_161 = arith.constant 2.500000e-01 : f32
    %236 = vector.broadcast %cst_161 : f32 to vector<1x8x8xf32>
    %237 = arith.mulf %234, %236 : vector<1x8x8xf32>
    %238 = arith.addf %235, %237 : vector<1x8x8xf32>
    %c0_162 = arith.constant 0 : index
    %c0_163 = arith.constant 0 : index
    %c0_164 = arith.constant 0 : index
    %239 = vector.load %arg33[%c0_162, %c0_163, %c0_164] : memref<1x8x8xf32, #tpu.memory_space<vmem>>, vector<1x8x8xf32>
    tpu.vector_store %arg33[%c0_162, %c0_163, %c0_164], %238 {strides = array<i32>} : memref<1x8x8xf32, #tpu.memory_space<vmem>>, vector<1x8x8xf32>,
    %240 = arith.truncf %234 : vector<1x8x8xf32> to vector<1x8x8xbf16>
    %241 = vector.shape_cast %215 : vector<8x8xbf16> to vector<1x8x8xbf16>
    "tpu.trace_start"() <{level = 10 : i32, message = "bqk,bkh->bqh"}> : () -> ()
    %cst_165 = arith.constant dense<0.000000e+00> : vector<1x8x8xf32>
    %242 = tpu.matmul %240, %241, %cst_165 {dimension_numbers = #tpu.dot_dimension_numbers<[2], [1], [1], [2], [0, 0, 0, 1, 1, 2], [0], [0]>} : vector<1x8x8xbf16>, vector<1x8x8xbf16>, vector<1x8x8xf32> -> vector<1x8x8xf32>
    "tpu.trace_stop"() : () -> ()
    %243 = vector.shape_cast %242 : vector<1x8x8xf32> to vector<8x8xf32>
    %244 = arith.truncf %243 : vector<8x8xf32> to vector<8x8xbf16>
    %c0_166 = arith.constant 0 : index
    %c24 = arith.constant 24 : index
    %245 = vector.load %arg35[%c0_166, %c24] : memref<8x32xbf16, #tpu.memory_space<vmem>>, vector<8x8xbf16>
    tpu.vector_store %arg35[%c0_166, %c24], %244 {strides = array<i32>} : memref<8x32xbf16, #tpu.memory_space<vmem>>, vector<8x8xbf16>,
    %c0_167 = arith.constant 0 : index
    %c0_168 = arith.constant 0 : index
    %246 = vector.load %arg35[%c0_167, %c0_168] : memref<8x32xbf16, #tpu.memory_space<vmem>>, vector<8x32xbf16>
    %c0_169 = arith.constant 0 : index
    %c0_170 = arith.constant 0 : index
    %247 = vector.load %arg14[%c0_169, %c0_170] : memref<32x32xbf16, #tpu.memory_space<vmem>>, vector<32x32xbf16>
    %cst_171 = arith.constant dense<0.000000e+00> : vector<8x32xf32>
    %248 = tpu.matmul %246, %247, %cst_171 {dimension_numbers = #tpu.dot_dimension_numbers<[1], [0], [0], [1], [0, 0, 1, 1], [], []>} : vector<8x32xbf16>, vector<32x32xbf16>, vector<8x32xf32> -> vector<8x32xf32>
    %c0_172 = arith.constant 0 : index
    %c0_173 = arith.constant 0 : index
    %249 = vector.load %arg15[%c0_172, %c0_173] : memref<1x32xf32, #tpu.memory_space<vmem>>, vector<1x32xf32>
    %250 = vector.broadcast %249 : vector<1x32xf32> to vector<8x32xf32>
    %251 = arith.addf %248, %250 : vector<8x32xf32>
    %252 = arith.addf %1, %251 : vector<8x32xf32>
    %c0_174 = arith.constant 0 : index
    %c0_175 = arith.constant 0 : index
    %253 = vector.load %arg16[%c0_174, %c0_175] : memref<1x32xf32, #tpu.memory_space<vmem>>, vector<1x32xf32>
    %c0_176 = arith.constant 0 : index
    %c0_177 = arith.constant 0 : index
    %254 = vector.load %arg17[%c0_176, %c0_177] : memref<1x32xf32, #tpu.memory_space<vmem>>, vector<1x32xf32>
    %cst_178 = arith.constant dense<0.000000e+00> : vector<8xf32>
    %255 = vector.multi_reduction <add>, %252, %cst_178 [1] : vector<8x32xf32> to vector<8xf32>
    %256 = vector.shape_cast %255 : vector<8xf32> to vector<8x1xf32>
    %cst_179 = arith.constant 3.200000e+01 : f32
    %257 = vector.broadcast %cst_179 : f32 to vector<8x1xf32>
    %258 = arith.divf %256, %257 : vector<8x1xf32>
    %259 = vector.broadcast %258 : vector<8x1xf32> to vector<8x32xf32>
    %260 = arith.subf %252, %259 : vector<8x32xf32>
    %261 = arith.mulf %260, %260 : vector<8x32xf32>
    %cst_180 = arith.constant dense<0.000000e+00> : vector<8xf32>
    %262 = vector.multi_reduction <add>, %261, %cst_180 [1] : vector<8x32xf32> to vector<8xf32>
    %263 = vector.shape_cast %262 : vector<8xf32> to vector<8x1xf32>
    %cst_181 = arith.constant 3.200000e+01 : f32
    %264 = vector.broadcast %cst_181 : f32 to vector<8x1xf32>
    %265 = arith.divf %263, %264 : vector<8x1xf32>
    %cst_182 = arith.constant 9.99999974E-6 : f32
    %266 = vector.broadcast %cst_182 : f32 to vector<8x1xf32>
    %267 = arith.addf %265, %266 : vector<8x1xf32>
    %268 = math.rsqrt %267 : vector<8x1xf32>
    %269 = vector.broadcast %268 : vector<8x1xf32> to vector<8x32xf32>
    %270 = arith.mulf %260, %269 : vector<8x32xf32>
    %271 = vector.broadcast %253 : vector<1x32xf32> to vector<8x32xf32>
    %272 = arith.mulf %270, %271 : vector<8x32xf32>
    %273 = vector.broadcast %254 : vector<1x32xf32> to vector<8x32xf32>
    %274 = arith.addf %272, %273 : vector<8x32xf32>
    %275 = arith.truncf %274 : vector<8x32xf32> to vector<8x32xbf16>
    %276 = arith.truncf %3 : vector<16x32xf32> to vector<16x32xbf16>
    %cst_183 = arith.constant 0.000000e+00 : f32
    %277 = vector.broadcast %cst_183 : f32 to vector<1x8x16xf32>
    %c0_184 = arith.constant 0 : index
    %c0_185 = arith.constant 0 : index
    %c0_186 = arith.constant 0 : index
    %278 = vector.load %arg34[%c0_184, %c0_185, %c0_186] : memref<1x8x16xf32, #tpu.memory_space<vmem>>, vector<1x8x16xf32>
    tpu.vector_store %arg34[%c0_184, %c0_185, %c0_186], %277 {strides = array<i32>} : memref<1x8x16xf32, #tpu.memory_space<vmem>>, vector<1x8x16xf32>,
    %c0_187 = arith.constant 0 : index
    %c0_188 = arith.constant 0 : index
    %c0_189 = arith.constant 0 : index
    %279 = vector.load %arg18[%c0_187, %c0_188, %c0_189] : memref<4x32x8xbf16, #tpu.memory_space<vmem>>, vector<1x32x8xbf16>
    %280 = vector.shape_cast %279 : vector<1x32x8xbf16> to vector<32x8xbf16>
    %cst_190 = arith.constant dense<0.000000e+00> : vector<8x8xf32>
    %281 = tpu.matmul %275, %280, %cst_190 {dimension_numbers = #tpu.dot_dimension_numbers<[1], [0], [0], [1], [0, 0, 1, 1], [], []>} : vector<8x32xbf16>, vector<32x8xbf16>, vector<8x8xf32> -> vector<8x8xf32>
    %c0_191 = arith.constant 0 : index
    %c0_192 = arith.constant 0 : index
    %c0_193 = arith.constant 0 : index
    %282 = vector.load %arg19[%c0_191, %c0_192, %c0_193] : memref<4x1x8xf32, #tpu.memory_space<vmem>>, vector<1x1x8xf32>
    %283 = vector.shape_cast %282 : vector<1x1x8xf32> to vector<1x8xf32>
    %284 = vector.broadcast %283 : vector<1x8xf32> to vector<8x8xf32>
    %285 = arith.addf %281, %284 : vector<8x8xf32>
    %286 = arith.truncf %285 : vector<8x8xf32> to vector<8x8xbf16>
    %c0_194 = arith.constant 0 : index
    %c0_195 = arith.constant 0 : index
    %c0_196 = arith.constant 0 : index
    %287 = vector.load %arg20[%c0_194, %c0_195, %c0_196] : memref<4x32x8xbf16, #tpu.memory_space<vmem>>, vector<1x32x8xbf16>
    %288 = vector.shape_cast %287 : vector<1x32x8xbf16> to vector<32x8xbf16>
    %cst_197 = arith.constant dense<0.000000e+00> : vector<16x8xf32>
    %289 = tpu.matmul %276, %288, %cst_197 {dimension_numbers = #tpu.dot_dimension_numbers<[1], [0], [0], [1], [0, 0, 1, 1], [], []>} : vector<16x32xbf16>, vector<32x8xbf16>, vector<16x8xf32> -> vector<16x8xf32>
    %c0_198 = arith.constant 0 : index
    %c0_199 = arith.constant 0 : index
    %c0_200 = arith.constant 0 : index
    %290 = vector.load %arg21[%c0_198, %c0_199, %c0_200] : memref<4x1x8xf32, #tpu.memory_space<vmem>>, vector<1x1x8xf32>
    %291 = vector.shape_cast %290 : vector<1x1x8xf32> to vector<1x8xf32>
    %292 = vector.broadcast %291 : vector<1x8xf32> to vector<16x8xf32>
    %293 = arith.addf %289, %292 : vector<16x8xf32>
    %294 = arith.truncf %293 : vector<16x8xf32> to vector<16x8xbf16>
    %c0_201 = arith.constant 0 : index
    %c0_202 = arith.constant 0 : index
    %c0_203 = arith.constant 0 : index
    %295 = vector.load %arg22[%c0_201, %c0_202, %c0_203] : memref<4x32x8xbf16, #tpu.memory_space<vmem>>, vector<1x32x8xbf16>
    %296 = vector.shape_cast %295 : vector<1x32x8xbf16> to vector<32x8xbf16>
    %cst_204 = arith.constant dense<0.000000e+00> : vector<16x8xf32>
    %297 = tpu.matmul %276, %296, %cst_204 {dimension_numbers = #tpu.dot_dimension_numbers<[1], [0], [0], [1], [0, 0, 1, 1], [], []>} : vector<16x32xbf16>, vector<32x8xbf16>, vector<16x8xf32> -> vector<16x8xf32>
    %c0_205 = arith.constant 0 : index
    %c0_206 = arith.constant 0 : index
    %c0_207 = arith.constant 0 : index
    %298 = vector.load %arg23[%c0_205, %c0_206, %c0_207] : memref<4x1x8xf32, #tpu.memory_space<vmem>>, vector<1x1x8xf32>
    %299 = vector.shape_cast %298 : vector<1x1x8xf32> to vector<1x8xf32>
    %300 = vector.broadcast %299 : vector<1x8xf32> to vector<16x8xf32>
    %301 = arith.addf %297, %300 : vector<16x8xf32>
    %302 = arith.truncf %301 : vector<16x8xf32> to vector<16x8xbf16>
    %303 = vector.shape_cast %286 : vector<8x8xbf16> to vector<1x8x8xbf16>
    %304 = vector.shape_cast %294 : vector<16x8xbf16> to vector<1x16x8xbf16>
    "tpu.trace_start"() <{level = 10 : i32, message = "bqh,bkh->bqk"}> : () -> ()
    %cst_208 = arith.constant dense<0.000000e+00> : vector<1x8x16xf32>
    %305 = tpu.matmul %303, %304, %cst_208 {dimension_numbers = #tpu.dot_dimension_numbers<[2], [2], [1], [1], [0, 0, 0, 1, 1, 1], [0], [0]>} : vector<1x8x8xbf16>, vector<1x16x8xbf16>, vector<1x8x16xf32> -> vector<1x8x16xf32>
    "tpu.trace_stop"() : () -> ()
    %c0_209 = arith.constant 0 : index
    %c0_210 = arith.constant 0 : index
    %c0_211 = arith.constant 0 : index
    %306 = vector.load %arg5[%c0_209, %c0_210, %c0_211] : memref<1x1x16xf32, #tpu.memory_space<vmem>>, vector<1x1x16xf32>
    %307 = vector.broadcast %306 : vector<1x1x16xf32> to vector<1x8x16xf32>
    %308 = arith.addf %305, %307 : vector<1x8x16xf32>
    %cst_212 = arith.constant dense<0xFF800000> : vector<1x8xf32>
    %309 = vector.multi_reduction <maximumf>, %308, %cst_212 [2] : vector<1x8x16xf32> to vector<1x8xf32>
    %310 = vector.shape_cast %309 : vector<1x8xf32> to vector<1x8x1xf32>
    %311 = vector.broadcast %310 : vector<1x8x1xf32> to vector<1x8x16xf32>
    %312 = arith.subf %308, %311 : vector<1x8x16xf32>
    %313 = math.exp %312 : vector<1x8x16xf32>
    %cst_213 = arith.constant dense<0.000000e+00> : vector<1x8xf32>
    %314 = vector.multi_reduction <add>, %313, %cst_213 [2] : vector<1x8x16xf32> to vector<1x8xf32>
    %315 = vector.shape_cast %314 : vector<1x8xf32> to vector<1x8x1xf32>
    %316 = tpu.reciprocal %315 : vector<1x8x1xf32> -> vector<1x8x1xf32>
    %317 = vector.broadcast %316 : vector<1x8x1xf32> to vector<1x8x16xf32>
    %318 = arith.mulf %313, %317 : vector<1x8x16xf32>
    %c0_214 = arith.constant 0 : index
    %c0_215 = arith.constant 0 : index
    %c0_216 = arith.constant 0 : index
    %319 = vector.load %arg34[%c0_214, %c0_215, %c0_216] : memref<1x8x16xf32, #tpu.memory_space<vmem>>, vector<1x8x16xf32>
    %cst_217 = arith.constant 2.500000e-01 : f32
    %320 = vector.broadcast %cst_217 : f32 to vector<1x8x16xf32>
    %321 = arith.mulf %318, %320 : vector<1x8x16xf32>
    %322 = arith.addf %319, %321 : vector<1x8x16xf32>
    %c0_218 = arith.constant 0 : index
    %c0_219 = arith.constant 0 : index
    %c0_220 = arith.constant 0 : index
    %323 = vector.load %arg34[%c0_218, %c0_219, %c0_220] : memref<1x8x16xf32, #tpu.memory_space<vmem>>, vector<1x8x16xf32>
    tpu.vector_store %arg34[%c0_218, %c0_219, %c0_220], %322 {strides = array<i32>} : memref<1x8x16xf32, #tpu.memory_space<vmem>>, vector<1x8x16xf32>,
    %324 = arith.truncf %318 : vector<1x8x16xf32> to vector<1x8x16xbf16>
    %325 = vector.shape_cast %302 : vector<16x8xbf16> to vector<1x16x8xbf16>
    "tpu.trace_start"() <{level = 10 : i32, message = "bqk,bkh->bqh"}> : () -> ()
    %cst_221 = arith.constant dense<0.000000e+00> : vector<1x8x8xf32>
    %326 = tpu.matmul %324, %325, %cst_221 {dimension_numbers = #tpu.dot_dimension_numbers<[2], [1], [1], [2], [0, 0, 0, 1, 1, 2], [0], [0]>} : vector<1x8x16xbf16>, vector<1x16x8xbf16>, vector<1x8x8xf32> -> vector<1x8x8xf32>
    "tpu.trace_stop"() : () -> ()
    %327 = vector.shape_cast %326 : vector<1x8x8xf32> to vector<8x8xf32>
    %328 = arith.truncf %327 : vector<8x8xf32> to vector<8x8xbf16>
    %c0_222 = arith.constant 0 : index
    %c0_223 = arith.constant 0 : index
    %329 = vector.load %arg35[%c0_222, %c0_223] : memref<8x32xbf16, #tpu.memory_space<vmem>>, vector<8x8xbf16>
    tpu.vector_store %arg35[%c0_222, %c0_223], %328 {strides = array<i32>} : memref<8x32xbf16, #tpu.memory_space<vmem>>, vector<8x8xbf16>,
    %c1_224 = arith.constant 1 : index
    %c0_225 = arith.constant 0 : index
    %c0_226 = arith.constant 0 : index
    %330 = vector.load %arg18[%c1_224, %c0_225, %c0_226] : memref<4x32x8xbf16, #tpu.memory_space<vmem>>, vector<1x32x8xbf16>
    %331 = vector.shape_cast %330 : vector<1x32x8xbf16> to vector<32x8xbf16>
    %cst_227 = arith.constant dense<0.000000e+00> : vector<8x8xf32>
    %332 = tpu.matmul %275, %331, %cst_227 {dimension_numbers = #tpu.dot_dimension_numbers<[1], [0], [0], [1], [0, 0, 1, 1], [], []>} : vector<8x32xbf16>, vector<32x8xbf16>, vector<8x8xf32> -> vector<8x8xf32>
    %c1_228 = arith.constant 1 : index
    %c0_229 = arith.constant 0 : index
    %c0_230 = arith.constant 0 : index
    %333 = vector.load %arg19[%c1_228, %c0_229, %c0_230] : memref<4x1x8xf32, #tpu.memory_space<vmem>>, vector<1x1x8xf32>
    %334 = vector.shape_cast %333 : vector<1x1x8xf32> to vector<1x8xf32>
    %335 = vector.broadcast %334 : vector<1x8xf32> to vector<8x8xf32>
    %336 = arith.addf %332, %335 : vector<8x8xf32>
    %337 = arith.truncf %336 : vector<8x8xf32> to vector<8x8xbf16>
    %c1_231 = arith.constant 1 : index
    %c0_232 = arith.constant 0 : index
    %c0_233 = arith.constant 0 : index
    %338 = vector.load %arg20[%c1_231, %c0_232, %c0_233] : memref<4x32x8xbf16, #tpu.memory_space<vmem>>, vector<1x32x8xbf16>
    %339 = vector.shape_cast %338 : vector<1x32x8xbf16> to vector<32x8xbf16>
    %cst_234 = arith.constant dense<0.000000e+00> : vector<16x8xf32>
    %340 = tpu.matmul %276, %339, %cst_234 {dimension_numbers = #tpu.dot_dimension_numbers<[1], [0], [0], [1], [0, 0, 1, 1], [], []>} : vector<16x32xbf16>, vector<32x8xbf16>, vector<16x8xf32> -> vector<16x8xf32>
    %c1_235 = arith.constant 1 : index
    %c0_236 = arith.constant 0 : index
    %c0_237 = arith.constant 0 : index
    %341 = vector.load %arg21[%c1_235, %c0_236, %c0_237] : memref<4x1x8xf32, #tpu.memory_space<vmem>>, vector<1x1x8xf32>
    %342 = vector.shape_cast %341 : vector<1x1x8xf32> to vector<1x8xf32>
    %343 = vector.broadcast %342 : vector<1x8xf32> to vector<16x8xf32>
    %344 = arith.addf %340, %343 : vector<16x8xf32>
    %345 = arith.truncf %344 : vector<16x8xf32> to vector<16x8xbf16>
    %c1_238 = arith.constant 1 : index
    %c0_239 = arith.constant 0 : index
    %c0_240 = arith.constant 0 : index
    %346 = vector.load %arg22[%c1_238, %c0_239, %c0_240] : memref<4x32x8xbf16, #tpu.memory_space<vmem>>, vector<1x32x8xbf16>
    %347 = vector.shape_cast %346 : vector<1x32x8xbf16> to vector<32x8xbf16>
    %cst_241 = arith.constant dense<0.000000e+00> : vector<16x8xf32>
    %348 = tpu.matmul %276, %347, %cst_241 {dimension_numbers = #tpu.dot_dimension_numbers<[1], [0], [0], [1], [0, 0, 1, 1], [], []>} : vector<16x32xbf16>, vector<32x8xbf16>, vector<16x8xf32> -> vector<16x8xf32>
    %c1_242 = arith.constant 1 : index
    %c0_243 = arith.constant 0 : index
    %c0_244 = arith.constant 0 : index
    %349 = vector.load %arg23[%c1_242, %c0_243, %c0_244] : memref<4x1x8xf32, #tpu.memory_space<vmem>>, vector<1x1x8xf32>
    %350 = vector.shape_cast %349 : vector<1x1x8xf32> to vector<1x8xf32>
    %351 = vector.broadcast %350 : vector<1x8xf32> to vector<16x8xf32>
    %352 = arith.addf %348, %351 : vector<16x8xf32>
    %353 = arith.truncf %352 : vector<16x8xf32> to vector<16x8xbf16>
    %354 = vector.shape_cast %337 : vector<8x8xbf16> to vector<1x8x8xbf16>
    %355 = vector.shape_cast %345 : vector<16x8xbf16> to vector<1x16x8xbf16>
    "tpu.trace_start"() <{level = 10 : i32, message = "bqh,bkh->bqk"}> : () -> ()
    %cst_245 = arith.constant dense<0.000000e+00> : vector<1x8x16xf32>
    %356 = tpu.matmul %354, %355, %cst_245 {dimension_numbers = #tpu.dot_dimension_numbers<[2], [2], [1], [1], [0, 0, 0, 1, 1, 1], [0], [0]>} : vector<1x8x8xbf16>, vector<1x16x8xbf16>, vector<1x8x16xf32> -> vector<1x8x16xf32>
    "tpu.trace_stop"() : () -> ()
    %c0_246 = arith.constant 0 : index
    %c0_247 = arith.constant 0 : index
    %c0_248 = arith.constant 0 : index
    %357 = vector.load %arg5[%c0_246, %c0_247, %c0_248] : memref<1x1x16xf32, #tpu.memory_space<vmem>>, vector<1x1x16xf32>
    %358 = vector.broadcast %357 : vector<1x1x16xf32> to vector<1x8x16xf32>
    %359 = arith.addf %356, %358 : vector<1x8x16xf32>
    %cst_249 = arith.constant dense<0xFF800000> : vector<1x8xf32>
    %360 = vector.multi_reduction <maximumf>, %359, %cst_249 [2] : vector<1x8x16xf32> to vector<1x8xf32>
    %361 = vector.shape_cast %360 : vector<1x8xf32> to vector<1x8x1xf32>
    %362 = vector.broadcast %361 : vector<1x8x1xf32> to vector<1x8x16xf32>
    %363 = arith.subf %359, %362 : vector<1x8x16xf32>
    %364 = math.exp %363 : vector<1x8x16xf32>
    %cst_250 = arith.constant dense<0.000000e+00> : vector<1x8xf32>
    %365 = vector.multi_reduction <add>, %364, %cst_250 [2] : vector<1x8x16xf32> to vector<1x8xf32>
    %366 = vector.shape_cast %365 : vector<1x8xf32> to vector<1x8x1xf32>
    %367 = tpu.reciprocal %366 : vector<1x8x1xf32> -> vector<1x8x1xf32>
    %368 = vector.broadcast %367 : vector<1x8x1xf32> to vector<1x8x16xf32>
    %369 = arith.mulf %364, %368 : vector<1x8x16xf32>
    %c0_251 = arith.constant 0 : index
    %c0_252 = arith.constant 0 : index
    %c0_253 = arith.constant 0 : index
    %370 = vector.load %arg34[%c0_251, %c0_252, %c0_253] : memref<1x8x16xf32, #tpu.memory_space<vmem>>, vector<1x8x16xf32>
    %cst_254 = arith.constant 2.500000e-01 : f32
    %371 = vector.broadcast %cst_254 : f32 to vector<1x8x16xf32>
    %372 = arith.mulf %369, %371 : vector<1x8x16xf32>
    %373 = arith.addf %370, %372 : vector<1x8x16xf32>
    %c0_255 = arith.constant 0 : index
    %c0_256 = arith.constant 0 : index
    %c0_257 = arith.constant 0 : index
    %374 = vector.load %arg34[%c0_255, %c0_256, %c0_257] : memref<1x8x16xf32, #tpu.memory_space<vmem>>, vector<1x8x16xf32>
    tpu.vector_store %arg34[%c0_255, %c0_256, %c0_257], %373 {strides = array<i32>} : memref<1x8x16xf32, #tpu.memory_space<vmem>>, vector<1x8x16xf32>,
    %375 = arith.truncf %369 : vector<1x8x16xf32> to vector<1x8x16xbf16>
    %376 = vector.shape_cast %353 : vector<16x8xbf16> to vector<1x16x8xbf16>
    "tpu.trace_start"() <{level = 10 : i32, message = "bqk,bkh->bqh"}> : () -> ()
    %cst_258 = arith.constant dense<0.000000e+00> : vector<1x8x8xf32>
    %377 = tpu.matmul %375, %376, %cst_258 {dimension_numbers = #tpu.dot_dimension_numbers<[2], [1], [1], [2], [0, 0, 0, 1, 1, 2], [0], [0]>} : vector<1x8x16xbf16>, vector<1x16x8xbf16>, vector<1x8x8xf32> -> vector<1x8x8xf32>
    "tpu.trace_stop"() : () -> ()
    %378 = vector.shape_cast %377 : vector<1x8x8xf32> to vector<8x8xf32>
    %379 = arith.truncf %378 : vector<8x8xf32> to vector<8x8xbf16>
    %c0_259 = arith.constant 0 : index
    %c8_260 = arith.constant 8 : index
    %380 = vector.load %arg35[%c0_259, %c8_260] : memref<8x32xbf16, #tpu.memory_space<vmem>>, vector<8x8xbf16>
    tpu.vector_store %arg35[%c0_259, %c8_260], %379 {strides = array<i32>} : memref<8x32xbf16, #tpu.memory_space<vmem>>, vector<8x8xbf16>,
    %c2_261 = arith.constant 2 : index
    %c0_262 = arith.constant 0 : index
    %c0_263 = arith.constant 0 : index
    %381 = vector.load %arg18[%c2_261, %c0_262, %c0_263] : memref<4x32x8xbf16, #tpu.memory_space<vmem>>, vector<1x32x8xbf16>
    %382 = vector.shape_cast %381 : vector<1x32x8xbf16> to vector<32x8xbf16>
    %cst_264 = arith.constant dense<0.000000e+00> : vector<8x8xf32>
    %383 = tpu.matmul %275, %382, %cst_264 {dimension_numbers = #tpu.dot_dimension_numbers<[1], [0], [0], [1], [0, 0, 1, 1], [], []>} : vector<8x32xbf16>, vector<32x8xbf16>, vector<8x8xf32> -> vector<8x8xf32>
    %c2_265 = arith.constant 2 : index
    %c0_266 = arith.constant 0 : index
    %c0_267 = arith.constant 0 : index
    %384 = vector.load %arg19[%c2_265, %c0_266, %c0_267] : memref<4x1x8xf32, #tpu.memory_space<vmem>>, vector<1x1x8xf32>
    %385 = vector.shape_cast %384 : vector<1x1x8xf32> to vector<1x8xf32>
    %386 = vector.broadcast %385 : vector<1x8xf32> to vector<8x8xf32>
    %387 = arith.addf %383, %386 : vector<8x8xf32>
    %388 = arith.truncf %387 : vector<8x8xf32> to vector<8x8xbf16>
    %c2_268 = arith.constant 2 : index
    %c0_269 = arith.constant 0 : index
    %c0_270 = arith.constant 0 : index
    %389 = vector.load %arg20[%c2_268, %c0_269, %c0_270] : memref<4x32x8xbf16, #tpu.memory_space<vmem>>, vector<1x32x8xbf16>
    %390 = vector.shape_cast %389 : vector<1x32x8xbf16> to vector<32x8xbf16>
    %cst_271 = arith.constant dense<0.000000e+00> : vector<16x8xf32>
    %391 = tpu.matmul %276, %390, %cst_271 {dimension_numbers = #tpu.dot_dimension_numbers<[1], [0], [0], [1], [0, 0, 1, 1], [], []>} : vector<16x32xbf16>, vector<32x8xbf16>, vector<16x8xf32> -> vector<16x8xf32>
    %c2_272 = arith.constant 2 : index
    %c0_273 = arith.constant 0 : index
    %c0_274 = arith.constant 0 : index
    %392 = vector.load %arg21[%c2_272, %c0_273, %c0_274] : memref<4x1x8xf32, #tpu.memory_space<vmem>>, vector<1x1x8xf32>
    %393 = vector.shape_cast %392 : vector<1x1x8xf32> to vector<1x8xf32>
    %394 = vector.broadcast %393 : vector<1x8xf32> to vector<16x8xf32>
    %395 = arith.addf %391, %394 : vector<16x8xf32>
    %396 = arith.truncf %395 : vector<16x8xf32> to vector<16x8xbf16>
    %c2_275 = arith.constant 2 : index
    %c0_276 = arith.constant 0 : index
    %c0_277 = arith.constant 0 : index
    %397 = vector.load %arg22[%c2_275, %c0_276, %c0_277] : memref<4x32x8xbf16, #tpu.memory_space<vmem>>, vector<1x32x8xbf16>
    %398 = vector.shape_cast %397 : vector<1x32x8xbf16> to vector<32x8xbf16>
    %cst_278 = arith.constant dense<0.000000e+00> : vector<16x8xf32>
    %399 = tpu.matmul %276, %398, %cst_278 {dimension_numbers = #tpu.dot_dimension_numbers<[1], [0], [0], [1], [0, 0, 1, 1], [], []>} : vector<16x32xbf16>, vector<32x8xbf16>, vector<16x8xf32> -> vector<16x8xf32>
    %c2_279 = arith.constant 2 : index
    %c0_280 = arith.constant 0 : index
    %c0_281 = arith.constant 0 : index
    %400 = vector.load %arg23[%c2_279, %c0_280, %c0_281] : memref<4x1x8xf32, #tpu.memory_space<vmem>>, vector<1x1x8xf32>
    %401 = vector.shape_cast %400 : vector<1x1x8xf32> to vector<1x8xf32>
    %402 = vector.broadcast %401 : vector<1x8xf32> to vector<16x8xf32>
    %403 = arith.addf %399, %402 : vector<16x8xf32>
    %404 = arith.truncf %403 : vector<16x8xf32> to vector<16x8xbf16>
    %405 = vector.shape_cast %388 : vector<8x8xbf16> to vector<1x8x8xbf16>
    %406 = vector.shape_cast %396 : vector<16x8xbf16> to vector<1x16x8xbf16>
    "tpu.trace_start"() <{level = 10 : i32, message = "bqh,bkh->bqk"}> : () -> ()
    %cst_282 = arith.constant dense<0.000000e+00> : vector<1x8x16xf32>
    %407 = tpu.matmul %405, %406, %cst_282 {dimension_numbers = #tpu.dot_dimension_numbers<[2], [2], [1], [1], [0, 0, 0, 1, 1, 1], [0], [0]>} : vector<1x8x8xbf16>, vector<1x16x8xbf16>, vector<1x8x16xf32> -> vector<1x8x16xf32>
    "tpu.trace_stop"() : () -> ()
    %c0_283 = arith.constant 0 : index
    %c0_284 = arith.constant 0 : index
    %c0_285 = arith.constant 0 : index
    %408 = vector.load %arg5[%c0_283, %c0_284, %c0_285] : memref<1x1x16xf32, #tpu.memory_space<vmem>>, vector<1x1x16xf32>
    %409 = vector.broadcast %408 : vector<1x1x16xf32> to vector<1x8x16xf32>
    %410 = arith.addf %407, %409 : vector<1x8x16xf32>
    %cst_286 = arith.constant dense<0xFF800000> : vector<1x8xf32>
    %411 = vector.multi_reduction <maximumf>, %410, %cst_286 [2] : vector<1x8x16xf32> to vector<1x8xf32>
    %412 = vector.shape_cast %411 : vector<1x8xf32> to vector<1x8x1xf32>
    %413 = vector.broadcast %412 : vector<1x8x1xf32> to vector<1x8x16xf32>
    %414 = arith.subf %410, %413 : vector<1x8x16xf32>
    %415 = math.exp %414 : vector<1x8x16xf32>
    %cst_287 = arith.constant dense<0.000000e+00> : vector<1x8xf32>
    %416 = vector.multi_reduction <add>, %415, %cst_287 [2] : vector<1x8x16xf32> to vector<1x8xf32>
    %417 = vector.shape_cast %416 : vector<1x8xf32> to vector<1x8x1xf32>
    %418 = tpu.reciprocal %417 : vector<1x8x1xf32> -> vector<1x8x1xf32>
    %419 = vector.broadcast %418 : vector<1x8x1xf32> to vector<1x8x16xf32>
    %420 = arith.mulf %415, %419 : vector<1x8x16xf32>
    %c0_288 = arith.constant 0 : index
    %c0_289 = arith.constant 0 : index
    %c0_290 = arith.constant 0 : index
    %421 = vector.load %arg34[%c0_288, %c0_289, %c0_290] : memref<1x8x16xf32, #tpu.memory_space<vmem>>, vector<1x8x16xf32>
    %cst_291 = arith.constant 2.500000e-01 : f32
    %422 = vector.broadcast %cst_291 : f32 to vector<1x8x16xf32>
    %423 = arith.mulf %420, %422 : vector<1x8x16xf32>
    %424 = arith.addf %421, %423 : vector<1x8x16xf32>
    %c0_292 = arith.constant 0 : index
    %c0_293 = arith.constant 0 : index
    %c0_294 = arith.constant 0 : index
    %425 = vector.load %arg34[%c0_292, %c0_293, %c0_294] : memref<1x8x16xf32, #tpu.memory_space<vmem>>, vector<1x8x16xf32>
    tpu.vector_store %arg34[%c0_292, %c0_293, %c0_294], %424 {strides = array<i32>} : memref<1x8x16xf32, #tpu.memory_space<vmem>>, vector<1x8x16xf32>,
    %426 = arith.truncf %420 : vector<1x8x16xf32> to vector<1x8x16xbf16>
    %427 = vector.shape_cast %404 : vector<16x8xbf16> to vector<1x16x8xbf16>
    "tpu.trace_start"() <{level = 10 : i32, message = "bqk,bkh->bqh"}> : () -> ()
    %cst_295 = arith.constant dense<0.000000e+00> : vector<1x8x8xf32>
    %428 = tpu.matmul %426, %427, %cst_295 {dimension_numbers = #tpu.dot_dimension_numbers<[2], [1], [1], [2], [0, 0, 0, 1, 1, 2], [0], [0]>} : vector<1x8x16xbf16>, vector<1x16x8xbf16>, vector<1x8x8xf32> -> vector<1x8x8xf32>
    "tpu.trace_stop"() : () -> ()
    %429 = vector.shape_cast %428 : vector<1x8x8xf32> to vector<8x8xf32>
    %430 = arith.truncf %429 : vector<8x8xf32> to vector<8x8xbf16>
    %c0_296 = arith.constant 0 : index
    %c16_297 = arith.constant 16 : index
    %431 = vector.load %arg35[%c0_296, %c16_297] : memref<8x32xbf16, #tpu.memory_space<vmem>>, vector<8x8xbf16>
    tpu.vector_store %arg35[%c0_296, %c16_297], %430 {strides = array<i32>} : memref<8x32xbf16, #tpu.memory_space<vmem>>, vector<8x8xbf16>,
    %c3_298 = arith.constant 3 : index
    %c0_299 = arith.constant 0 : index
    %c0_300 = arith.constant 0 : index
    %432 = vector.load %arg18[%c3_298, %c0_299, %c0_300] : memref<4x32x8xbf16, #tpu.memory_space<vmem>>, vector<1x32x8xbf16>
    %433 = vector.shape_cast %432 : vector<1x32x8xbf16> to vector<32x8xbf16>
    %cst_301 = arith.constant dense<0.000000e+00> : vector<8x8xf32>
    %434 = tpu.matmul %275, %433, %cst_301 {dimension_numbers = #tpu.dot_dimension_numbers<[1], [0], [0], [1], [0, 0, 1, 1], [], []>} : vector<8x32xbf16>, vector<32x8xbf16>, vector<8x8xf32> -> vector<8x8xf32>
    %c3_302 = arith.constant 3 : index
    %c0_303 = arith.constant 0 : index
    %c0_304 = arith.constant 0 : index
    %435 = vector.load %arg19[%c3_302, %c0_303, %c0_304] : memref<4x1x8xf32, #tpu.memory_space<vmem>>, vector<1x1x8xf32>
    %436 = vector.shape_cast %435 : vector<1x1x8xf32> to vector<1x8xf32>
    %437 = vector.broadcast %436 : vector<1x8xf32> to vector<8x8xf32>
    %438 = arith.addf %434, %437 : vector<8x8xf32>
    %439 = arith.truncf %438 : vector<8x8xf32> to vector<8x8xbf16>
    %c3_305 = arith.constant 3 : index
    %c0_306 = arith.constant 0 : index
    %c0_307 = arith.constant 0 : index
    %440 = vector.load %arg20[%c3_305, %c0_306, %c0_307] : memref<4x32x8xbf16, #tpu.memory_space<vmem>>, vector<1x32x8xbf16>
    %441 = vector.shape_cast %440 : vector<1x32x8xbf16> to vector<32x8xbf16>
    %cst_308 = arith.constant dense<0.000000e+00> : vector<16x8xf32>
    %442 = tpu.matmul %276, %441, %cst_308 {dimension_numbers = #tpu.dot_dimension_numbers<[1], [0], [0], [1], [0, 0, 1, 1], [], []>} : vector<16x32xbf16>, vector<32x8xbf16>, vector<16x8xf32> -> vector<16x8xf32>
    %c3_309 = arith.constant 3 : index
    %c0_310 = arith.constant 0 : index
    %c0_311 = arith.constant 0 : index
    %443 = vector.load %arg21[%c3_309, %c0_310, %c0_311] : memref<4x1x8xf32, #tpu.memory_space<vmem>>, vector<1x1x8xf32>
    %444 = vector.shape_cast %443 : vector<1x1x8xf32> to vector<1x8xf32>
    %445 = vector.broadcast %444 : vector<1x8xf32> to vector<16x8xf32>
    %446 = arith.addf %442, %445 : vector<16x8xf32>
    %447 = arith.truncf %446 : vector<16x8xf32> to vector<16x8xbf16>
    %c3_312 = arith.constant 3 : index
    %c0_313 = arith.constant 0 : index
    %c0_314 = arith.constant 0 : index
    %448 = vector.load %arg22[%c3_312, %c0_313, %c0_314] : memref<4x32x8xbf16, #tpu.memory_space<vmem>>, vector<1x32x8xbf16>
    %449 = vector.shape_cast %448 : vector<1x32x8xbf16> to vector<32x8xbf16>
    %cst_315 = arith.constant dense<0.000000e+00> : vector<16x8xf32>
    %450 = tpu.matmul %276, %449, %cst_315 {dimension_numbers = #tpu.dot_dimension_numbers<[1], [0], [0], [1], [0, 0, 1, 1], [], []>} : vector<16x32xbf16>, vector<32x8xbf16>, vector<16x8xf32> -> vector<16x8xf32>
    %c3_316 = arith.constant 3 : index
    %c0_317 = arith.constant 0 : index
    %c0_318 = arith.constant 0 : index
    %451 = vector.load %arg23[%c3_316, %c0_317, %c0_318] : memref<4x1x8xf32, #tpu.memory_space<vmem>>, vector<1x1x8xf32>
    %452 = vector.shape_cast %451 : vector<1x1x8xf32> to vector<1x8xf32>
    %453 = vector.broadcast %452 : vector<1x8xf32> to vector<16x8xf32>
    %454 = arith.addf %450, %453 : vector<16x8xf32>
    %455 = arith.truncf %454 : vector<16x8xf32> to vector<16x8xbf16>
    %456 = vector.shape_cast %439 : vector<8x8xbf16> to vector<1x8x8xbf16>
    %457 = vector.shape_cast %447 : vector<16x8xbf16> to vector<1x16x8xbf16>
    "tpu.trace_start"() <{level = 10 : i32, message = "bqh,bkh->bqk"}> : () -> ()
    %cst_319 = arith.constant dense<0.000000e+00> : vector<1x8x16xf32>
    %458 = tpu.matmul %456, %457, %cst_319 {dimension_numbers = #tpu.dot_dimension_numbers<[2], [2], [1], [1], [0, 0, 0, 1, 1, 1], [0], [0]>} : vector<1x8x8xbf16>, vector<1x16x8xbf16>, vector<1x8x16xf32> -> vector<1x8x16xf32>
    "tpu.trace_stop"() : () -> ()
    %c0_320 = arith.constant 0 : index
    %c0_321 = arith.constant 0 : index
    %c0_322 = arith.constant 0 : index
    %459 = vector.load %arg5[%c0_320, %c0_321, %c0_322] : memref<1x1x16xf32, #tpu.memory_space<vmem>>, vector<1x1x16xf32>
    %460 = vector.broadcast %459 : vector<1x1x16xf32> to vector<1x8x16xf32>
    %461 = arith.addf %458, %460 : vector<1x8x16xf32>
    %cst_323 = arith.constant dense<0xFF800000> : vector<1x8xf32>
    %462 = vector.multi_reduction <maximumf>, %461, %cst_323 [2] : vector<1x8x16xf32> to vector<1x8xf32>
    %463 = vector.shape_cast %462 : vector<1x8xf32> to vector<1x8x1xf32>
    %464 = vector.broadcast %463 : vector<1x8x1xf32> to vector<1x8x16xf32>
    %465 = arith.subf %461, %464 : vector<1x8x16xf32>
    %466 = math.exp %465 : vector<1x8x16xf32>
    %cst_324 = arith.constant dense<0.000000e+00> : vector<1x8xf32>
    %467 = vector.multi_reduction <add>, %466, %cst_324 [2] : vector<1x8x16xf32> to vector<1x8xf32>
    %468 = vector.shape_cast %467 : vector<1x8xf32> to vector<1x8x1xf32>
    %469 = tpu.reciprocal %468 : vector<1x8x1xf32> -> vector<1x8x1xf32>
    %470 = vector.broadcast %469 : vector<1x8x1xf32> to vector<1x8x16xf32>
    %471 = arith.mulf %466, %470 : vector<1x8x16xf32>
    %c0_325 = arith.constant 0 : index
    %c0_326 = arith.constant 0 : index
    %c0_327 = arith.constant 0 : index
    %472 = vector.load %arg34[%c0_325, %c0_326, %c0_327] : memref<1x8x16xf32, #tpu.memory_space<vmem>>, vector<1x8x16xf32>
    %cst_328 = arith.constant 2.500000e-01 : f32
    %473 = vector.broadcast %cst_328 : f32 to vector<1x8x16xf32>
    %474 = arith.mulf %471, %473 : vector<1x8x16xf32>
    %475 = arith.addf %472, %474 : vector<1x8x16xf32>
    %c0_329 = arith.constant 0 : index
    %c0_330 = arith.constant 0 : index
    %c0_331 = arith.constant 0 : index
    %476 = vector.load %arg34[%c0_329, %c0_330, %c0_331] : memref<1x8x16xf32, #tpu.memory_space<vmem>>, vector<1x8x16xf32>
    tpu.vector_store %arg34[%c0_329, %c0_330, %c0_331], %475 {strides = array<i32>} : memref<1x8x16xf32, #tpu.memory_space<vmem>>, vector<1x8x16xf32>,
    %477 = arith.truncf %471 : vector<1x8x16xf32> to vector<1x8x16xbf16>
    %478 = vector.shape_cast %455 : vector<16x8xbf16> to vector<1x16x8xbf16>
    "tpu.trace_start"() <{level = 10 : i32, message = "bqk,bkh->bqh"}> : () -> ()
    %cst_332 = arith.constant dense<0.000000e+00> : vector<1x8x8xf32>
    %479 = tpu.matmul %477, %478, %cst_332 {dimension_numbers = #tpu.dot_dimension_numbers<[2], [1], [1], [2], [0, 0, 0, 1, 1, 2], [0], [0]>} : vector<1x8x16xbf16>, vector<1x16x8xbf16>, vector<1x8x8xf32> -> vector<1x8x8xf32>
    "tpu.trace_stop"() : () -> ()
    %480 = vector.shape_cast %479 : vector<1x8x8xf32> to vector<8x8xf32>
    %481 = arith.truncf %480 : vector<8x8xf32> to vector<8x8xbf16>
    %c0_333 = arith.constant 0 : index
    %c24_334 = arith.constant 24 : index
    %482 = vector.load %arg35[%c0_333, %c24_334] : memref<8x32xbf16, #tpu.memory_space<vmem>>, vector<8x8xbf16>
    tpu.vector_store %arg35[%c0_333, %c24_334], %481 {strides = array<i32>} : memref<8x32xbf16, #tpu.memory_space<vmem>>, vector<8x8xbf16>,
    %c0_335 = arith.constant 0 : index
    %c0_336 = arith.constant 0 : index
    %483 = vector.load %arg35[%c0_335, %c0_336] : memref<8x32xbf16, #tpu.memory_space<vmem>>, vector<8x32xbf16>
    %c0_337 = arith.constant 0 : index
    %c0_338 = arith.constant 0 : index
    %484 = vector.load %arg24[%c0_337, %c0_338] : memref<32x32xbf16, #tpu.memory_space<vmem>>, vector<32x32xbf16>
    %cst_339 = arith.constant dense<0.000000e+00> : vector<8x32xf32>
    %485 = tpu.matmul %483, %484, %cst_339 {dimension_numbers = #tpu.dot_dimension_numbers<[1], [0], [0], [1], [0, 0, 1, 1], [], []>} : vector<8x32xbf16>, vector<32x32xbf16>, vector<8x32xf32> -> vector<8x32xf32>
    %c0_340 = arith.constant 0 : index
    %c0_341 = arith.constant 0 : index
    %486 = vector.load %arg25[%c0_340, %c0_341] : memref<1x32xf32, #tpu.memory_space<vmem>>, vector<1x32xf32>
    %487 = vector.broadcast %486 : vector<1x32xf32> to vector<8x32xf32>
    %488 = arith.addf %485, %487 : vector<8x32xf32>
    %489 = arith.addf %274, %488 : vector<8x32xf32>
    %490 = vector.shape_cast %489 : vector<8x32xf32> to vector<1x8x32xf32>
    %c0_342 = arith.constant 0 : index
    %c0_343 = arith.constant 0 : index
    %c0_344 = arith.constant 0 : index
    %491 = vector.load %arg32[%c0_342, %c0_343, %c0_344] : memref<1x8x32xf32, #tpu.memory_space<vmem>>, vector<1x8x32xf32>
    tpu.vector_store %arg32[%c0_342, %c0_343, %c0_344], %490 {strides = array<i32>} : memref<1x8x32xf32, #tpu.memory_space<vmem>>, vector<1x8x32xf32>,
    %492 = arith.truncf %489 : vector<8x32xf32> to vector<8x32xbf16>
    %c0_345 = arith.constant 0 : index
    %c0_346 = arith.constant 0 : index
    %493 = vector.load %arg26[%c0_345, %c0_346] : memref<32x64xbf16, #tpu.memory_space<vmem>>, vector<32x64xbf16>
    %cst_347 = arith.constant dense<0.000000e+00> : vector<8x64xf32>
    %494 = tpu.matmul %492, %493, %cst_347 {dimension_numbers = #tpu.dot_dimension_numbers<[1], [0], [0], [1], [0, 0, 1, 1], [], []>} : vector<8x32xbf16>, vector<32x64xbf16>, vector<8x64xf32> -> vector<8x64xf32>
    %c0_348 = arith.constant 0 : index
    %c0_349 = arith.constant 0 : index
    %495 = vector.load %arg27[%c0_348, %c0_349] : memref<1x64xf32, #tpu.memory_space<vmem>>, vector<1x64xf32>
    %496 = vector.broadcast %495 : vector<1x64xf32> to vector<8x64xf32>
    %497 = arith.addf %494, %496 : vector<8x64xf32>
    %cst_350 = arith.constant 5.000000e-01 : f32
    %498 = vector.broadcast %cst_350 : f32 to vector<8x64xf32>
    %499 = arith.mulf %498, %497 : vector<8x64xf32>
    %cst_351 = arith.constant 0.707106769 : f32
    %500 = vector.broadcast %cst_351 : f32 to vector<8x64xf32>
    %501 = arith.mulf %497, %500 : vector<8x64xf32>
    %502 = math.erf %501 : vector<8x64xf32>
    %cst_352 = arith.constant 1.000000e+00 : f32
    %503 = vector.broadcast %cst_352 : f32 to vector<8x64xf32>
    %504 = arith.addf %503, %502 : vector<8x64xf32>
    %505 = arith.mulf %499, %504 : vector<8x64xf32>
    %c0_353 = arith.constant 0 : index
    %c0_354 = arith.constant 0 : index
    %c0_355 = arith.constant 0 : index
    %506 = vector.load %arg32[%c0_353, %c0_354, %c0_355] : memref<1x8x32xf32, #tpu.memory_space<vmem>>, vector<1x8x32xf32>
    %507 = arith.truncf %505 : vector<8x64xf32> to vector<8x64xbf16>
    %c0_356 = arith.constant 0 : index
    %c0_357 = arith.constant 0 : index
    %508 = vector.load %arg28[%c0_356, %c0_357] : memref<64x32xbf16, #tpu.memory_space<vmem>>, vector<64x32xbf16>
    %cst_358 = arith.constant dense<0.000000e+00> : vector<8x32xf32>
    %509 = tpu.matmul %507, %508, %cst_358 {dimension_numbers = #tpu.dot_dimension_numbers<[1], [0], [0], [1], [0, 0, 1, 1], [], []>} : vector<8x64xbf16>, vector<64x32xbf16>, vector<8x32xf32> -> vector<8x32xf32>
    %510 = vector.shape_cast %509 : vector<8x32xf32> to vector<1x8x32xf32>
    %511 = arith.addf %506, %510 : vector<1x8x32xf32>
    %c0_359 = arith.constant 0 : index
    %c0_360 = arith.constant 0 : index
    %c0_361 = arith.constant 0 : index
    %512 = vector.load %arg32[%c0_359, %c0_360, %c0_361] : memref<1x8x32xf32, #tpu.memory_space<vmem>>, vector<1x8x32xf32>
    tpu.vector_store %arg32[%c0_359, %c0_360, %c0_361], %511 {strides = array<i32>} : memref<1x8x32xf32, #tpu.memory_space<vmem>>, vector<1x8x32xf32>,
    %c0_362 = arith.constant 0 : index
    %c0_363 = arith.constant 0 : index
    %c0_364 = arith.constant 0 : index
    %513 = vector.load %arg32[%c0_362, %c0_363, %c0_364] : memref<1x8x32xf32, #tpu.memory_space<vmem>>, vector<1x8x32xf32>
    %514 = vector.shape_cast %513 : vector<1x8x32xf32> to vector<8x32xf32>
    %c0_365 = arith.constant 0 : index
    %c0_366 = arith.constant 0 : index
    %515 = vector.load %arg30[%c0_365, %c0_366] : memref<1x32xf32, #tpu.memory_space<vmem>>, vector<1x32xf32>
    %c0_367 = arith.constant 0 : index
    %c0_368 = arith.constant 0 : index
    %516 = vector.load %arg31[%c0_367, %c0_368] : memref<1x32xf32, #tpu.memory_space<vmem>>, vector<1x32xf32>
    %cst_369 = arith.constant dense<0.000000e+00> : vector<8xf32>
    %517 = vector.multi_reduction <add>, %514, %cst_369 [1] : vector<8x32xf32> to vector<8xf32>
    %518 = vector.shape_cast %517 : vector<8xf32> to vector<8x1xf32>
    %cst_370 = arith.constant 3.200000e+01 : f32
    %519 = vector.broadcast %cst_370 : f32 to vector<8x1xf32>
    %520 = arith.divf %518, %519 : vector<8x1xf32>
    %521 = vector.broadcast %520 : vector<8x1xf32> to vector<8x32xf32>
    %522 = arith.subf %514, %521 : vector<8x32xf32>
    %523 = arith.mulf %522, %522 : vector<8x32xf32>
    %cst_371 = arith.constant dense<0.000000e+00> : vector<8xf32>
    %524 = vector.multi_reduction <add>, %523, %cst_371 [1] : vector<8x32xf32> to vector<8xf32>
    %525 = vector.shape_cast %524 : vector<8xf32> to vector<8x1xf32>
    %cst_372 = arith.constant 3.200000e+01 : f32
    %526 = vector.broadcast %cst_372 : f32 to vector<8x1xf32>
    %527 = arith.divf %525, %526 : vector<8x1xf32>
    %cst_373 = arith.constant 9.99999974E-6 : f32
    %528 = vector.broadcast %cst_373 : f32 to vector<8x1xf32>
    %529 = arith.addf %527, %528 : vector<8x1xf32>
    %530 = math.rsqrt %529 : vector<8x1xf32>
    %531 = vector.broadcast %530 : vector<8x1xf32> to vector<8x32xf32>
    %532 = arith.mulf %522, %531 : vector<8x32xf32>
    %533 = vector.broadcast %515 : vector<1x32xf32> to vector<8x32xf32>
    %534 = arith.mulf %532, %533 : vector<8x32xf32>
    %535 = vector.broadcast %516 : vector<1x32xf32> to vector<8x32xf32>
    %536 = arith.addf %534, %535 : vector<8x32xf32>
    %537 = vector.shape_cast %536 : vector<8x32xf32> to vector<1x8x32xf32>
    %c0_374 = arith.constant 0 : index
    %c0_375 = arith.constant 0 : index
    %c0_376 = arith.constant 0 : index
    %538 = vector.load %arg32[%c0_374, %c0_375, %c0_376] : memref<1x8x32xf32, #tpu.memory_space<vmem>>, vector<1x8x32xf32>
    tpu.vector_store %arg32[%c0_374, %c0_375, %c0_376], %537 {strides = array<i32>} : memref<1x8x32xf32, #tpu.memory_space<vmem>>, vector<1x8x32xf32>,
    return
  }
  func.func @transform_0(%arg0: i32) -> (i32, i32, i32) {
    %c0_i32 = arith.constant 0 : i32
    %c0_i32_0 = arith.constant 0 : i32
    %c0_i32_1 = arith.constant 0 : i32
    return %arg0, %c0_i32, %c0_i32_0 : i32, i32, i32
  }
  func.func @transform_1(%arg0: i32) -> (i32, i32, i32) {
    %c0_i32 = arith.constant 0 : i32
    %c0_i32_0 = arith.constant 0 : i32
    %c0_i32_1 = arith.constant 0 : i32
    return %arg0, %c0_i32, %c0_i32_0 : i32, i32, i32
  }
  func.func @transform_2(%arg0: i32) -> (i32, i32) {
    %c0_i32 = arith.constant 0 : i32
    %c0_i32_0 = arith.constant 0 : i32
    %c0_i32_1 = arith.constant 0 : i32
    return %c0_i32, %c0_i32_0 : i32, i32
  }
  func.func @transform_3(%arg0: i32) -> (i32, i32, i32) {
    %c0_i32 = arith.constant 0 : i32
    %c0_i32_0 = arith.constant 0 : i32
    %c0_i32_1 = arith.constant 0 : i32
    return %arg0, %c0_i32, %c0_i32_0 : i32, i32, i32
  }
  func.func @transform_4(%arg0: i32) -> (i32, i32, i32) {
    %c0_i32 = arith.constant 0 : i32
    %c0_i32_0 = arith.constant 0 : i32
    %c0_i32_1 = arith.constant 0 : i32
    return %arg0, %c0_i32, %c0_i32_0 : i32, i32, i32
  }
  func.func @transform_5(%arg0: i32) -> (i32, i32) {
    %c0_i32 = arith.constant 0 : i32
    %c0_i32_0 = arith.constant 0 : i32
    %c0_i32_1 = arith.constant 0 : i32
    return %c0_i32, %c0_i32_0 : i32, i32
  }
  func.func @transform_6(%arg0: i32) -> (i32, i32) {
    %c0_i32 = arith.constant 0 : i32
    %c0_i32_0 = arith.constant 0 : i32
    %c0_i32_1 = arith.constant 0 : i32
    return %c0_i32, %c0_i32_0 : i32, i32
  }
  func.func @transform_7(%arg0: i32) -> (i32, i32, i32) {
    %c0_i32 = arith.constant 0 : i32
    %c0_i32_0 = arith.constant 0 : i32
    %c0_i32_1 = arith.constant 0 : i32
    %c0_i32_2 = arith.constant 0 : i32
    return %c0_i32, %c0_i32_0, %c0_i32_1 : i32, i32, i32
  }
  func.func @transform_8(%arg0: i32) -> (i32, i32, i32) {
    %c0_i32 = arith.constant 0 : i32
    %c0_i32_0 = arith.constant 0 : i32
    %c0_i32_1 = arith.constant 0 : i32
    %c0_i32_2 = arith.constant 0 : i32
    return %c0_i32, %c0_i32_0, %c0_i32_1 : i32, i32, i32
  }
  func.func @transform_9(%arg0: i32) -> (i32, i32, i32) {
    %c0_i32 = arith.constant 0 : i32
    %c0_i32_0 = arith.constant 0 : i32
    %c0_i32_1 = arith.constant 0 : i32
    %c0_i32_2 = arith.constant 0 : i32
    return %c0_i32, %c0_i32_0, %c0_i32_1 : i32, i32, i32
  }
  func.func @transform_10(%arg0: i32) -> (i32, i32, i32) {
    %c0_i32 = arith.constant 0 : i32
    %c0_i32_0 = arith.constant 0 : i32
    %c0_i32_1 = arith.constant 0 : i32
    %c0_i32_2 = arith.constant 0 : i32
    return %c0_i32, %c0_i32_0, %c0_i32_1 : i32, i32, i32
  }
  func.func @transform_11(%arg0: i32) -> (i32, i32, i32) {
    %c0_i32 = arith.constant 0 : i32
    %c0_i32_0 = arith.constant 0 : i32
    %c0_i32_1 = arith.constant 0 : i32
    %c0_i32_2 = arith.constant 0 : i32
    return %c0_i32, %c0_i32_0, %c0_i32_1 : i32, i32, i32
  }
  func.func @transform_12(%arg0: i32) -> (i32, i32, i32) {
    %c0_i32 = arith.constant 0 : i32
    %c0_i32_0 = arith.constant 0 : i32
    %c0_i32_1 = arith.constant 0 : i32
    %c0_i32_2 = arith.constant 0 : i32
    return %c0_i32, %c0_i32_0, %c0_i32_1 : i32, i32, i32
  }
  func.func @transform_13(%arg0: i32) -> (i32, i32) {
    %c0_i32 = arith.constant 0 : i32
    %c0_i32_0 = arith.constant 0 : i32
    %c0_i32_1 = arith.constant 0 : i32
    return %c0_i32, %c0_i32_0 : i32, i32
  }
  func.func @transform_14(%arg0: i32) -> (i32, i32) {
    %c0_i32 = arith.constant 0 : i32
    %c0_i32_0 = arith.constant 0 : i32
    %c0_i32_1 = arith.constant 0 : i32
    return %c0_i32, %c0_i32_0 : i32, i32
  }
  func.func @transform_15(%arg0: i32) -> (i32, i32) {
    %c0_i32 = arith.constant 0 : i32
    %c0_i32_0 = arith.constant 0 : i32
    %c0_i32_1 = arith.constant 0 : i32
    return %c0_i32, %c0_i32_0 : i32, i32
  }
  func.func @transform_16(%arg0: i32) -> (i32, i32) {
    %c0_i32 = arith.constant 0 : i32
    %c0_i32_0 = arith.constant 0 : i32
    %c0_i32_1 = arith.constant 0 : i32
    return %c0_i32, %c0_i32_0 : i32, i32
  }
  func.func @transform_17(%arg0: i32) -> (i32, i32, i32) {
    %c0_i32 = arith.constant 0 : i32
    %c0_i32_0 = arith.constant 0 : i32
    %c0_i32_1 = arith.constant 0 : i32
    %c0_i32_2 = arith.constant 0 : i32
    return %c0_i32, %c0_i32_0, %c0_i32_1 : i32, i32, i32
  }
  func.func @transform_18(%arg0: i32) -> (i32, i32, i32) {
    %c0_i32 = arith.constant 0 : i32
    %c0_i32_0 = arith.constant 0 : i32
    %c0_i32_1 = arith.constant 0 : i32
    %c0_i32_2 = arith.constant 0 : i32
    return %c0_i32, %c0_i32_0, %c0_i32_1 : i32, i32, i32
  }
  func.func @transform_19(%arg0: i32) -> (i32, i32, i32) {
    %c0_i32 = arith.constant 0 : i32
    %c0_i32_0 = arith.constant 0 : i32
    %c0_i32_1 = arith.constant 0 : i32
    %c0_i32_2 = arith.constant 0 : i32
    return %c0_i32, %c0_i32_0, %c0_i32_1 : i32, i32, i32
  }
  func.func @transform_20(%arg0: i32) -> (i32, i32, i32) {
    %c0_i32 = arith.constant 0 : i32
    %c0_i32_0 = arith.constant 0 : i32
    %c0_i32_1 = arith.constant 0 : i32
    %c0_i32_2 = arith.constant 0 : i32
    return %c0_i32, %c0_i32_0, %c0_i32_1 : i32, i32, i32
  }
  func.func @transform_21(%arg0: i32) -> (i32, i32, i32) {
    %c0_i32 = arith.constant 0 : i32
    %c0_i32_0 = arith.constant 0 : i32
    %c0_i32_1 = arith.constant 0 : i32
    %c0_i32_2 = arith.constant 0 : i32
    return %c0_i32, %c0_i32_0, %c0_i32_1 : i32, i32, i32
  }
  func.func @transform_22(%arg0: i32) -> (i32, i32, i32) {
    %c0_i32 = arith.constant 0 : i32
    %c0_i32_0 = arith.constant 0 : i32
    %c0_i32_1 = arith.constant 0 : i32
    %c0_i32_2 = arith.constant 0 : i32
    return %c0_i32, %c0_i32_0, %c0_i32_1 : i32, i32, i32
  }
  func.func @transform_23(%arg0: i32) -> (i32, i32) {
    %c0_i32 = arith.constant 0 : i32
    %c0_i32_0 = arith.constant 0 : i32
    %c0_i32_1 = arith.constant 0 : i32
    return %c0_i32, %c0_i32_0 : i32, i32
  }
  func.func @transform_24(%arg0: i32) -> (i32, i32) {
    %c0_i32 = arith.constant 0 : i32
    %c0_i32_0 = arith.constant 0 : i32
    %c0_i32_1 = arith.constant 0 : i32
    return %c0_i32, %c0_i32_0 : i32, i32
  }
  func.func @transform_25(%arg0: i32) -> (i32, i32) {
    %c0_i32 = arith.constant 0 : i32
    %c0_i32_0 = arith.constant 0 : i32
    %c0_i32_1 = arith.constant 0 : i32
    return %c0_i32, %c0_i32_0 : i32, i32
  }
  func.func @transform_26(%arg0: i32) -> (i32, i32) {
    %c0_i32 = arith.constant 0 : i32
    %c0_i32_0 = arith.constant 0 : i32
    %c0_i32_1 = arith.constant 0 : i32
    return %c0_i32, %c0_i32_0 : i32, i32
  }
  func.func @transform_27(%arg0: i32) -> (i32, i32) {
    %c0_i32 = arith.constant 0 : i32
    %c0_i32_0 = arith.constant 0 : i32
    %c0_i32_1 = arith.constant 0 : i32
    return %c0_i32, %c0_i32_0 : i32, i32
  }
  func.func @transform_28(%arg0: i32) -> (i32, i32) {
    %c0_i32 = arith.constant 0 : i32
    %c0_i32_0 = arith.constant 0 : i32
    %c0_i32_1 = arith.constant 0 : i32
    return %c0_i32, %c0_i32_0 : i32, i32
  }
  func.func @transform_29(%arg0: i32) -> (i32, i32) {
    %c0_i32 = arith.constant 0 : i32
    %c0_i32_0 = arith.constant 0 : i32
    %c0_i32_1 = arith.constant 0 : i32
    return %c0_i32, %c0_i32_0 : i32, i32
  }
  func.func @transform_30(%arg0: i32) -> (i32, i32) {
    %c0_i32 = arith.constant 0 : i32
    %c0_i32_0 = arith.constant 0 : i32
    %c0_i32_1 = arith.constant 0 : i32
    return %c0_i32, %c0_i32_0 : i32, i32
  }
  func.func @transform_31(%arg0: i32) -> (i32, i32, i32) {
    %c0_i32 = arith.constant 0 : i32
    %c0_i32_0 = arith.constant 0 : i32
    %c0_i32_1 = arith.constant 0 : i32
    return %arg0, %c0_i32, %c0_i32_0 : i32, i32, i32
  }
  func.func @transform_32(%arg0: i32) -> (i32, i32, i32) {
    %c0_i32 = arith.constant 0 : i32
    %c0_i32_0 = arith.constant 0 : i32
    %c0_i32_1 = arith.constant 0 : i32
    return %arg0, %c0_i32, %c0_i32_0 : i32, i32, i32
  }
  func.func @transform_33(%arg0: i32) -> (i32, i32, i32) {
    %c0_i32 = arith.constant 0 : i32
    %c0_i32_0 = arith.constant 0 : i32
    %c0_i32_1 = arith.constant 0 : i32
    return %arg0, %c0_i32, %c0_i32_0 : i32, i32, i32
  }
}

</mosaic_0001>

<bundles_post_ra>
// kernel: tpu_custom_call.1
= control target key start
LH: loop header
LB: loop body
LE: loop exit
PB: predicated region body
PF: predicated region fallthrough
CT: control target
= control target key end

     0   :  { %s5275_s6 = smov 1   ;;  %s5276_s10 = smov 2   ;;  %s6104_s0 = inlined_call_operand.smem [shape: u32[34], index: -1, kind: input, shape index: {}] }
   0x1   :  { %s5323_s5 = sld [smem:[%s6104_s0]]   ;;  %s5277_s14 = smov 3  }
   0x2   :  { %s5328_s9 = sld [smem:[%s6104_s0 + %s5275_s6]]   ;;  %s5278_s18 = smov 4  }
   0x3   :  { %s5333_s13 = sld [smem:[%s6104_s0 + %s5276_s10]]   ;;  %s5279_s22 = smov 5  }
   0x4   :  { %s5338_s17 = sld [smem:[%s6104_s0 + %s5277_s14]]   ;;  %s5280_s26 = smov 6  }
   0x5   :  { %s5343_s21 = sld [smem:[%s6104_s0 + %s5278_s18]]   ;;  %s5281_s30 = smov 7  }
   0x6   :  { %s5348_s25 = sld [smem:[%s6104_s0 + %s5279_s22]]   ;;  %s5282_s4 = smov 8  }
   0x7   :  { %6131 = sst [smem:[#allocation10_spill]] %s5323_s5  ;;  %s5283_s10 = smov 9  }
   0x8   :  { %6132 = sst [smem:[#allocation11_spill]] %s5328_s9  ;;  %s5284_s15 = smov 10  }
   0x9   :  { %6133 = sst [smem:[#allocation12_spill]] %s5333_s13  ;;  %s5285_s20 = smov 11  }
   0xa   :  { %6134 = sst [smem:[#allocation13_spill]] %s5338_s17  ;;  %s5287_s1 = smov 13  }
   0xb   :  { %6135 = sst [smem:[#allocation14_spill]] %s5343_s21  ;;  %s5288_s7 = smov 14  }
   0xc   :  { %s5353_s29 = sld [smem:[%s6104_s0 + %s5280_s26]]   ;;  %s5286_s26 = smov 12  }
   0xd   :  { %s5358_s3 = sld [smem:[%s6104_s0 + %s5281_s30]]   ;;  %s5290_s22 = smov 16  }
   0xe   :  { %s5363_s8 = sld [smem:[%s6104_s0 + %s5282_s4]]   ;;  %s5291_s28 = smov 17  }
   0xf   :  { %s5368_s14 = sld [smem:[%s6104_s0 + %s5283_s10]]  }
  0x10   :  { %s5373_s19 = sld [smem:[%s6104_s0 + %s5284_s15]]   ;;  %s5289_s15 = smov 15  }
  0x11   :  { %s5378_s24 = sld [smem:[%s6104_s0 + %s5285_s20]]  }
  0x12   :  { %s5383_s30 = sld [smem:[%s6104_s0 + %s5286_s26]]  }
  0x13   :  { %6136 = sst [smem:[#allocation15_spill]] %s5358_s3 }
  0x14   :  { %6137 = sst [smem:[#allocation16_spill]] %s5363_s8 }
  0x15   :  { %6138 = sst [smem:[#allocation17_spill]] %s5368_s14 }
  0x16   :  { %s5388_s6 = sld [smem:[%s6104_s0 + %s5287_s1]]  }
  0x17   :  { %s5393_s12 = sld [smem:[%s6104_s0 + %s5288_s7]]   ;;  %s5292_s7 = smov 18  }
  0x18   :  { %s5398_s20 = sld [smem:[%s6104_s0 + %s5289_s15]]   ;;  %s5293_s15 = smov 19  }
  0x19   :  { %s5403_s27 = sld [smem:[%s6104_s0 + %s5290_s22]]   ;;  %s5294_s22 = smov 20  }
  0x1a   :  { %s5408_s4 = sld [smem:[%s6104_s0 + %s5291_s28]]   ;;  %s5295_s28 = smov 21  }
  0x1b   :  { %s5413_s21 = sld [smem:[%s6104_s0 + %s5292_s7]]   ;;  %s5296_s7 = smov 22  }
  0x1c   :  { %6139 = sst [smem:[#allocation18_spill]] %s5388_s6 }
  0x1d   :  { %6140 = sst [smem:[#allocation19_spill]] %s5393_s12 }
  0x1e   :  { %6141 = sst [smem:[#allocation20_spill]] %s5398_s20 }
  0x1f   :  { %6142 = sst [smem:[#allocation21_spill]] %s5403_s27 }
  0x20   :  { %6143 = sst [smem:[#allocation22_spill]] %s5408_s4 }
  0x21   :  { %6144 = sst [smem:[#allocation23_spill]] %s5413_s21 }
  0x22   :  { %s5418_s20 = sld [smem:[%s6104_s0 + %s5293_s15]]   ;;  %s5297_s15 = smov 23  }
  0x23   :  { %s5423_s27 = sld [smem:[%s6104_s0 + %s5294_s22]]   ;;  %s5298_s22 = smov 24  }
  0x24   :  { %s5428_s4 = sld [smem:[%s6104_s0 + %s5295_s28]]   ;;  %s5299_s28 = smov 25  }
  0x25   :  { %s5433_s21 = sld [smem:[%s6104_s0 + %s5296_s7]]   ;;  %s5300_s7 = smov 26  }
  0x28   :  { %6145 = sst [smem:[#allocation24_spill]] %s5418_s20 }
  0x29   :  { %6146 = sst [smem:[#allocation25_spill]] %s5423_s27 }
  0x2a   :  { %6147 = sst [smem:[#allocation26_spill]] %s5428_s4 }
  0x2b   :  { %6148 = sst [smem:[#allocation27_spill]] %s5433_s21 }
  0x2c   :  { %s5438_s20 = sld [smem:[%s6104_s0 + %s5297_s15]]   ;;  %s5301_s15 = smov 27  }
  0x2d   :  { %s5443_s27 = sld [smem:[%s6104_s0 + %s5298_s22]]   ;;  %s5302_s22 = smov 29  }
  0x2e   :  { %s5448_s4 = sld [smem:[%s6104_s0 + %s5299_s28]]   ;;  %s5303_s28 = smov 30  }
  0x2f   :  { %s5453_s21 = sld [smem:[%s6104_s0 + %s5300_s7]]   ;;  %s5304_s7 = smov 31  }
  0x32   :  { %6149 = sst [smem:[#allocation28_spill]] %s5438_s20 }
  0x33   :  { %6150 = sst [smem:[#allocation29_spill]] %s5443_s27 }
  0x34   :  { %6151 = sst [smem:[#allocation30_spill]] %s5448_s4 }
  0x35   :  { %6152 = sst [smem:[#allocation31_spill]] %s5453_s21 }
  0x36   :  { %s5458_s20 = sld [smem:[%s6104_s0 + %s5301_s15]]   ;;  %s5305_s15 = smov 32  }
  0x37   :  { %s5463_s27 = sld [smem:[%s6104_s0 + %s5302_s22]]   ;;  %s5306_s22 = smov 33  }
  0x38   :  { %s5468_s4 = sld [smem:[%s6104_s0 + %s5303_s28]]  }
  0x39   :  { %s5473_s21 = sld [smem:[%s6104_s0 + %s5304_s7]]  }
  0x3c   :  { %6153 = sst [smem:[#allocation32_spill]] %s5458_s20 }
  0x3d   :  { %6154 = sst [smem:[#allocation33_spill]] %s5463_s27 }
  0x3e   :  { %s5478_s20 = sld [smem:[%s6104_s0 + %s5305_s15]]  }
  0x3f   :  { %s5483_s27 = sld [smem:[%s6104_s0 + %s5306_s22]]  }
  0x40   :  { %73 = vsyncpa [#allocation4], 0 }
  0x41   :  { %75 = vsyncpa [#allocation4 + $0x1], 0 }
  0x42   :  { %76 = vsyncpa [#allocation6], 0 }
  0x43   :  { %78 = vsyncpa [#allocation6 + $0x1], 0  ;;  %s5485_s28 = smov 0   ;;  %s5487_s1 = smov 0  }
  0x44   :  { %s5489_s2 = smov 0   ;;  %s5491_s7 = smov 0  }
  0x45 LB: > { %s6155_s14 = sld [smem:[#allocation17_spill]]  ;;  %s6156_s8 = sld [smem:[#allocation16_spill]]  ;;  %s5273_s7 = sphi %s5491_s7, %s6189_s7   ;;  %s5269_s2 = sphi %s5489_s2, %s6188_s2   ;;  %s5265_s1 = sphi %s5487_s1, %s6187_s1   ;;  %s5261_s28 = sphi %s5485_s28, %s6186_s28  }
  0x46   : > { %s6157_s6 = sld [smem:[#allocation18_spill]]  ;;  %s6158_s3 = sld [smem:[#allocation15_spill]] }
  0x47   : > { %s5506_s0 = sadd.s32 4294967295, %s5273_s7   ;;  %s6114_s10 = sadd.s32 4294967294, %s5273_s7  }
  0x48   : > { %s5510_s11 = sadd.s32 1, %s5273_s7   ;;  %s762_s15 = sadd.s32 1, %s5269_s2 }
  0x49   : > { %s759_s16 = ssub.s32 %s5273_s7, %s5510_s11  ;;  %p772_p0 = scmp.ne.s32.totalorder %s5269_s2, %s5265_s1 }
  0x4a   : > { %p760_p1 = scmp.eq.s32.totalorder %s759_s16, 0  ;;  %p773_p2 = scmp.eq.s32.totalorder %s5506_s0, 1 }
  0x4b   : > { %p778_p3 = scmp.ne.s32.totalorder %s5265_s1, %s5261_s28  ;;  %p779_p4 = scmp.eq.s32.totalorder %s6114_s10, 1 }
  0x4c   : > { %s5523_s18 = scalar_select %p760_p1, %s5269_s2, %s762_s15  }
  0x4d   : > { %p5525_p5 = por %p773_p2, %p772_p0  ;;  %p5529_p6 = por %p779_p4, %p778_p3 }
  0x4e   : > { %p4264_p7 = scmp.ge.s32.totalorder %s5273_s7, 1  ;;  %p957_p8 = scmp.lt.s32.totalorder %s5273_s7, 3 }
  0x50   : > { %p958_p9 = pnand %p4264_p7, %p957_p8 }
  0x51   : > { %s6161_s5 = sld [smem:[#allocation10_spill]] (!%p958_p9)  ;;  %p1061_p10 = scmp.lt.s32.totalorder (!%p958_p9), %s5506_s0, 1  ;;  %vm1082_vm0 = vcmask (!%p958_p9), 261120   ;;  %v5053_v7 = vld [vmem:[%s6158_s3] sm:$0xff] (!%p958_p9)   ;;  %v5307_v9 = vmov (!%p958_p9), 0.0   ;;  %v5055_v10 = vld [vmem:[%s6158_s3 + $0x8] sm:$0xff] (!%p958_p9)  }
  0x52   : > { %961 = sbr.rel (%p958_p9) target bundleno = 8700 (0x21fc), region = 144  ;;  %v5054_v8 = vld [vmem:[%s6155_s14] sm:$0xff] (!%p958_p9)   ;;  %4643 = vmatprep.subr.bf16.mxu0 (!%p958_p9), %v5307_v9  ;;  %4651 = vmatprep.subr.bf16.mxu1 (!%p958_p9), %v5307_v9  ;;  %v5056_v11 = vld [vmem:[%s6155_s14 + $0x8] sm:$0xff] (!%p958_p9)   ;;  %vm5308_vm1 = vmmov (!%p958_p9), 0   ;;  %vm1112_vm2 = vcmask (!%p958_p9), 64512   ;;  %vm1383_vm3 = vcmask (!%p958_p9), 1043456  }
  0x53   : > { %4644 = vmatpush3.bf16.msra.mxu0 (!%p958_p9), %v5053_v7  ;;  %4652 = vmatpush3.bf16.msra.mxu1 (!%p958_p9), %v5054_v8  ;;  %v4271_v16 = vld [vmem:[%s5348_s25] ss:$0 sm:$0xff] (!%p958_p9)  ;;  %v5058_v23 = vld [vmem:[%s5378_s24 + $0x8] sm:$0xff] (!%p958_p9)   ;;  %v5059_v43 = vld [vmem:[%s6158_s3 + $0x10] sm:$0xff] (!%p958_p9)   ;;  %s6162_s17 = sld [smem:[#allocation13_spill]] (!%p958_p9)  ;;  %s6163_s13 = sld [smem:[#allocation12_spill]] (!%p958_p9) }
  0x54   : > { %4645 = vmatprep.subr.bf16.mxu0 (!%p958_p9), %v5307_v9  ;;  %4653 = vmatprep.subr.bf16.mxu1 (!%p958_p9), %v5307_v9  ;;  %v4272_v18 = vld [vmem:[%s5353_s29] ss:$0 sm:$0xff] (!%p958_p9)  ;;  %v5060_v48 = vld [vmem:[%s6158_s3 + $0x18] sm:$0xff] (!%p958_p9)   ;;  %v5061_v49 = vld [vmem:[%s5378_s24 + $0x10] sm:$0xff] (!%p958_p9)   ;;  %vm1428_vm4 = vcmask (!%p958_p9), 60416   ;;  %vm1752_vm5 = vcmask (!%p958_p9), 126016  }
  0x55   : > { %4647 = vmatprep.mubr.msk.bf16.mxu0 (!%p958_p9), %vm5308_vm1, %v5307_v9  ;;  %4655 = vmatprep.mubr.msk.bf16.mxu1 (!%p958_p9), %vm5308_vm1, %v5307_v9  ;;  %v5057_v21 = vld [vmem:[%s5378_s24] sm:$0xff] (!%p958_p9)   ;;  %v5062_v50 = vld [vmem:[%s5378_s24 + $0x18] sm:$0xff] (!%p958_p9)   ;;  %vm2076_vm6 = vcmask (!%p958_p9), 191616   ;;  %s6164_s12 = sld [smem:[#allocation19_spill]] (!%p958_p9)  ;;  %vm2400_vm7 = vcmask (!%p958_p9), 257216   ;;  %vm2501_vm8 = vcmask (!%p958_p9), 130048  }
  0x56   : > { %v4277_v24 = vld [vmem:[%s5373_s19] ss:$0 sm:$0xff] (!%p958_p9)  ;;  %s6165_s9 = sld [smem:[#allocation11_spill]] (!%p958_p9)  ;;  %vm3952_vm9 = vcmask (!%p958_p9), 523264  }
  0x57   : > { %4646 = vmatpush3.bf16.msra.mxu0 (!%p958_p9), %v5055_v10  ;;  %4654 = vmatpush3.bf16.msra.mxu1 (!%p958_p9), %v5056_v11  ;;  %v4273_v35 = vld [vmem:[%s6156_s8] ss:$0 sm:$0xff] (!%p958_p9) }
  0x58   : > { %4659 = vmatprep.subr.bf16.mxu0 (!%p958_p9), %v5307_v9  ;;  %4667 = vmatprep.subr.bf16.mxu1 (!%p958_p9), %v5307_v9  ;;  %v4281_v37 = vld [vmem:[%s5383_s30] ss:$0 sm:$0xff] (!%p958_p9) }
  0x59   : > { %s5537_s26 = scalar_select %p1061_p10, %s5506_s0, 1  ;;  %v5610_v51 = vld [vmem:[%s6163_s13] sm:$0xff] }
  0x5a   : > { %s6174_s13 = sld [smem:[#allocation27_spill]] }
  0x5b   : > { %s4268_s15 = sshll.u32 %s5537_s26, 3 }
  0x5c   : > { %s1064_s16 = scalar_lea.vmem %s6161_s5, %s4268_s15  ;;  %s1072_s15 = scalar_lea.vmem %s6162_s17, %s5537_s26 }
  0x5d   : > { %v5541_v0 = vld [vmem:[%s1064_s16] sm:$0xff]  ;;  %s6115_s16 = sand.u32 1, %s5265_s1   ;;  %s4518_s5 = sshll.u32 %s5537_s26, 4 }
  0x5e   : > { %v1083_v1 = vsel %vm1082_vm0, %v5541_v0, 0.0  ;;  %v5612_v53 = vld [vmem:[%s1072_s15] ss:$0 sm:$0xff]  ;;  %s5624_s15 = sshll.u32 %s6115_s16, 3  ;;  %s6118_s16 = smov 8  }
  0x5f   : > { %1084 = vadd.xlane.f32.xlu0 %v1083_v1  ;;  %v4311_v1 = vld [vmem:[%s5383_s30 + $0x1] ss:$0 sm:$0xff]  ;;  %s5627_s10 = scalar_lea.vmem [#allocation5], %s5624_s15 }
  0x60   : > { %1113 = vst.msk [vmem:[%s5627_s10] sm:$0xff] %vm1112_vm2, %v5307_v9 }
  0xec   : > { %v1085_v2 = vpop.xlane.xlu0 %1084 }
  0xed   : > { %v1087_v3 = vmul.f32 0.03125, %v1085_v2 }
  0xef   : > { %v1088_v4 = vsub.f32 %v5541_v0, %v1087_v3 }
  0xf1   : > { %v1089_v5 = vmul.f32 %v1088_v4, %v1088_v4 }
  0xf3   : > { %v1090_v6 = vsel %vm1082_vm0, %v1089_v5, 0.0 }
  0xf4   : > { %1091 = vadd.xlane.f32.xlu0 %v1090_v6 }
 0x181   : > { %v1092_v12 = vpop.xlane.xlu0 %1091 }
 0x182   : > { %v1093_v13 = vmul.f32 0.03125, %v1092_v12 }
 0x184   : > { %v1094_v14 = vadd.f32 1e-05, %v1093_v13 }
 0x186   : > { %5111 = vrsqrt.f32 %v1094_v14 }
 0x190   : > { %v5112_v15 = vpop.eup %5111 }
 0x191   : > { %v1096_v17 = vmul.f32 %v5112_v15, %v1088_v4 }
 0x193   : > { %v1103_v19 = vmul.f32 %v4271_v16, %v1096_v17 }
 0x195   : > { %v1110_v20 = vadd.f32 %v4272_v18, %v1103_v19  ;;  %v5063_v18 = vld [vmem:[%s6155_s14 + $0x10] sm:$0xff]  }
 0x196   : > { %v1375_v19 = vld [vmem:[%s5627_s10] sm:$0xff] }
 0x197   : > { %v5564_v22 = vpack.c.bf16 %v1110_v20, %v1110_v20 }
 0x199   : > { %4648 = vmatmul.mubr.msk.bf16.vlgmr.msra.gmra.mrb[0].mxu0 %vm1082_vm0, %v5564_v22  ;;  %4656 = vmatmul.mubr.msk.bf16.vlgmr.msra.gmra.mrb[0].mxu1 %vm1082_vm0, %v5564_v22 }
 0x19a   : > { %4660 = vmatpush3.bf16.msra.mxu0 %v5057_v21  ;;  %4663 = vmatprep.mubr.msk.bf16.mxu0 %vm5308_vm1, %v5307_v9 }
 0x19b   : > { %4661 = vmatprep.subr.bf16.mxu0 %v5307_v9  ;;  %4669 = vmatprep.mubr.msk.bf16.mxu1 %vm5308_vm1, %v5307_v9 }
 0x19e   : > { %4662 = vmatpush3.bf16.msra.mxu0 %v5058_v23 }
 0x19f   : > { %4673 = vmatprep.subr.bf16.mxu0 %v5307_v9 }
 0x1a1   : > { %4664 = vmatmul.mubr.msk.bf16.vlgmr.msra.gmra.mrb[4].mxu0 %vm1082_vm0, %v5564_v22 }
 0x1a2   : > { %4675 = vmatprep.mubr.msk.bf16.mxu0 %vm5308_vm1, %v5307_v9 }
 0x26c   : > { %v1174_v25 = vpop.f32.mrb[0].mxu0  ;;  %v1238_v26 = vpop.f32.mrb[0].mxu1 }
 0x26d   : > { %v1239_v27 = vadd.f32 %v4277_v24, %v1238_v26  ;;  %v4649_v28 = vpop.f32.mrb[1].mxu0  ;;  %v4657_v29 = vpop.f32.mrb[1].mxu1  ;;  %v1175_v38 = vadd.f32 %v4273_v35, %v1174_v25  ;;  %v5064_v24 = vld [vmem:[%s6155_s14 + $0x18] sm:$0xff]  }
 0x26e   : > { %v1177_v30 = vpop.f32.mrb[2].mxu0  ;;  %v1241_v31 = vpop.f32.mrb[2].mxu1 }
 0x26f   : > { %v1244_v32 = vpack.c.bf16 %v1239_v27, %v1239_v27  ;;  %v4650_v33 = vpop.f32.mrb[3].mxu0  ;;  %v4658_v34 = vpop.f32.mrb[3].mxu1  ;;  %v1180_v44 = vpack.c.bf16 %v1175_v38, %v1175_v38  ;;  %v4302_v30 = vld [vmem:[%s5373_s19 + $0x1] ss:$0 sm:$0xff] }
 0x271   : > { %v1314_v36 = vsel %vm1112_vm2, %v1244_v32, 0 }
 0x272   : > { %4668 = vmatpush3.bf16.xpose.msra.mxu1 %v1314_v36 }
 0x273   : > { %4679 = vmatprep.subr.bf16.mxu1 %v5307_v9 }
 0x274   : > { %v1302_v39 = vpop.f32.mrb[4].mxu0 }
 0x275   : > { %v1303_v40 = vadd.f32 %v4281_v37, %v1302_v39  ;;  %v4665_v41 = vpop.f32.mrb[5].mxu0  ;;  %v4293_v37 = vld [vmem:[%s6156_s8 + $0x1] ss:$0 sm:$0xff] }
 0x276   : > { %v1305_v42 = vpop.f32.mrb[6].mxu0 }
 0x277   : > { %v1308_v45 = vpack.c.bf16 %v1303_v40, %v1303_v40  ;;  %v4666_v46 = vpop.f32.mrb[7].mxu0  ;;  %v5065_v40 = vld [vmem:[%s6158_s3 + $0x20] sm:$0xff]   ;;  %v5066_v42 = vld [vmem:[%s6158_s3 + $0x28] sm:$0xff]  }
 0x279   : > { %v1385_v47 = vsel %vm1383_vm3, %v1308_v45, 0  ;;  %4670 = vmatmul.mubr.msk.bf16.vlgmr.msra.gmra.mrb[4].mxu1 %vm1112_vm2, %v1180_v44  ;;  %v5068_v44 = vld [vmem:[%s5378_s24 + $0x28] sm:$0xff]  }
 0x27a   : > { %4674 = vmatpush3.bf16.msra.mxu0 %v1385_v47  ;;  %4680 = vmatpush3.bf16.msra.mxu1 %v5059_v43  ;;  %v5067_v43 = vld [vmem:[%s5378_s24 + $0x20] sm:$0xff]  }
 0x27b   : > { %4681 = vmatprep.subr.bf16.mxu1 %v5307_v9  ;;  %4683 = vmatprep.mubr.msk.bf16.mxu1 %vm5308_vm1, %v5307_v9 }
 0x27c   : > { %4687 = vmatprep.subr.bf16.mxu0 %v5307_v9 }
 0x27e   : > { %4682 = vmatpush3.bf16.msra.mxu1 %v5060_v48 }
 0x27f   : > { %4695 = vmatprep.subr.bf16.mxu1 %v5307_v9 }
 0x281   : > { %4684 = vmatmul.mubr.msk.bf16.vlgmr.msra.gmra.mrb[8].mxu1 %vm1082_vm0, %v5564_v22 }
 0x282   : > { %4696 = vmatpush3.bf16.msra.mxu1 %v5061_v49  ;;  %4699 = vmatprep.mubr.msk.bf16.mxu1 %vm5308_vm1, %v5307_v9 }
 0x283   : > { %4697 = vmatprep.subr.bf16.mxu1 %v5307_v9 }
 0x286   : > { %4698 = vmatpush3.bf16.msra.mxu1 %v5062_v50 }
 0x287   : > { %4709 = vmatprep.subr.bf16.mxu1 %v5307_v9 }
 0x289   : > { %4700 = vmatmul.mubr.msk.bf16.vlgmr.msra.gmra.mrb[12].mxu1 %vm1082_vm0, %v5564_v22 }
 0x28a   : > { %4711 = vmatprep.mubr.msk.bf16.mxu1 %vm5308_vm1, %v5307_v9 }
 0x34c   : > { %v1350_v52 = vpop.f32.mrb[4].mxu1 }
 0x34d   : > { %v1351_v54 = vadd.f32 %v1350_v52, %v5610_v51  ;;  %v4671_v55 = vpop.f32.mrb[5].mxu1 }
 0x34e   : > { %v1353_v56 = vpop.f32.mrb[6].mxu1 }
 0x34f   : > { %v4672_v57 = vpop.f32.mrb[7].mxu1  ;;  %v1363_v58 = vadd.f32 %v5612_v53, %v1351_v54 }
 0x351   : > { %v1364_v59 = vsel %vm1112_vm2, %v1363_v58, -inf }
 0x352   : > { %1365 = vmax.xlane.f32.xlu1 %v1364_v59 }
 0x354   : > { %v1489_v60 = vpop.f32.mrb[8].mxu1 }
 0x355   : > { %v4685_v61 = vpop.f32.mrb[9].mxu1  ;;  %v1490_v39 = vadd.f32 %v4293_v37, %v1489_v60  ;;  %v5074_v37 = vld [vmem:[%s5378_s24 + $0x38] sm:$0xff]  }
 0x356   : > { %v1492_v62 = vpop.f32.mrb[10].mxu1 }
 0x357   : > { %v4686_v63 = vpop.f32.mrb[11].mxu1  ;;  %v1495_v41 = vpack.c.bf16 %v1490_v39, %v1490_v39 }
 0x35c   : > { %v1621_v2 = vpop.f32.mrb[12].mxu1 }
 0x35d   : > { %v1622_v3 = vadd.f32 %v4311_v1, %v1621_v2  ;;  %v4701_v4 = vpop.f32.mrb[13].mxu1 }
 0x35e   : > { %v1624_v5 = vpop.f32.mrb[14].mxu1 }
 0x35f   : > { %v1627_v6 = vpack.c.bf16 %v1622_v3, %v1622_v3  ;;  %v4702_v7 = vpop.f32.mrb[15].mxu1 }
 0x361   : > { %v1703_v8 = vsel %vm1383_vm3, %v1627_v6, 0 }
 0x362   : > { %4710 = vmatpush3.bf16.msra.mxu1 %v1703_v8 }
 0x363   : > { %4723 = vmatprep.subr.bf16.mxu1 %v5307_v9 }
 0x3df   : > { %v1366_v10 = vpop.xlane.xlu1 %1365 }
 0x3e0   : > { %v1367_v11 = vsub.f32 %v1363_v58, %v1366_v10  ;;  %v4342_v58 = vld [vmem:[%s5383_s30 + $0x2] ss:$0 sm:$0xff] }
 0x3e2   : > { %v1368_v12 = vmul.f32 1.442695, %v1367_v11 }
 0x3e4   : > { %5113 = vpow2.f32 %v1368_v12  ;;  %v5069_v12 = vld [vmem:[%s6155_s14 + $0x20] sm:$0xff]  }
 0x3ee   : > { %v5114_v13 = vpop.eup %5113 }
 0x3ef   : > { %v1370_v14 = vsel %vm1112_vm2, %v5114_v13, 0.0 }
 0x3f0   : > { %1371 = vadd.xlane.f32.xlu1 %v1370_v14 }
 0x47d   : > { %v1372_v15 = vpop.xlane.xlu1 %1371 }
 0x47e   : > { %5115 = vrcp.f32 %v1372_v15 }
 0x488   : > { %v5116_v16 = vpop.eup %5115 }
 0x489   : > { %v1374_v17 = vmul.f32 %v5116_v16, %v5114_v13 }
 0x48b   : > { %v1376_v20 = vmul.f32 0.25, %v1374_v17  ;;  %v1379_v21 = vpack.c.bf16 %v1374_v17, %v1374_v17  ;;  %v5070_v17 = vld [vmem:[%s6155_s14 + $0x28] sm:$0xff]  }
 0x48d   : > { %4676 = vmatmul.mubr.msk.bf16.vlgmr.msra.gmra.mrb[8].mxu0 %vm1112_vm2, %v1379_v21  ;;  %v1377_v23 = vadd.f32 %v1376_v20, %v1375_v19 }
 0x48e   : > { %4688 = vmatpush3.bf16.msra.mxu0 %v5063_v18  ;;  %4691 = vmatprep.mubr.msk.bf16.mxu0 %vm5308_vm1, %v5307_v9 }
 0x48f   : > { %4689 = vmatprep.subr.bf16.mxu0 %v5307_v9  ;;  %1378 = vst.msk [vmem:[%s5627_s10] sm:$0xff] %vm1112_vm2, %v1377_v23  ;;  %v4333_v23 = vld [vmem:[%s5373_s19 + $0x2] ss:$0 sm:$0xff] }
 0x492   : > { %4690 = vmatpush3.bf16.msra.mxu0 %v5064_v24 }
 0x493   : > { %4703 = vmatprep.subr.bf16.mxu0 %v5307_v9 }
 0x495   : > { %4692 = vmatmul.mubr.msk.bf16.vlgmr.msra.gmra.mrb[12].mxu0 %vm1082_vm0, %v5564_v22 }
 0x496   : > { %4705 = vmatprep.mubr.msk.bf16.mxu0 %vm5308_vm1, %v5307_v9  ;;  %v1694_v15 = vld [vmem:[%s5627_s10] sm:$0xff] }
 0x560   : > { %v1421_v25 = vpop.f32.mrb[8].mxu0 }
 0x561   : > { %v1427_v26 = vpack.c.bf16 %v1421_v25, %v1421_v25  ;;  %v4677_v27 = vpop.f32.mrb[9].mxu0 }
 0x562   : > { %v1424_v28 = vpop.f32.mrb[10].mxu0 }
 0x563   : > { %1429 = vst.msk [vmem:[#allocation2] sm:$0xf] %vm1428_vm4, %v1427_v26  ;;  %v4678_v29 = vpop.f32.mrb[11].mxu0 }
 0x568   : > { %v1555_v31 = vpop.f32.mrb[12].mxu0 }
 0x569   : > { %v1556_v32 = vadd.f32 %v4302_v30, %v1555_v31  ;;  %v4693_v33 = vpop.f32.mrb[13].mxu0  ;;  %v4324_v30 = vld [vmem:[%s6156_s8 + $0x2] ss:$0 sm:$0xff] }
 0x56a   : > { %v1558_v34 = vpop.f32.mrb[14].mxu0  ;;  %v5071_v33 = vld [vmem:[%s6158_s3 + $0x30] sm:$0xff]  }
 0x56b   : > { %v1561_v35 = vpack.c.bf16 %v1556_v32, %v1556_v32  ;;  %v4694_v36 = vpop.f32.mrb[15].mxu0 }
 0x56c   : > { %v5073_v36 = vld [vmem:[%s5378_s24 + $0x30] sm:$0xff]  }
 0x56d   : > { %v1633_v38 = vsel %vm1112_vm2, %v1561_v35, 0  ;;  %v5072_v35 = vld [vmem:[%s6158_s3 + $0x38] sm:$0xff]   ;;  %s6117_s3 = smov 16  }
 0x56e   : > { %4704 = vmatpush3.bf16.xpose.msra.mxu0 %v1633_v38 }
 0x56f   : > { %4715 = vmatprep.subr.bf16.mxu0 %v5307_v9 }
 0x575   : > { %4706 = vmatmul.mubr.msk.bf16.vlgmr.msra.gmra.mrb[16].mxu0 %vm1112_vm2, %v1495_v41 }
 0x576   : > { %4716 = vmatpush3.bf16.msra.mxu0 %v5065_v40  ;;  %4719 = vmatprep.mubr.msk.bf16.mxu0 %vm5308_vm1, %v5307_v9 }
 0x577   : > { %4717 = vmatprep.subr.bf16.mxu0 %v5307_v9 }
 0x57a   : > { %4718 = vmatpush3.bf16.msra.mxu0 %v5066_v42 }
 0x57b   : > { %4731 = vmatprep.subr.bf16.mxu0 %v5307_v9 }
 0x57d   : > { %4720 = vmatmul.mubr.msk.bf16.vlgmr.msra.gmra.mrb[20].mxu0 %vm1082_vm0, %v5564_v22 }
 0x57e   : > { %4732 = vmatpush3.bf16.msra.mxu0 %v5067_v43  ;;  %4735 = vmatprep.mubr.msk.bf16.mxu0 %vm5308_vm1, %v5307_v9 }
 0x57f   : > { %4733 = vmatprep.subr.bf16.mxu0 %v5307_v9 }
 0x582   : > { %4734 = vmatpush3.bf16.msra.mxu0 %v5068_v44 }
 0x583   : > { %4745 = vmatprep.subr.bf16.mxu0 %v5307_v9 }
 0x585   : > { %4736 = vmatmul.mubr.msk.bf16.vlgmr.msra.gmra.mrb[24].mxu0 %vm1082_vm0, %v5564_v22 }
 0x586   : > { %4747 = vmatprep.mubr.msk.bf16.mxu0 %vm5308_vm1, %v5307_v9 }
 0x648   : > { %v1669_v45 = vpop.f32.mrb[16].mxu0 }
 0x649   : > { %v1670_v46 = vadd.f32 %v1669_v45, %v5610_v51  ;;  %v4707_v47 = vpop.f32.mrb[17].mxu0 }
 0x64a   : > { %v1672_v48 = vpop.f32.mrb[18].mxu0 }
 0x64b   : > { %v4708_v49 = vpop.f32.mrb[19].mxu0  ;;  %v1682_v50 = vadd.f32 %v5612_v53, %v1670_v46 }
 0x64c   : > { %v4373_v49 = vld [vmem:[%s5383_s30 + $0x3] ss:$0 sm:$0xff] }
 0x64d   : > { %v1683_v52 = vsel %vm1112_vm2, %v1682_v50, -inf }
 0x64e   : > { %1684 = vmax.xlane.f32.xlu0 %v1683_v52 }
 0x650   : > { %v1813_v54 = vpop.f32.mrb[20].mxu0 }
 0x651   : > { %v4721_v55 = vpop.f32.mrb[21].mxu0  ;;  %v1814_v32 = vadd.f32 %v4324_v30, %v1813_v54 }
 0x652   : > { %v1816_v56 = vpop.f32.mrb[22].mxu0 }
 0x653   : > { %v4722_v57 = vpop.f32.mrb[23].mxu0  ;;  %v1819_v34 = vpack.c.bf16 %v1814_v32, %v1814_v32 }
 0x658   : > { %v1945_v59 = vpop.f32.mrb[24].mxu0 }
 0x659   : > { %v1946_v60 = vadd.f32 %v4342_v58, %v1945_v59  ;;  %v4737_v61 = vpop.f32.mrb[25].mxu0 }
 0x65a   : > { %v1948_v62 = vpop.f32.mrb[26].mxu0 }
 0x65b   : > { %v1951_v63 = vpack.c.bf16 %v1946_v60, %v1946_v60  ;;  %v4738_v1 = vpop.f32.mrb[27].mxu0 }
 0x65d   : > { %v2027_v2 = vsel %vm1383_vm3, %v1951_v63, 0 }
 0x65e   : > { %4746 = vmatpush3.bf16.msra.mxu0 %v2027_v2 }
 0x65f   : > { %4759 = vmatprep.subr.bf16.mxu0 %v5307_v9 }
 0x6db   : > { %v1685_v3 = vpop.xlane.xlu0 %1684 }
 0x6dc   : > { %v1686_v4 = vsub.f32 %v1682_v50, %v1685_v3 }
 0x6de   : > { %v1687_v5 = vmul.f32 1.442695, %v1686_v4  ;;  %v5075_v4 = vld [vmem:[%s6155_s14 + $0x30] sm:$0xff]  }
 0x6e0   : > { %5117 = vpow2.f32 %v1687_v5 }
 0x6ea   : > { %v5118_v6 = vpop.eup %5117 }
 0x6eb   : > { %v1689_v7 = vsel %vm1112_vm2, %v5118_v6, 0.0 }
 0x6ec   : > { %1690 = vadd.xlane.f32.xlu1 %v1689_v7 }
 0x779   : > { %v1691_v8 = vpop.xlane.xlu1 %1690 }
 0x77a   : > { %5119 = vrcp.f32 %v1691_v8 }
 0x784   : > { %v5120_v10 = vpop.eup %5119 }
 0x785   : > { %v1693_v11 = vmul.f32 %v5120_v10, %v5118_v6  ;;  %v5076_v10 = vld [vmem:[%s6155_s14 + $0x38] sm:$0xff]   ;;  %s5312_s14 = smov [#allocation5]  }
 0x787   : > { %v1695_v13 = vmul.f32 0.25, %v1693_v11  ;;  %v1698_v14 = vpack.c.bf16 %v1693_v11, %v1693_v11 }
 0x789   : > { %4712 = vmatmul.mubr.msk.bf16.vlgmr.msra.gmra.mrb[16].mxu1 %vm1112_vm2, %v1698_v14  ;;  %v1696_v16 = vadd.f32 %v1695_v13, %v1694_v15  ;;  %v4364_v15 = vld [vmem:[%s5373_s19 + $0x3] ss:$0 sm:$0xff] }
 0x78a   : > { %4724 = vmatpush3.bf16.msra.mxu1 %v5069_v12  ;;  %4727 = vmatprep.mubr.msk.bf16.mxu1 %vm5308_vm1, %v5307_v9 }
 0x78b   : > { %4725 = vmatprep.subr.bf16.mxu1 %v5307_v9  ;;  %1697 = vst.msk [vmem:[%s5627_s10] sm:$0xff] %vm1112_vm2, %v1696_v16 }
 0x78e   : > { %4726 = vmatpush3.bf16.msra.mxu1 %v5070_v17 }
 0x78f   : > { %4739 = vmatprep.subr.bf16.mxu1 %v5307_v9 }
 0x791   : > { %4728 = vmatmul.mubr.msk.bf16.vlgmr.msra.gmra.mrb[20].mxu1 %vm1082_vm0, %v5564_v22 }
 0x792   : > { %4741 = vmatprep.mubr.msk.bf16.mxu1 %vm5308_vm1, %v5307_v9  ;;  %v2018_v7 = vld [vmem:[%s5627_s10] sm:$0xff] }
 0x85c   : > { %v5691_v18 = vpop.f32.mrb[16].mxu1 }
 0x85d   : > { %v4713_v19 = vpop.f32.mrb[17].mxu1 }
 0x85e   : > { %v1742_v20 = vpop.f32.mrb[18].mxu1 }
 0x85f   : > { %v4714_v21 = vpop.f32.mrb[19].mxu1 }
 0x864   : > { %v1879_v24 = vpop.f32.mrb[20].mxu1 }
 0x865   : > { %v1880_v25 = vadd.f32 %v4333_v23, %v1879_v24  ;;  %v4729_v26 = vpop.f32.mrb[21].mxu1  ;;  %v4355_v24 = vld [vmem:[%s6156_s8 + $0x3] ss:$0 sm:$0xff]  ;;  %s6168_s8 = sld [smem:[#allocation20_spill]] }
 0x866   : > { %v1882_v27 = vpop.f32.mrb[22].mxu1 }
 0x867   : > { %v1885_v28 = vpack.c.bf16 %v1880_v25, %v1880_v25  ;;  %v4730_v29 = vpop.f32.mrb[23].mxu1 }
 0x869   : > { %v1957_v31 = vsel %vm1112_vm2, %v1885_v28, 0 }
 0x86a   : > { %4740 = vmatpush3.bf16.xpose.msra.mxu1 %v1957_v31 }
 0x86b   : > { %4751 = vmatprep.subr.bf16.mxu1 %v5307_v9 }
 0x871   : > { %4742 = vmatmul.mubr.msk.bf16.vlgmr.msra.gmra.mrb[24].mxu1 %vm1112_vm2, %v1819_v34  ;;  %v4519_v34 = vpack.c.bf16 %v5691_v18, %v5691_v18 }
 0x872   : > { %4752 = vmatpush3.bf16.msra.mxu1 %v5071_v33  ;;  %4755 = vmatprep.mubr.msk.bf16.mxu1 %vm5308_vm1, %v5307_v9 }
 0x873   : > { %4753 = vmatprep.subr.bf16.mxu1 %v5307_v9 }
 0x876   : > { %4754 = vmatpush3.bf16.msra.mxu1 %v5072_v35 }
 0x877   : > { %4767 = vmatprep.subr.bf16.mxu1 %v5307_v9 }
 0x879   : > { %4756 = vmatmul.mubr.msk.bf16.vlgmr.msra.gmra.mrb[28].mxu1 %vm1082_vm0, %v5564_v22 }
 0x87a   : > { %4768 = vmatpush3.bf16.msra.mxu1 %v5073_v36  ;;  %4771 = vmatprep.mubr.msk.bf16.mxu1 %vm5308_vm1, %v5307_v9 }
 0x87b   : > { %4769 = vmatprep.subr.bf16.mxu1 %v5307_v9 }
 0x87e   : > { %4770 = vmatpush3.bf16.msra.mxu1 %v5074_v37 }
 0x87f   : > { %4781 = vmatprep.subr.bf16.mxu1 %v5307_v9 }
 0x881   : > { %4772 = vmatmul.mubr.msk.bf16.vlgmr.msra.gmra.mrb[32].mxu1 %vm1082_vm0, %v5564_v22 }
 0x882   : > { %4783 = vmatprep.mubr.msk.bf16.mxu1 %vm5308_vm1, %v5307_v9 }
 0x944   : > { %v1993_v38 = vpop.f32.mrb[24].mxu1 }
 0x945   : > { %v1994_v39 = vadd.f32 %v1993_v38, %v5610_v51  ;;  %v4743_v40 = vpop.f32.mrb[25].mxu1 }
 0x946   : > { %v1996_v41 = vpop.f32.mrb[26].mxu1 }
 0x947   : > { %v4744_v42 = vpop.f32.mrb[27].mxu1  ;;  %v2006_v43 = vadd.f32 %v5612_v53, %v1994_v39 }
 0x949   : > { %v2007_v44 = vsel %vm1112_vm2, %v2006_v43, -inf }
 0x94a   : > { %2008 = vmax.xlane.f32.xlu0 %v2007_v44 }
 0x94c   : > { %v2137_v45 = vpop.f32.mrb[28].mxu1 }
 0x94d   : > { %v4757_v46 = vpop.f32.mrb[29].mxu1  ;;  %v2138_v26 = vadd.f32 %v4355_v24, %v2137_v45 }
 0x94e   : > { %v2140_v47 = vpop.f32.mrb[30].mxu1 }
 0x94f   : > { %v4758_v48 = vpop.f32.mrb[31].mxu1  ;;  %v5077_v47 = vld [vmem:[%s6157_s6] sm:$0xff]  }
 0x950   : > { %v5078_v48 = vld [vmem:[%s6157_s6 + $0x8] sm:$0xff]   ;;  %s1069_s6 = scalar_lea.vmem %s6165_s9, %s4518_s5  ;;  %s6170_s5 = sld [smem:[#allocation25_spill]] }
 0x954   : > { %v2269_v50 = vpop.f32.mrb[32].mxu1 }
 0x955   : > { %v2270_v52 = vadd.f32 %v4373_v49, %v2269_v50  ;;  %v4773_v54 = vpop.f32.mrb[33].mxu1 }
 0x956   : > { %v2272_v55 = vpop.f32.mrb[34].mxu1 }
 0x957   : > { %v2275_v56 = vpack.c.bf16 %v2270_v52, %v2270_v52  ;;  %v4774_v57 = vpop.f32.mrb[35].mxu1 }
 0x959   : > { %v2351_v58 = vsel %vm1383_vm3, %v2275_v56, 0 }
 0x95a   : > { %4782 = vmatpush3.bf16.msra.mxu1 %v2351_v58  ;;  %v4381_v58 = vld [vmem:[%s6164_s12] ss:$0 sm:$0xff]  ;;  %s6169_s12 = sld [smem:[#allocation21_spill]] }
 0x95b   : > { %4795 = vmatprep.subr.bf16.mxu1 %v5307_v9 }
 0x9d7   : > { %v2009_v59 = vpop.xlane.xlu0 %2008 }
 0x9d8   : > { %v2010_v60 = vsub.f32 %v2006_v43, %v2009_v59 }
 0x9da   : > { %v2011_v61 = vmul.f32 1.442695, %v2010_v60 }
 0x9dc   : > { %5121 = vpow2.f32 %v2011_v61 }
 0x9e6   : > { %v5122_v62 = vpop.eup %5121 }
 0x9e7   : > { %v2013_v63 = vsel %vm1112_vm2, %v5122_v62, 0.0 }
 0x9e8   : > { %2014 = vadd.xlane.f32.xlu1 %v2013_v63 }
 0xa75   : > { %v2015_v1 = vpop.xlane.xlu1 %2014 }
 0xa76   : > { %5123 = vrcp.f32 %v2015_v1 }
 0xa80   : > { %v5124_v2 = vpop.eup %5123 }
 0xa81   : > { %v2017_v3 = vmul.f32 %v5124_v2, %v5122_v62 }
 0xa83   : > { %v2019_v5 = vmul.f32 0.25, %v2017_v3  ;;  %v2022_v6 = vpack.c.bf16 %v2017_v3, %v2017_v3 }
 0xa85   : > { %4748 = vmatmul.mubr.msk.bf16.vlgmr.msra.gmra.mrb[28].mxu0 %vm1112_vm2, %v2022_v6  ;;  %v2020_v8 = vadd.f32 %v2019_v5, %v2018_v7 }
 0xa86   : > { %4760 = vmatpush3.bf16.msra.mxu0 %v5075_v4  ;;  %4763 = vmatprep.mubr.msk.bf16.mxu0 %vm5308_vm1, %v5307_v9 }
 0xa87   : > { %4761 = vmatprep.subr.bf16.mxu0 %v5307_v9  ;;  %2021 = vst.msk [vmem:[%s5627_s10] sm:$0xff] %vm1112_vm2, %v2020_v8 }
 0xa8a   : > { %4762 = vmatpush3.bf16.msra.mxu0 %v5076_v10  ;;  %v1078_v10 = vld [vmem:[%s1069_s6] sm:$0xff] }
 0xa8b   : > { %4775 = vmatprep.subr.bf16.mxu0 %v5307_v9 }
 0xa8d   : > { %4764 = vmatmul.mubr.msk.bf16.vlgmr.msra.gmra.mrb[32].mxu0 %vm1082_vm0, %v5564_v22  ;;  %v2143_v22 = vpack.c.bf16 %v2138_v26, %v2138_v26 }
 0xa8e   : > { %4777 = vmatprep.mubr.msk.bf16.mxu0 %vm5308_vm1, %v5307_v9  ;;  %v2342_v45 = vld [vmem:[%s5627_s10] sm:$0xff] }
 0xb58   : > { %v2063_v11 = vpop.f32.mrb[28].mxu0 }
 0xb59   : > { %v4749_v12 = vpop.f32.mrb[29].mxu0  ;;  %v4520_v39 = vpack.c.bf16 %v2063_v11, %v2063_v11  ;;  %v1079_v11 = vld [vmem:[%s1069_s6 + $0x8] sm:$0xff]  ;;  %s6171_s6 = sld [smem:[#allocation23_spill]] }
 0xb5a   : > { %v2066_v13 = vpop.f32.mrb[30].mxu0  ;;  %v5778_v12 = vpack.c.bf16 %v1079_v11, %v1078_v10 }
 0xb5b   : > { %v4750_v14 = vpop.f32.mrb[31].mxu0 }
 0xb60   : > { %v2203_v16 = vpop.f32.mrb[32].mxu0 }
 0xb61   : > { %v2204_v17 = vadd.f32 %v4364_v15, %v2203_v16  ;;  %v4765_v19 = vpop.f32.mrb[33].mxu0 }
 0xb62   : > { %v2206_v20 = vpop.f32.mrb[34].mxu0 }
 0xb63   : > { %v2209_v21 = vpack.c.bf16 %v2204_v17, %v2204_v17  ;;  %v4766_v23 = vpop.f32.mrb[35].mxu0  ;;  %v4385_v20 = vld [vmem:[%s6168_s8] ss:$0 sm:$0xff]  ;;  %s6172_s8 = sld [smem:[#allocation26_spill]] }
 0xb64   : > { %v4386_v23 = vld [vmem:[%s6169_s12] ss:$0 sm:$0xff]  ;;  %s6173_s12 = sld [smem:[#allocation14_spill]] }
 0xb65   : > { %v2281_v25 = vsel %vm1112_vm2, %v2209_v21, 0 }
 0xb66   : > { %4776 = vmatpush3.bf16.xpose.msra.mxu0 %v2281_v25 }
 0xb67   : > { %4787 = vmatprep.subr.bf16.mxu0 %v5307_v9 }
 0xb6a   : > { %s1075_s9 = scalar_lea.vmem %s6173_s12, %s5537_s26  ;;  %s6175_s26 = smov 8  }
 0xb6b   : > { %s6176_s12 = smov 16  }
 0xb6d   : > { %4778 = vmatmul.mubr.msk.bf16.vlgmr.msra.gmra.mrb[36].mxu0 %vm1112_vm2, %v2143_v22  ;;  %v4391_v22 = vld [vmem:[%s6170_s5] ss:$0 sm:$0xff] }
 0xb6e   : > { %4791 = vmatprep.mubr.msk.bf16.mxu0 %vm5308_vm1, %v5307_v9  ;;  %4788 = vmatpush3.bf16.msra.mxu0 %v5077_v47 }
 0xb6f   : > { %4789 = vmatprep.subr.bf16.mxu0 %v5307_v9 }
 0xb72   : > { %4790 = vmatpush3.bf16.msra.mxu0 %v5078_v48 }
 0xb73   : > { %4803 = vmatprep.subr.bf16.mxu0 %v5307_v9 }
 0xc40   : > { %v2317_v27 = vpop.f32.mrb[36].mxu0 }
 0xc41   : > { %v2318_v28 = vadd.f32 %v2317_v27, %v5610_v51  ;;  %v4779_v29 = vpop.f32.mrb[37].mxu0 }
 0xc42   : > { %v2320_v30 = vpop.f32.mrb[38].mxu0 }
 0xc43   : > { %v4780_v31 = vpop.f32.mrb[39].mxu0  ;;  %v2330_v32 = vadd.f32 %v5612_v53, %v2318_v28 }
 0xc45   : > { %v2331_v33 = vsel %vm1112_vm2, %v2330_v32, -inf }
 0xc46   : > { %2332 = vmax.xlane.f32.xlu0 %v2331_v33 }
 0xc5c   : > { %1749 = vrot.lane.b32.xlu0 %v4519_v34, %s6118_s16  ;;  %s6166_s16 = sld [smem:[#allocation24_spill]] }
 0xc62   : > { %v5079_v8 = vld [vmem:[%s6166_s16] sm:$0xff]   ;;  %v5087_v10 = vld [vmem:[%s6166_s16 + $0x10] sm:$0xff]  }
 0xcd3   : > { %v2333_v35 = vpop.xlane.xlu0 %2332 }
 0xcd4   : > { %v2334_v36 = vsub.f32 %v2330_v32, %v2333_v35  ;;  %v4387_v35 = vld [vmem:[%s6171_s6] ss:$0 sm:$0xff] }
 0xcd6   : > { %v2335_v37 = vmul.f32 1.442695, %v2334_v36 }
 0xcd7   : > { %v1750_v38 = vpop.permute.xlu0 %1749 }
 0xcd8   : > { %5125 = vpow2.f32 %v2335_v37  ;;  %1753 = vst.msk [vmem:[#allocation2] sm:$0xf] %vm1752_vm5, %v1750_v38 }
 0xce2   : > { %v5126_v51 = vpop.eup %5125 }
 0xce3   : > { %v2337_v53 = vsel %vm1112_vm2, %v5126_v51, 0.0 }
 0xce4   : > { %2338 = vadd.xlane.f32.xlu1 %v2337_v53 }
 0xcf5   : > { %2073 = vrot.lane.b32.xlu1 %v4520_v39, %s6117_s3  ;;  %s6119_s3 = smov 24  }
 0xd71   : > { %v2339_v18 = vpop.xlane.xlu1 %2338 }
 0xd72   : > { %5127 = vrcp.f32 %v2339_v18 }
 0xd75   : > { %v2074_v40 = vpop.permute.xlu1 %2073 }
 0xd76   : > { %2077 = vst.msk [vmem:[#allocation2] sm:$0xf] %vm2076_vm6, %v2074_v40 }
 0xd7c   : > { %v5128_v41 = vpop.eup %5127 }
 0xd7d   : > { %v2341_v42 = vmul.f32 %v5128_v41, %v5126_v51  ;;  %v5085_v41 = vld [vmem:[%s6172_s8] sm:$0xff]  }
 0xd7f   : > { %v2346_v43 = vpack.c.bf16 %v2341_v42, %v2341_v42  ;;  %v2343_v44 = vmul.f32 0.25, %v2341_v42  ;;  %v5086_v42 = vld [vmem:[%s6172_s8 + $0x8] sm:$0xff]  }
 0xd81   : > { %4784 = vmatmul.mubr.msk.bf16.vlgmr.msra.gmra.mrb[36].mxu1 %vm1112_vm2, %v2346_v43  ;;  %v2344_v46 = vadd.f32 %v2343_v44, %v2342_v45  ;;  %v5826_v43 = vld [vmem:[%s1075_s9] ss:$0 sm:$0xff]  ;;  %s5833_s9 = scalar_lea.vmem [#allocation7], %s5624_s15 }
 0xd82   : > { %4799 = vmatprep.mubr.msk.bf16.mxu1 %vm5308_vm1, %v5307_v9  ;;  %2502 = vst.msk [vmem:[%s5833_s9] sm:$0xff] %vm2501_vm8, %v5307_v9 }
 0xd83   : > { %2345 = vst.msk [vmem:[%s5627_s10] sm:$0xff] %vm1112_vm2, %v2344_v46 }
 0xd89   : > { %v2767_v11 = vld [vmem:[%s5833_s9] sm:$0xff] }
 0xe54   : > { %v2387_v49 = vpop.f32.mrb[36].mxu1 }
 0xe55   : > { %v4521_v50 = vpack.c.bf16 %v2387_v49, %v2387_v49  ;;  %v4785_v52 = vpop.f32.mrb[37].mxu1 }
 0xe56   : > { %v2390_v54 = vpop.f32.mrb[38].mxu1 }
 0xe57   : > { %2397 = vrot.lane.b32.xlu1 %v4521_v50, %s6119_s3  ;;  %v4786_v55 = vpop.f32.mrb[39].mxu1  ;;  %s6167_s3 = sld [smem:[#allocation22_spill]] }
 0xe5d   : > { %v5081_v13 = vld [vmem:[%s6167_s3] sm:$0xff]   ;;  %v5082_v14 = vld [vmem:[%s6167_s3 + $0x8] sm:$0xff]   ;;  %v5083_v53 = vld [vmem:[%s6167_s3 + $0x10] sm:$0xff]  }
 0xe5e   : > { %4796 = vmatpush3.bf16.msra.mxu1 %v5081_v13  ;;  %v5084_v40 = vld [vmem:[%s6167_s3 + $0x18] sm:$0xff]  }
 0xe5f   : > { %4797 = vmatprep.subr.bf16.mxu1 %v5307_v9 }
 0xe62   : > { %4798 = vmatpush3.bf16.msra.mxu1 %v5082_v14 }
 0xe63   : > { %4811 = vmatprep.subr.bf16.mxu1 %v5307_v9 }
 0xec9   : > { %v2398_v56 = vpop.permute.xlu1 %2397 }
 0xeca   : > { %2401 = vst.msk [vmem:[#allocation2] sm:$0xf] %vm2400_vm7, %v2398_v56 }
 0xed1   : > { %v2402_v57 = vld [vmem:[#allocation2] sm:$0xf] }
 0xed2   : > { %4792 = vmatmul.mubr.msk.bf16.vlgmr.msra.gmra.mrb[40].mxu0 %vm1082_vm0, %v2402_v57 }
 0xed3   : > { %4807 = vmatprep.mubr.msk.bf16.mxu0 %vm5308_vm1, %v5307_v9  ;;  %4804 = vmatpush3.bf16.msra.mxu0 %v5079_v8 }
 0xed4   : > { %4805 = vmatprep.subr.bf16.mxu0 %v5307_v9 }
 0xfa5   : > { %v2463_v59 = vpop.f32.mrb[40].mxu0 }
 0xfa6   : > { %v2464_v60 = vadd.f32 %v4381_v58, %v2463_v59  ;;  %v4793_v61 = vpop.f32.mrb[41].mxu0 }
 0xfa7   : > { %v2466_v62 = vpop.f32.mrb[42].mxu0 }
 0xfa8   : > { %v4794_v63 = vpop.f32.mrb[43].mxu0  ;;  %v2469_v1 = vadd.f32 %v2464_v60, %v5541_v0  ;;  %v5080_v0 = vld [vmem:[%s6166_s16 + $0x8] sm:$0xff]  }
 0xfa9   : > { %4806 = vmatpush3.bf16.msra.mxu0 %v5080_v0  ;;  %v4395_v63 = vld [vmem:[%s6174_s13] ss:$0 sm:$0xff] }
 0xfaa   : > { %v2472_v2 = vsel %vm1082_vm0, %v2469_v1, 0.0  ;;  %4819 = vmatprep.subr.bf16.mxu0 %v5307_v9 }
 0xfab   : > { %2473 = vadd.xlane.f32.xlu1 %v2472_v2 }
 0xfac   : > { %4808 = vmatmul.mubr.msk.bf16.vlgmr.msra.gmra.mrb[44].mxu0 %vm1082_vm0, %v5778_v12 }
 0xfad   : > { %4821 = vmatprep.mubr.msk.bf16.mxu0 %vm5308_vm1, %v5307_v9 }
0x1038   : > { %v2474_v3 = vpop.xlane.xlu1 %2473 }
0x1039   : > { %v2475_v4 = vmul.f32 0.03125, %v2474_v3 }
0x103b   : > { %v2476_v5 = vsub.f32 %v2469_v1, %v2475_v4 }
0x103d   : > { %v2477_v6 = vmul.f32 %v2476_v5, %v2476_v5 }
0x103f   : > { %v2478_v7 = vsel %vm1082_vm0, %v2477_v6, 0.0 }
0x1040   : > { %2479 = vadd.xlane.f32.xlu0 %v2478_v7 }
0x107f   : > { %v2630_v27 = vpop.f32.mrb[44].mxu0 }
0x1080   : > { %v2631_v28 = vadd.f32 %v4391_v22, %v2630_v27  ;;  %v4809_v29 = vpop.f32.mrb[45].mxu0 }
0x1081   : > { %v2633_v30 = vpop.f32.mrb[46].mxu0 }
0x1082   : > { %v2634_v31 = vadd.f32 %v4391_v22, %v2633_v30  ;;  %v4810_v32 = vpop.f32.mrb[47].mxu0 }
0x1083   : > { %v4407_v32 = vld [vmem:[%s6171_s6 + $0x1] ss:$0 sm:$0xff] }
0x1084   : > { %v2637_v33 = vpack.c.bf16 %v2634_v31, %v2631_v28 }
0x1086   : > { %v2714_v34 = vsel %vm1112_vm2, %v2637_v33, 0 }
0x1087   : > { %4820 = vmatpush3.bf16.xpose.msra.mxu0 %v2714_v34 }
0x1088   : > { %4831 = vmatprep.subr.bf16.mxu0 %v5307_v9 }
0x10cd   : > { %v2480_v15 = vpop.xlane.xlu0 %2479 }
0x10ce   : > { %v2481_v16 = vmul.f32 0.03125, %v2480_v15  ;;  %v5088_v15 = vld [vmem:[%s6166_s16 + $0x18] sm:$0xff]  }
0x10d0   : > { %v2482_v17 = vadd.f32 1e-05, %v2481_v16 }
0x10d2   : > { %5129 = vrsqrt.f32 %v2482_v17 }
0x10dc   : > { %v5130_v19 = vpop.eup %5129 }
0x10dd   : > { %v2484_v21 = vmul.f32 %v5130_v19, %v2476_v5 }
0x10df   : > { %v2491_v24 = vmul.f32 %v4385_v20, %v2484_v21 }
0x10e1   : > { %v5791_v25 = vadd.f32 %v4386_v23, %v2491_v24  ;;  %v4416_v23 = vld [vmem:[%s6170_s5 + $0x1] ss:$0 sm:$0xff] }
0x10e3   : > { %v5795_v26 = vpack.c.bf16 %v5791_v25, %v5791_v25 }
0x10e5   : > { %4800 = vmatmul.mubr.msk.bf16.vlgmr.msra.gmra.mrb[40].mxu1 %vm1082_vm0, %v5795_v26 }
0x10e6   : > { %4815 = vmatprep.mubr.msk.bf16.mxu1 %vm5308_vm1, %v5307_v9  ;;  %4812 = vmatpush3.bf16.msra.mxu1 %v5085_v41 }
0x10e7   : > { %4813 = vmatprep.subr.bf16.mxu1 %v5307_v9 }
0x10ea   : > { %4814 = vmatpush3.bf16.msra.mxu1 %v5086_v42 }
0x10eb   : > { %4825 = vmatprep.subr.bf16.mxu1 %v5307_v9 }
0x10ed   : > { %4816 = vmatmul.mubr.msk.bf16.vlgmr.msra.gmra.mrb[44].mxu1 %vm1082_vm0, %v5778_v12 }
0x10ee   : > { %4827 = vmatprep.mubr.msk.bf16.mxu1 %vm5308_vm1, %v5307_v9 }
0x11b8   : > { %v2563_v36 = vpop.f32.mrb[40].mxu1 }
0x11b9   : > { %v2564_v37 = vadd.f32 %v4387_v35, %v2563_v36  ;;  %v4801_v38 = vpop.f32.mrb[41].mxu1  ;;  %v5089_v35 = vld [vmem:[%s6167_s3 + $0x20] sm:$0xff]  }
0x11ba   : > { %v2566_v51 = vpop.f32.mrb[42].mxu1  ;;  %v5091_v38 = vld [vmem:[%s6172_s8 + $0x10] sm:$0xff]  }
0x11bb   : > { %v2569_v39 = vpack.c.bf16 %v2564_v37, %v2564_v37  ;;  %v4802_v18 = vpop.f32.mrb[43].mxu1  ;;  %v5090_v37 = vld [vmem:[%s6167_s3 + $0x28] sm:$0xff]   ;;  %v5092_v51 = vld [vmem:[%s6172_s8 + $0x18] sm:$0xff]  }
0x11bd   : > { %4822 = vmatmul.mubr.msk.bf16.vlgmr.msra.gmra.mrb[48].mxu0 %vm1112_vm2, %v2569_v39 }
0x11be   : > { %4832 = vmatpush3.bf16.msra.mxu0 %v5083_v53  ;;  %4835 = vmatprep.mubr.msk.bf16.mxu0 %vm5308_vm1, %v5307_v9 }
0x11bf   : > { %4833 = vmatprep.subr.bf16.mxu0 %v5307_v9 }
0x11c0   : > { %v2695_v56 = vpop.f32.mrb[44].mxu1 }
0x11c1   : > { %v4817_v57 = vpop.f32.mrb[45].mxu1  ;;  %v2696_v1 = vadd.f32 %v4395_v63, %v2695_v56 }
0x11c2   : > { %4834 = vmatpush3.bf16.msra.mxu0 %v5084_v40  ;;  %v2698_v2 = vpop.f32.mrb[46].mxu1  ;;  %v4425_v57 = vld [vmem:[%s6174_s13 + $0x1] ss:$0 sm:$0xff] }
0x11c3   : > { %4847 = vmatprep.subr.bf16.mxu0 %v5307_v9  ;;  %v4818_v3 = vpop.f32.mrb[47].mxu1  ;;  %v2699_v4 = vadd.f32 %v4395_v63, %v2698_v2 }
0x11c4   : > { %v5093_v3 = vld [vmem:[%s6166_s16 + $0x20] sm:$0xff]  }
0x11c5   : > { %4836 = vmatmul.mubr.msk.bf16.vlgmr.msra.gmra.mrb[52].mxu0 %vm1082_vm0, %v5795_v26  ;;  %v2702_v5 = vpack.c.bf16 %v2699_v4, %v2696_v1 }
0x11c6   : > { %4851 = vmatprep.mubr.msk.bf16.mxu0 %vm5308_vm1, %v5307_v9  ;;  %4848 = vmatpush3.bf16.msra.mxu0 %v5091_v38 }
0x11c7   : > { %4826 = vmatpush3.bf16.msra.mxu1 %v2702_v5  ;;  %4849 = vmatprep.subr.bf16.mxu0 %v5307_v9 }
0x11c8   : > { %4839 = vmatprep.subr.bf16.mxu1 %v5307_v9 }
0x11ca   : > { %4850 = vmatpush3.bf16.msra.mxu0 %v5092_v51 }
0x11cb   : > { %4861 = vmatprep.subr.bf16.mxu0 %v5307_v9 }
0x11cd   : > { %4852 = vmatmul.mubr.msk.bf16.vlgmr.msra.gmra.mrb[56].mxu0 %vm1082_vm0, %v5778_v12 }
0x11ce   : > { %4863 = vmatprep.mubr.msk.bf16.mxu0 %vm5308_vm1, %v5307_v9 }
0x1290   : > { %v2750_v44 = vpop.f32.mrb[48].mxu0 }
0x1291   : > { %v2751_v45 = vadd.f32 %v5826_v43, %v2750_v44  ;;  %v4823_v46 = vpop.f32.mrb[49].mxu0 }
0x1292   : > { %v2753_v47 = vpop.f32.mrb[50].mxu0 }
0x1293   : > { %v4824_v48 = vpop.f32.mrb[51].mxu0  ;;  %v2756_v49 = vsel %vm2501_vm8, %v2751_v45, -inf }
0x1294   : > { %2757 = vmax.xlane.f32.xlu0 %v2756_v49 }
0x1298   : > { %v2876_v50 = vpop.f32.mrb[52].mxu0 }
0x1299   : > { %v4837_v52 = vpop.f32.mrb[53].mxu0  ;;  %v2877_v34 = vadd.f32 %v4407_v32, %v2876_v50  ;;  %v5098_v32 = vld [vmem:[%s6172_s8 + $0x28] sm:$0xff]  }
0x129a   : > { %v2879_v54 = vpop.f32.mrb[54].mxu0 }
0x129b   : > { %v4838_v55 = vpop.f32.mrb[55].mxu0  ;;  %v2882_v36 = vpack.c.bf16 %v2877_v34, %v2877_v34 }
0x12a0   : > { %v3009_v48 = vpop.f32.mrb[56].mxu0 }
0x12a1   : > { %v4853_v49 = vpop.f32.mrb[57].mxu0 }
0x1321   : > { %v2758_v58 = vpop.xlane.xlu0 %2757 }
0x1322   : > { %v2759_v59 = vsub.f32 %v2751_v45, %v2758_v58  ;;  %v3010_v58 = vadd.f32 %v4425_v57, %v3009_v48 }
0x1324   : > { %v2760_v60 = vmul.f32 1.442695, %v2759_v59  ;;  %v3012_v59 = vpop.f32.mrb[58].mxu0 }
0x1326   : > { %5131 = vpow2.f32 %v2760_v60  ;;  %v4854_v60 = vpop.f32.mrb[59].mxu0 }
0x1330   : > { %v5132_v61 = vpop.eup %5131 }
0x1331   : > { %v2762_v62 = vsel %vm2501_vm8, %v5132_v61, 0.0 }
0x1332   : > { %2763 = vadd.xlane.f32.xlu0 %v2762_v62 }
0x13bf   : > { %v2764_v6 = vpop.xlane.xlu0 %2763 }
0x13c0   : > { %5133 = vrcp.f32 %v2764_v6 }
0x13ca   : > { %v5134_v7 = vpop.eup %5133 }
0x13cb   : > { %v2766_v8 = vmul.f32 %v5134_v7, %v5132_v61  ;;  %v3013_v61 = vadd.f32 %v4425_v57, %v3012_v59 }
0x13cd   : > { %v2768_v0 = vmul.f32 0.25, %v2766_v8  ;;  %v2771_v13 = vpack.c.bf16 %v2766_v8, %v2766_v8  ;;  %v3016_v62 = vpack.c.bf16 %v3013_v61, %v3010_v58  ;;  %v5094_v8 = vld [vmem:[%s6166_s16 + $0x28] sm:$0xff]   ;;  %v5099_v58 = vld [vmem:[%s6166_s16 + $0x30] sm:$0xff]  }
0x13cf   : > { %4828 = vmatmul.mubr.msk.bf16.vlgmr.msra.gmra.mrb[48].mxu1 %vm2501_vm8, %v2771_v13  ;;  %v2769_v14 = vadd.f32 %v2768_v0, %v2767_v11  ;;  %4862 = vmatpush3.bf16.msra.mxu0 %v3016_v62 }
0x13d0   : > { %4840 = vmatpush3.bf16.msra.mxu1 %v5087_v10  ;;  %4843 = vmatprep.mubr.msk.bf16.mxu1 %vm5308_vm1, %v5307_v9 }
0x13d1   : > { %4841 = vmatprep.subr.bf16.mxu1 %v5307_v9  ;;  %2770 = vst.msk [vmem:[%s5833_s9] sm:$0xff] %vm2501_vm8, %v2769_v14  ;;  %4875 = vmatprep.subr.bf16.mxu0 %v5307_v9  ;;  %v4447_v14 = vld [vmem:[%s6170_s5 + $0x2] ss:$0 sm:$0xff] }
0x13d4   : > { %4842 = vmatpush3.bf16.msra.mxu1 %v5088_v15 }
0x13d5   : > { %4855 = vmatprep.subr.bf16.mxu1 %v5307_v9 }
0x13d7   : > { %4844 = vmatmul.mubr.msk.bf16.vlgmr.msra.gmra.mrb[52].mxu1 %vm1082_vm0, %v5778_v12 }
0x13d8   : > { %4857 = vmatprep.mubr.msk.bf16.mxu1 %vm5308_vm1, %v5307_v9  ;;  %v3081_v6 = vld [vmem:[%s5833_s9] sm:$0xff] }
0x14a2   : > { %v2809_v16 = vpop.f32.mrb[48].mxu1 }
0x14a3   : > { %v2815_v17 = vpack.c.bf16 %v2809_v16, %v2809_v16  ;;  %v4829_v19 = vpop.f32.mrb[49].mxu1 }
0x14a4   : > { %v2812_v20 = vpop.f32.mrb[50].mxu1 }
0x14a5   : > { %2816 = vst.msk [vmem:[#allocation2] sm:$0xf] %vm1428_vm4, %v2815_v17  ;;  %v4830_v21 = vpop.f32.mrb[51].mxu1 }
0x14aa   : > { %v2942_v24 = vpop.f32.mrb[52].mxu1 }
0x14ab   : > { %v4845_v22 = vpop.f32.mrb[53].mxu1  ;;  %v2943_v28 = vadd.f32 %v4416_v23, %v2942_v24  ;;  %v4438_v24 = vld [vmem:[%s6171_s6 + $0x2] ss:$0 sm:$0xff] }
0x14ac   : > { %v2945_v27 = vpop.f32.mrb[54].mxu1 }
0x14ad   : > { %v2946_v29 = vadd.f32 %v4416_v23, %v2945_v27  ;;  %v4846_v30 = vpop.f32.mrb[55].mxu1 }
0x14ae   : > { %v5096_v30 = vld [vmem:[%s6167_s3 + $0x38] sm:$0xff]  }
0x14af   : > { %v2949_v31 = vpack.c.bf16 %v2946_v29, %v2943_v28  ;;  %v5095_v28 = vld [vmem:[%s6167_s3 + $0x30] sm:$0xff]   ;;  %s6179_s3 = sld [smem:[#allocation29_spill]] }
0x14b1   : > { %v3028_v33 = vsel %vm1112_vm2, %v2949_v31, 0  ;;  %v5097_v31 = vld [vmem:[%s6172_s8 + $0x20] sm:$0xff]  }
0x14b2   : > { %4856 = vmatpush3.bf16.xpose.msra.mxu1 %v3028_v33 }
0x14b3   : > { %4867 = vmatprep.subr.bf16.mxu1 %v5307_v9 }
0x14b9   : > { %4858 = vmatmul.mubr.msk.bf16.vlgmr.msra.gmra.mrb[56].mxu1 %vm1112_vm2, %v2882_v36 }
0x14ba   : > { %4868 = vmatpush3.bf16.msra.mxu1 %v5089_v35  ;;  %4871 = vmatprep.mubr.msk.bf16.mxu1 %vm5308_vm1, %v5307_v9 }
0x14bb   : > { %4869 = vmatprep.subr.bf16.mxu1 %v5307_v9 }
0x14be   : > { %4870 = vmatpush3.bf16.msra.mxu1 %v5090_v37 }
0x14bf   : > { %4883 = vmatprep.subr.bf16.mxu1 %v5307_v9 }
0x14c1   : > { %4872 = vmatmul.mubr.msk.bf16.vlgmr.msra.gmra.mrb[60].mxu1 %vm1082_vm0, %v5795_v26 }
0x14c2   : > { %4887 = vmatprep.mubr.msk.bf16.mxu1 %vm5308_vm1, %v5307_v9  ;;  %4884 = vmatpush3.bf16.msra.mxu1 %v5097_v31 }
0x14c3   : > { %4885 = vmatprep.subr.bf16.mxu1 %v5307_v9 }
0x14c6   : > { %4886 = vmatpush3.bf16.msra.mxu1 %v5098_v32 }
0x14c7   : > { %4897 = vmatprep.subr.bf16.mxu1 %v5307_v9 }
0x14c9   : > { %4888 = vmatmul.mubr.msk.bf16.vlgmr.msra.gmra.mrb[64].mxu1 %vm1082_vm0, %v5778_v12 }
0x14ca   : > { %4899 = vmatprep.mubr.msk.bf16.mxu1 %vm5308_vm1, %v5307_v9 }
0x158c   : > { %v3064_v53 = vpop.f32.mrb[56].mxu1 }
0x158d   : > { %v3065_v39 = vadd.f32 %v5826_v43, %v3064_v53  ;;  %v4859_v18 = vpop.f32.mrb[57].mxu1 }
0x158e   : > { %v3067_v40 = vpop.f32.mrb[58].mxu1 }
0x158f   : > { %v4860_v41 = vpop.f32.mrb[59].mxu1  ;;  %v3070_v42 = vsel %vm2501_vm8, %v3065_v39, -inf }
0x1590   : > { %3071 = vmax.xlane.f32.xlu1 %v3070_v42 }
0x1594   : > { %v3196_v44 = vpop.f32.mrb[60].mxu1 }
0x1595   : > { %v4873_v45 = vpop.f32.mrb[61].mxu1  ;;  %v3197_v27 = vadd.f32 %v4438_v24, %v3196_v44 }
0x1596   : > { %v3199_v46 = vpop.f32.mrb[62].mxu1 }
0x1597   : > { %v4874_v47 = vpop.f32.mrb[63].mxu1  ;;  %v3202_v29 = vpack.c.bf16 %v3197_v27, %v3197_v27 }
0x1598   : > { %v4456_v47 = vld [vmem:[%s6174_s13 + $0x2] ss:$0 sm:$0xff] }
0x159c   : > { %v3329_v18 = vpop.f32.mrb[64].mxu1 }
0x159d   : > { %v4889_v40 = vpop.f32.mrb[65].mxu1  ;;  %v3330_v48 = vadd.f32 %v4456_v47, %v3329_v18 }
0x159e   : > { %v3332_v49 = vpop.f32.mrb[66].mxu1 }
0x161d   : > { %v3072_v50 = vpop.xlane.xlu1 %3071 }
0x161e   : > { %v3073_v52 = vsub.f32 %v3065_v39, %v3072_v50  ;;  %v4890_v50 = vpop.f32.mrb[67].mxu1 }
0x1620   : > { %v3074_v54 = vmul.f32 1.442695, %v3073_v52  ;;  %v3333_v52 = vadd.f32 %v4456_v47, %v3332_v49 }
0x1622   : > { %5135 = vpow2.f32 %v3074_v54  ;;  %v3336_v54 = vpack.c.bf16 %v3333_v52, %v3330_v48 }
0x1624   : > { %4898 = vmatpush3.bf16.msra.mxu1 %v3336_v54 }
0x1625   : > { %4911 = vmatprep.subr.bf16.mxu1 %v5307_v9 }
0x162c   : > { %v5136_v55 = vpop.eup %5135 }
0x162d   : > { %v3076_v56 = vsel %vm2501_vm8, %v5136_v55, 0.0 }
0x162e   : > { %3077 = vadd.xlane.f32.xlu0 %v3076_v56 }
0x16bb   : > { %v3078_v63 = vpop.xlane.xlu0 %3077 }
0x16bc   : > { %5137 = vrcp.f32 %v3078_v63  ;;  %v5100_v63 = vld [vmem:[%s6166_s16 + $0x38] sm:$0xff]   ;;  %s5155_s16 = sshll.u32 %s5312_s14, 4  ;;  %s5156_s16 = int_to_ptr.vmem [resolvable:$false] %s5155_s16 }
0x16bd   : > { %s5157_s17 = scalar_lea.vmem %s5156_s16, 256 }
0x16c6   : > { %v5138_v1 = vpop.eup %5137 }
0x16c7   : > { %v3080_v2 = vmul.f32 %v5138_v1, %v5136_v55 }
0x16c9   : > { %v3082_v4 = vmul.f32 0.25, %v3080_v2  ;;  %v3085_v5 = vpack.c.bf16 %v3080_v2, %v3080_v2 }
0x16cb   : > { %4864 = vmatmul.mubr.msk.bf16.vlgmr.msra.gmra.mrb[60].mxu0 %vm2501_vm8, %v3085_v5  ;;  %v3083_v7 = vadd.f32 %v3082_v4, %v3081_v6  ;;  %v4478_v5 = vld [vmem:[%s6170_s5 + $0x3] ss:$0 sm:$0xff]  ;;  %s6180_s5 = smov 24  }
0x16cc   : > { %4876 = vmatpush3.bf16.msra.mxu0 %v5093_v3  ;;  %4879 = vmatprep.mubr.msk.bf16.mxu0 %vm5308_vm1, %v5307_v9 }
0x16cd   : > { %4877 = vmatprep.subr.bf16.mxu0 %v5307_v9  ;;  %3084 = vst.msk [vmem:[%s5833_s9] sm:$0xff] %vm2501_vm8, %v3083_v7 }
0x16d0   : > { %4878 = vmatpush3.bf16.msra.mxu0 %v5094_v8 }
0x16d1   : > { %4891 = vmatprep.subr.bf16.mxu0 %v5307_v9 }
0x16d3   : > { %4880 = vmatmul.mubr.msk.bf16.vlgmr.msra.gmra.mrb[64].mxu0 %vm1082_vm0, %v5778_v12 }
0x16d4   : > { %4893 = vmatprep.mubr.msk.bf16.mxu0 %vm5308_vm1, %v5307_v9  ;;  %v3401_v61 = vld [vmem:[%s5833_s9] sm:$0xff] }
0x179e   : > { %v5896_v10 = vpop.f32.mrb[60].mxu0 }
0x179f   : > { %v4865_v11 = vpop.f32.mrb[61].mxu0 }
0x17a0   : > { %v3126_v0 = vpop.f32.mrb[62].mxu0 }
0x17a1   : > { %v4866_v13 = vpop.f32.mrb[63].mxu0 }
0x17a6   : > { %v3262_v15 = vpop.f32.mrb[64].mxu0 }
0x17a7   : > { %v4881_v16 = vpop.f32.mrb[65].mxu0  ;;  %v3263_v19 = vadd.f32 %v4447_v14, %v3262_v15  ;;  %v4469_v15 = vld [vmem:[%s6171_s6 + $0x3] ss:$0 sm:$0xff]  ;;  %s6181_s6 = sld [smem:[#allocation32_spill]] }
0x17a8   : > { %v3265_v17 = vpop.f32.mrb[66].mxu0 }
0x17a9   : > { %v3266_v20 = vadd.f32 %v4447_v14, %v3265_v17  ;;  %v4882_v21 = vpop.f32.mrb[67].mxu0 }
0x17aa   : > { %v5102_v21 = vld [vmem:[%s6172_s8 + $0x38] sm:$0xff]  }
0x17ab   : > { %v3269_v23 = vpack.c.bf16 %v3266_v20, %v3263_v19  ;;  %v5101_v20 = vld [vmem:[%s6172_s8 + $0x30] sm:$0xff]   ;;  %s5987_s8 = scalar_lea.vmem [#allocation3], %s5624_s15  ;;  %s6012_s15 = sshll.u32 %s5506_s0, 7 }
0x17ad   : > { %v3348_v22 = vsel %vm1112_vm2, %v3269_v23, 0 }
0x17ae   : > { %4892 = vmatpush3.bf16.xpose.msra.mxu0 %v3348_v22 }
0x17af   : > { %4903 = vmatprep.subr.bf16.mxu0 %v5307_v9 }
0x17b5   : > { %4894 = vmatmul.mubr.msk.bf16.vlgmr.msra.gmra.mrb[68].mxu0 %vm1112_vm2, %v3202_v29 }
0x17b6   : > { %4904 = vmatpush3.bf16.msra.mxu0 %v5095_v28  ;;  %4907 = vmatprep.mubr.msk.bf16.mxu0 %vm5308_vm1, %v5307_v9 }
0x17b7   : > { %4905 = vmatprep.subr.bf16.mxu0 %v5307_v9 }
0x17ba   : > { %4906 = vmatpush3.bf16.msra.mxu0 %v5096_v30  ;;  %v4522_v30 = vpack.c.bf16 %v5896_v10, %v5896_v10 }
0x17bb   : > { %4919 = vmatprep.subr.bf16.mxu0 %v5307_v9 }
0x17bd   : > { %4908 = vmatmul.mubr.msk.bf16.vlgmr.msra.gmra.mrb[72].mxu0 %vm1082_vm0, %v5795_v26 }
0x17be   : > { %4923 = vmatprep.mubr.msk.bf16.mxu0 %vm5308_vm1, %v5307_v9  ;;  %4920 = vmatpush3.bf16.msra.mxu0 %v5101_v20 }
0x17bf   : > { %4921 = vmatprep.subr.bf16.mxu0 %v5307_v9 }
0x17c2   : > { %4922 = vmatpush3.bf16.msra.mxu0 %v5102_v21 }
0x17c3   : > { %4933 = vmatprep.subr.bf16.mxu0 %v5307_v9 }
0x17c5   : > { %4924 = vmatmul.mubr.msk.bf16.vlgmr.msra.gmra.mrb[76].mxu0 %vm1082_vm0, %v5778_v12 }
0x17c6   : > { %4935 = vmatprep.mubr.msk.bf16.mxu0 %vm5308_vm1, %v5307_v9 }
0x1888   : > { %v3384_v33 = vpop.f32.mrb[68].mxu0 }
0x1889   : > { %v3385_v26 = vadd.f32 %v5826_v43, %v3384_v33  ;;  %v4895_v34 = vpop.f32.mrb[69].mxu0 }
0x188a   : > { %v3387_v35 = vpop.f32.mrb[70].mxu0 }
0x188b   : > { %v4896_v36 = vpop.f32.mrb[71].mxu0  ;;  %v3390_v37 = vsel %vm2501_vm8, %v3385_v26, -inf }
0x188c   : > { %3391 = vmax.xlane.f32.xlu1 %v3390_v37  ;;  %v4487_v36 = vld [vmem:[%s6174_s13 + $0x3] ss:$0 sm:$0xff] }
0x1890   : > { %v3516_v38 = vpop.f32.mrb[72].mxu0 }
0x1891   : > { %v4909_v51 = vpop.f32.mrb[73].mxu0  ;;  %v3517_v17 = vadd.f32 %v4469_v15, %v3516_v38 }
0x1892   : > { %v3519_v53 = vpop.f32.mrb[74].mxu0 }
0x1893   : > { %v4910_v39 = vpop.f32.mrb[75].mxu0  ;;  %v3522_v19 = vpack.c.bf16 %v3517_v17, %v3517_v17 }
0x1898   : > { %v3649_v31 = vpop.f32.mrb[76].mxu0 }
0x1899   : > { %v3650_v37 = vadd.f32 %v4487_v36, %v3649_v31 }
0x1919   : > { %v3392_v41 = vpop.xlane.xlu1 %3391 }
0x191a   : > { %v3393_v42 = vsub.f32 %v3385_v26, %v3392_v41 }
0x191c   : > { %v3394_v44 = vmul.f32 1.442695, %v3393_v42 }
0x191e   : > { %5139 = vpow2.f32 %v3394_v44 }
0x1928   : > { %v5140_v45 = vpop.eup %5139 }
0x1929   : > { %v3396_v46 = vsel %vm2501_vm8, %v5140_v45, 0.0 }
0x192a   : > { %3397 = vadd.xlane.f32.xlu0 %v3396_v46 }
0x19b7   : > { %v3398_v55 = vpop.xlane.xlu0 %3397 }
0x19b8   : > { %5141 = vrcp.f32 %v3398_v55 }
0x19c2   : > { %v5142_v56 = vpop.eup %5141 }
0x19c3   : > { %v3400_v57 = vmul.f32 %v5142_v56, %v5140_v45 }
0x19c5   : > { %v3402_v59 = vmul.f32 0.25, %v3400_v57  ;;  %v3405_v60 = vpack.c.bf16 %v3400_v57, %v3400_v57 }
0x19c7   : > { %4900 = vmatmul.mubr.msk.bf16.vlgmr.msra.gmra.mrb[68].mxu1 %vm2501_vm8, %v3405_v60  ;;  %v3403_v62 = vadd.f32 %v3402_v59, %v3401_v61  ;;  %v4495_v61 = vld [vmem:[%s6179_s3] ss:$0 sm:$0xff]  ;;  %s4034_s3 = sand.u32 1, %s5506_s0  }
0x19c8   : > { %4912 = vmatpush3.bf16.msra.mxu1 %v5099_v58  ;;  %4915 = vmatprep.mubr.msk.bf16.mxu1 %vm5308_vm1, %v5307_v9 }
0x19c9   : > { %4913 = vmatprep.subr.bf16.mxu1 %v5307_v9  ;;  %3404 = vst.msk [vmem:[%s5833_s9] sm:$0xff] %vm2501_vm8, %v3403_v62 }
0x19cc   : > { %4914 = vmatpush3.bf16.msra.mxu1 %v5100_v63 }
0x19cd   : > { %4927 = vmatprep.subr.bf16.mxu1 %v5307_v9 }
0x19cf   : > { %4916 = vmatmul.mubr.msk.bf16.vlgmr.msra.gmra.mrb[72].mxu1 %vm1082_vm0, %v5778_v12  ;;  %v4925_v12 = vpop.f32.mrb[77].mxu0 }
0x19d0   : > { %4929 = vmatprep.mubr.msk.bf16.mxu1 %vm5308_vm1, %v5307_v9  ;;  %v3652_v38 = vpop.f32.mrb[78].mxu0  ;;  %v3721_v46 = vld [vmem:[%s5833_s9] sm:$0xff] }
0x19d1   : > { %v4926_v10 = vpop.f32.mrb[79].mxu0  ;;  %v3653_v53 = vadd.f32 %v4487_v36, %v3652_v38 }
0x19d3   : > { %v3656_v39 = vpack.c.bf16 %v3653_v53, %v3650_v37 }
0x19d5   : > { %4934 = vmatpush3.bf16.msra.mxu0 %v3656_v39 }
0x19d6   : > { %4947 = vmatprep.subr.bf16.mxu0 %v5307_v9 }
0x1a9a   : > { %v3443_v1 = vpop.f32.mrb[68].mxu1 }
0x1a9b   : > { %v4901_v2 = vpop.f32.mrb[69].mxu1  ;;  %v4523_v51 = vpack.c.bf16 %v3443_v1, %v3443_v1 }
0x1a9c   : > { %v3446_v3 = vpop.f32.mrb[70].mxu1 }
0x1a9d   : > { %v4902_v4 = vpop.f32.mrb[71].mxu1 }
0x1aa2   : > { %v3582_v6 = vpop.f32.mrb[72].mxu1 }
0x1aa3   : > { %v4917_v7 = vpop.f32.mrb[73].mxu1  ;;  %v3583_v11 = vadd.f32 %v4478_v5, %v3582_v6  ;;  %v5107_v6 = vld [vmem:[%s6181_s6] sm:$0xff]  }
0x1aa4   : > { %v3585_v8 = vpop.f32.mrb[74].mxu1  ;;  %v5108_v7 = vld [vmem:[%s6181_s6 + $0x8] sm:$0xff]  }
0x1aa5   : > { %v3586_v0 = vadd.f32 %v4478_v5, %v3585_v8  ;;  %v4918_v13 = vpop.f32.mrb[75].mxu1  ;;  %v5109_v8 = vld [vmem:[%s6181_s6 + $0x10] sm:$0xff]  }
0x1aa7   : > { %v3589_v14 = vpack.c.bf16 %v3586_v0, %v3583_v11 }
0x1aa9   : > { %v3668_v16 = vsel %vm1112_vm2, %v3589_v14, 0 }
0x1aaa   : > { %4928 = vmatpush3.bf16.xpose.msra.mxu1 %v3668_v16 }
0x1aab   : > { %4939 = vmatprep.subr.bf16.mxu1 %v5307_v9 }
0x1ab1   : > { %4930 = vmatmul.mubr.msk.bf16.vlgmr.msra.gmra.mrb[76].mxu1 %vm1112_vm2, %v3522_v19 }
0x1ab2   : > { %4943 = vmatprep.mubr.msk.bf16.mxu1 %vm5308_vm1, %v5307_v9 }
0x1b84   : > { %v3704_v23 = vpop.f32.mrb[76].mxu1 }
0x1b85   : > { %v3705_v24 = vadd.f32 %v5826_v43, %v3704_v23  ;;  %v4931_v22 = vpop.f32.mrb[77].mxu1 }
0x1b86   : > { %v3707_v27 = vpop.f32.mrb[78].mxu1 }
0x1b87   : > { %v4932_v28 = vpop.f32.mrb[79].mxu1  ;;  %v3710_v29 = vsel %vm2501_vm8, %v3705_v24, -inf }
0x1b88   : > { %3711 = vmax.xlane.f32.xlu1 %v3710_v29 }
0x1b99   : > { %3133 = vrot.lane.b32.xlu1 %v4522_v30, %s6175_s26  ;;  %s6177_s26 = sld [smem:[#allocation28_spill]] }
0x1b9f   : > { %v5103_v48 = vld [vmem:[%s6177_s26] sm:$0xff]   ;;  %v5104_v49 = vld [vmem:[%s6177_s26 + $0x8] sm:$0xff]  }
0x1ba0   : > { %4940 = vmatpush3.bf16.msra.mxu1 %v5103_v48 }
0x1ba1   : > { %4941 = vmatprep.subr.bf16.mxu1 %v5307_v9 }
0x1ba4   : > { %4942 = vmatpush3.bf16.msra.mxu1 %v5104_v49 }
0x1ba5   : > { %4955 = vmatprep.subr.bf16.mxu1 %v5307_v9 }
0x1c15   : > { %v3712_v32 = vpop.xlane.xlu1 %3711 }
0x1c16   : > { %v3713_v33 = vsub.f32 %v3705_v24, %v3712_v32 }
0x1c18   : > { %v3714_v26 = vmul.f32 1.442695, %v3713_v33 }
0x1c19   : > { %v3134_v34 = vpop.permute.xlu1 %3133 }
0x1c1a   : > { %5143 = vpow2.f32 %v3714_v26  ;;  %3136 = vst.msk [vmem:[#allocation2] sm:$0xf] %vm1752_vm5, %v3134_v34 }
0x1c24   : > { %v5144_v43 = vpop.eup %5143 }
0x1c25   : > { %v3716_v35 = vsel %vm2501_vm8, %v5144_v43, 0.0 }
0x1c26   : > { %3717 = vadd.xlane.f32.xlu0 %v3716_v35 }
0x1c3c   : > { %3453 = vrot.lane.b32.xlu0 %v4523_v51, %s6176_s12  ;;  %s6178_s12 = sld [smem:[#allocation30_spill]] }
0x1c42   : > { %v5105_v59 = vld [vmem:[%s6178_s12] sm:$0xff]   ;;  %v5106_v60 = vld [vmem:[%s6178_s12 + $0x8] sm:$0xff]   ;;  %s6019_s12 = scalar_lea.sflag [#allocation6], %s4034_s3 }
0x1cb3   : > { %v3718_v18 = vpop.xlane.xlu0 %3717 }
0x1cb4   : > { %5145 = vrcp.f32 %v3718_v18 }
0x1cb7   : > { %v3454_v40 = vpop.permute.xlu0 %3453 }
0x1cb8   : > { %3456 = vst.msk [vmem:[#allocation2] sm:$0xf] %vm2076_vm6, %v3454_v40 }
0x1cbe   : > { %v5146_v41 = vpop.eup %5145 }
0x1cbf   : > { %v3720_v42 = vmul.f32 %v5146_v41, %v5144_v43 }
0x1cc1   : > { %v3722_v44 = vmul.f32 0.25, %v3720_v42  ;;  %v3725_v45 = vpack.c.bf16 %v3720_v42, %v3720_v42 }
0x1cc3   : > { %4936 = vmatmul.mubr.msk.bf16.vlgmr.msra.gmra.mrb[80].mxu0 %vm2501_vm8, %v3725_v45  ;;  %v3723_v47 = vadd.f32 %v3722_v44, %v3721_v46 }
0x1cc4   : > { %4951 = vmatprep.mubr.msk.bf16.mxu0 %vm5308_vm1, %v5307_v9  ;;  %4948 = vmatpush3.bf16.msra.mxu0 %v5105_v59 }
0x1cc5   : > { %3724 = vst.msk [vmem:[%s5833_s9] sm:$0xff] %vm2501_vm8, %v3723_v47  ;;  %4949 = vmatprep.subr.bf16.mxu0 %v5307_v9 }
0x1cc8   : > { %4950 = vmatpush3.bf16.msra.mxu0 %v5106_v60 }
0x1d96   : > { %v3763_v50 = vpop.f32.mrb[80].mxu0 }
0x1d97   : > { %v4524_v52 = vpack.c.bf16 %v3763_v50, %v3763_v50  ;;  %v4937_v54 = vpop.f32.mrb[81].mxu0 }
0x1d98   : > { %v3766_v55 = vpop.f32.mrb[82].mxu0 }
0x1d99   : > { %3773 = vrot.lane.b32.xlu1 %v4524_v52, %s6180_s5  ;;  %v4938_v56 = vpop.f32.mrb[83].mxu0  ;;  %s6182_s5 = sld [smem:[#allocation31_spill]] }
0x1d9f   : > { %v4499_v11 = vld [vmem:[%s6182_s5] ss:$0 sm:$0xff]  ;;  %s6016_s5 = scalar_lea.hbm %s5478_s20, %s6012_s15 }
0x1e0b   : > { %v3774_v57 = vpop.permute.xlu1 %3773 }
0x1e0c   : > { %3776 = vst.msk [vmem:[#allocation2] sm:$0xf] %vm2400_vm7, %v3774_v57 }
0x1e13   : > { %v3777_v58 = vld [vmem:[#allocation2] sm:$0xf] }
0x1e14   : > { %4944 = vmatmul.mubr.msk.bf16.vlgmr.msra.gmra.mrb[80].mxu1 %vm1082_vm0, %v3777_v58 }
0x1e15   : > { %4963 = vmatprep.mubr.msk.bf16.mxu1 %vm5308_vm1, %v5307_v9  ;;  %4956 = vmatpush3.bf16.msra.mxu1 %v5107_v6 }
0x1e16   : > { %4957 = vmatprep.subr.bf16.mxu1 %v5307_v9 }
0x1e19   : > { %4958 = vmatpush3.bf16.msra.mxu1 %v5108_v7 }
0x1e1a   : > { %4959 = vmatprep.subr.bf16.mxu1 %v5307_v9 }
0x1e1d   : > { %4960 = vmatpush3.bf16.msra.mxu1 %v5109_v8 }
0x1e1e   : > { %4961 = vmatprep.subr.bf16.mxu1 %v5307_v9 }
0x1ee7   : > { %v3838_v62 = vpop.f32.mrb[80].mxu1 }
0x1ee8   : > { %v3839_v63 = vadd.f32 %v4495_v61, %v3838_v62  ;;  %v4945_v1 = vpop.f32.mrb[81].mxu1 }
0x1ee9   : > { %v3841_v2 = vpop.f32.mrb[82].mxu1 }
0x1eea   : > { %v3844_v3 = vadd.f32 %v3839_v63, %v5791_v25  ;;  %v4946_v4 = vpop.f32.mrb[83].mxu1  ;;  %v5110_v25 = vld [vmem:[%s6181_s6 + $0x18] sm:$0xff]   ;;  %s4066_s6 = sshll.u32 %s5627_s10, 4  ;;  %s4067_s6 = int_to_ptr.vmem [resolvable:$true] %s4066_s6 }
0x1eeb   : > { %4962 = vmatpush3.bf16.msra.mxu1 %v5110_v25  ;;  %s5151_s13 = scalar_lea.vmem %s4067_s6, 128  ;;  %p5158_p0 = scmp.lt.s32.totalorder %s4067_s6, %s5156_s16 }
0x1eec   : > { %3845 = vst.msk [vmem:[%s5987_s8] sm:$0xff] %vm1082_vm0, %v3844_v3  ;;  %v3846_v5 = vpack.c.bf16 %v3844_v3, %v3844_v3  ;;  %p5152_p11 = scmp.ne.s32.totalorder %s4067_s6, %s5151_s13  ;;  %p5159_p1 = scmp.lt.s32.totalorder %s5157_s17, %s5151_s13 }
0x1eee   : > { %4952 = vmatmul.mubr.msk.bf16.vlgmr.msra.gmra.mrb[84].mxu0 %vm1082_vm0, %v3846_v5  ;;  %p5153_p12 = pnand %p5152_p11, %p5525_p5  ;;  %p5160_p2 = por %p5159_p1, %p5158_p0 }
0x1ef0   : > { %p5154_p13 = pneg %p5153_p12 }
0x1ef2   : > { %p5161_p3 = pnand %p5160_p2, %p5154_p13 }
0x1ef3   : > { %v3918_v9 = vld [vmem:[%s5987_s8] sm:$0xff] }
0x1fc1   : > { %v3907_v0 = vpop.f32.mrb[84].mxu0 }
0x1fc2   : > { %v3908_v13 = vadd.f32 %v4499_v11, %v3907_v0  ;;  %v4953_v14 = vpop.f32.mrb[85].mxu0 }
0x1fc3   : > { %v3910_v15 = vpop.f32.mrb[86].mxu0 }
0x1fc4   : > { %v3914_v16 = vmul.f32 0.70710677, %v3908_v13  ;;  %v4954_v17 = vpop.f32.mrb[87].mxu0  ;;  %v3913_v20 = vmul.f32 0.5, %v3908_v13 }
0x1fc6   : > { %5147 = verf.f32 %v3914_v16 }
0x1fd0   : > { %v5148_v19 = vpop.eup %5147 }
0x1fd1   : > { %v3916_v21 = vadd.f32 1.0, %v5148_v19 }
0x1fd3   : > { %v3917_v23 = vmul.f32 %v3916_v21, %v3913_v20 }
0x1fd5   : > { %v3919_v24 = vpack.c.bf16 %v3917_v23, %v3917_v23 }
0x1fd7   : > { %4964 = vmatmul.mubr.msk.bf16.vlgmr.msra.gmra.mrb[84].mxu1 %vm3952_vm9, %v3919_v24 }
0x20aa   : > { %v3990_v22 = vpop.f32.mrb[84].mxu1 }
0x20ab   : > { %v3996_v27 = vadd.f32 %v3990_v22, %v3918_v9  ;;  %v4965_v28 = vpop.f32.mrb[85].mxu1 }
0x20ac   : > { %v3993_v29 = vpop.f32.mrb[86].mxu1 }
0x20ad   : > { %3997 = vst.msk [vmem:[%s5987_s8] sm:$0xff] %vm1082_vm0, %v3996_v27  ;;  %v4966_v30 = vpop.f32.mrb[87].mxu1 }
0x20b4   : > { %v3998_v31 = vld [vmem:[%s5987_s8] sm:$0xff] }
0x20b5   : > { %v4001_v12 = vsel %vm1082_vm0, %v3998_v31, 0.0 }
0x20b6   : > { %4002 = vadd.xlane.f32.xlu1 %v4001_v12 }
0x2143   : > { %v4003_v32 = vpop.xlane.xlu1 %4002 }
0x2144   : > { %v4004_v33 = vmul.f32 0.03125, %v4003_v32 }
0x2146   : > { %v6005_v26 = vsub.f32 %v3998_v31, %v4004_v33 }
0x2148   : > { %v4006_v34 = vmul.f32 %v6005_v26, %v6005_v26 }
0x214a   : > { %v4007_v43 = vsel %vm1082_vm0, %v4006_v34, 0.0 }
0x214b   : > { %4008 = vadd.xlane.f32.xlu0 %v4007_v43 }
0x214c   : > { %5164 = shalt.err (!%p5161_p3)
}
0x214d   : > { %s5165_s0 = scalar_lea.hbm %s6016_s5, 128  ;;  %s5169_s14 = scalar_lea.hbm %s5478_s20, 256 }
0x214e   : > { %p5166_p4 = scmp.ne.s32.totalorder %s6016_s5, %s5165_s0  ;;  %p5170_p9 = scmp.lt.u32.totalorder %s6016_s5, %s5478_s20 }
0x214f   : > { %p5171_p10 = scmp.lt.u32.totalorder %s5169_s14, %s5165_s0  ;;  %p5173_p12 = scmp.lt.u32.totalorder %s5165_s0, %s6016_s5 }
0x2150   : > { %p5167_p7 = pnand %p5166_p4, %p5525_p5 }
0x2151   : > { %p5172_p11 = por %p5171_p10, %p5170_p9 }
0x2152   : > { %p5168_p8 = pneg %p5167_p7 }
0x2153   : > { %p5174_p0 = por %p5173_p12, %p5172_p11 }
0x2155   : > { %p5175_p13 = pnand %p5174_p0, %p5168_p8 }
0x2157   : > { %5178 = shalt.err (!%p5175_p13)
}
0x2158   : > { %4968 = dma.vmem_to_hbm [thread:$0]  (%p5525_p5), %s4067_s6, 128, %s6016_s5, %s6019_s12  }
0x2159   : > { %s6037_s13 = scalar_lea.hbm %s5483_s27, %s6012_s15  ;;  %s4079_s17 = sshll.u32 %s5833_s9, 4  ;;  %s4080_s17 = int_to_ptr.vmem [resolvable:$true] %s4079_s17 }
0x215a   : > { %s5179_s10 = scalar_lea.vmem %s4080_s17, 128  ;;  %s5313_s16 = smov [#allocation7]  }
0x215b   : > { %p5180_p1 = scmp.ne.s32.totalorder %s4080_s17, %s5179_s10  ;;  %s5183_s3 = sshll.u32 %s5313_s16, 4  ;;  %s5184_s3 = int_to_ptr.vmem [resolvable:$false] %s5183_s3 }
0x215c   : > { %s5185_s0 = scalar_lea.vmem %s5184_s3, 256  ;;  %p5186_p4 = scmp.lt.s32.totalorder %s4080_s17, %s5184_s3 }
0x215d   : > { %p5181_p2 = pnand %p5180_p1, %p5525_p5  ;;  %p5187_p7 = scmp.lt.s32.totalorder %s5185_s0, %s5179_s10 }
0x215f   : > { %p5182_p3 = pneg %p5181_p2  ;;  %p5188_p8 = por %p5187_p7, %p5186_p4 }
0x2161   : > { %p5189_p9 = pnand %p5188_p8, %p5182_p3 }
0x2163   : > { %5192 = shalt.err (!%p5189_p9)
}
0x2164   : > { %s5193_s6 = scalar_lea.hbm %s6037_s13, 128  ;;  %s5197_s9 = scalar_lea.hbm %s5483_s27, 256 }
0x2165   : > { %p5194_p10 = scmp.ne.s32.totalorder %s6037_s13, %s5193_s6  ;;  %p5198_p0 = scmp.lt.u32.totalorder %s6037_s13, %s5483_s27 }
0x2166   : > { %p5199_p13 = scmp.lt.u32.totalorder %s5197_s9, %s5193_s6  ;;  %p5201_p2 = scmp.lt.u32.totalorder %s5193_s6, %s6037_s13 }
0x2167   : > { %p5195_p11 = pnand %p5194_p10, %p5525_p5 }
0x2168   : > { %p5200_p1 = por %p5199_p13, %p5198_p0 }
0x2169   : > { %p5196_p12 = pneg %p5195_p11 }
0x216a   : > { %p5202_p4 = por %p5201_p2, %p5200_p1 }
0x216c   : > { %p5203_p3 = pnand %p5202_p4, %p5196_p12 }
0x216e   : > { %5206 = shalt.err (!%p5203_p3)
}
0x216f   : > { %s6183_s5 = sld [smem:[#allocation33_spill]]  ;;  %v4509_v53 = vld [vmem:[%s5468_s4] ss:$0 sm:$0xff]  ;;  %s4053_s14 = sshll.u32 %s5987_s8, 4  ;;  %s6062_s14 = int_to_ptr.vmem [resolvable:$true] %s4053_s14 }
0x2170   : > { %4969 = dma.vmem_to_hbm [thread:$0]  (%p5525_p5), %s4080_s17, 128, %s6037_s13, %s6019_s12  }
0x2171   : > { %s6060_s10 = scalar_lea.hbm %s5473_s21, %s6012_s15  ;;  %s6184_s12 = sand.u32 1, %s5265_s1  }
0x2172   : > { %s4030_s13 = scalar_lea.sflag [#allocation4], %s6184_s12  ;;  %s5207_s17 = scalar_lea.vmem %s6062_s14, 128 }
0x2173   : > { %p5208_p7 = scmp.ne.s32.totalorder %s6062_s14, %s5207_s17  ;;  %s5314_s16 = smov [#allocation3]  }
0x2174   : > { %s5211_s3 = sshll.u32 %s5314_s16, 4  ;;  %s5212_s3 = int_to_ptr.vmem [resolvable:$false] %s5211_s3 }
0x2175   : > { %v4508_v10 = vld [vmem:[%s6183_s5] ss:$0 sm:$0xff]  ;;  %p5209_p8 = pnand %p5208_p7, %p5525_p5  ;;  %s5213_s0 = scalar_lea.vmem %s5212_s3, 256 }
0x2176   : > { %p5214_p10 = scmp.lt.s32.totalorder %s6062_s14, %s5212_s3  ;;  %p5215_p11 = scmp.lt.s32.totalorder %s5213_s0, %s5207_s17 }
0x2177   : > { %p5210_p9 = pneg %p5209_p8 }
0x2178   : > { %p5216_p12 = por %p5215_p11, %p5214_p10 }
0x217a   : > { %p5217_p0 = pnand %p5216_p12, %p5210_p9 }
0x21d8   : > { %v4009_v35 = vpop.xlane.xlu0 %4008 }
0x21d9   : > { %v4010_v36 = vmul.f32 0.03125, %v4009_v35 }
0x21db   : > { %v4011_v37 = vadd.f32 1e-05, %v4010_v36 }
0x21dd   : > { %5149 = vrsqrt.f32 %v4011_v37 }
0x21e7   : > { %v5150_v38 = vpop.eup %5149 }
0x21e8   : > { %v4013_v51 = vmul.f32 %v5150_v38, %v6005_v26 }
0x21ea   : > { %v4020_v39 = vmul.f32 %v4508_v10, %v4013_v51 }
0x21ec   : > { %v4027_v18 = vadd.f32 %v4509_v53, %v4020_v39 }
0x21ee   : > { %4028 = vst.msk [vmem:[%s5987_s8] sm:$0xff] %vm1082_vm0, %v4027_v18 }
0x21ef   : > { %5220 = shalt.err (!%p5217_p0)
}
0x21f0   : > { %s5221_s8 = scalar_lea.hbm %s6060_s10, 128  ;;  %s5225_s15 = scalar_lea.hbm %s5473_s21, 256 }
0x21f1   : > { %p5222_p13 = scmp.ne.s32.totalorder %s6060_s10, %s5221_s8  ;;  %p5226_p4 = scmp.lt.u32.totalorder %s6060_s10, %s5473_s21 }
0x21f2   : > { %p5227_p3 = scmp.lt.u32.totalorder %s5225_s15, %s5221_s8  ;;  %p5229_p8 = scmp.lt.u32.totalorder %s5221_s8, %s6060_s10 }
0x21f3   : > { %p5223_p1 = pnand %p5222_p13, %p5525_p5 }
0x21f4   : > { %p5228_p7 = por %p5227_p3, %p5226_p4 }
0x21f5   : > { %p5224_p2 = pneg %p5223_p1 }
0x21f6   : > { %p5230_p10 = por %p5229_p8, %p5228_p7 }
0x21f8   : > { %p5231_p9 = pnand %p5230_p10, %p5224_p2 }
0x21fa   : > { %5234 = shalt.err (!%p5231_p9)
}
0x21fb   : > { %4967 = dma.vmem_to_hbm [thread:$0]  (%p5525_p5), %s6062_s14, 128, %s6060_s10, %s4030_s13  }
0x21fc PF: > { %p4983_p11 = scmp.ge.s32.totalorder %s5273_s7, 2  ;;  %s4091_s6 = sand.u32 1, %s5261_s28  }
0x21fd   : > { %s4092_s9 = scalar_lea.sflag [#allocation4], %s4091_s6 }
0x21fe   : > { %p4974_p12 = pnand %p4983_p11, %p5529_p6 }
0x2200   : > { %5252 = dma.done.wait (!%p4974_p12), %s4092_s9, 128  }
0x2201   : > { %5254 = vsyncadd (!%p4974_p12), %s4092_s9, 4294967168  ;;  %s6185_s5 = sadd.s32 4294967294, %s5273_s7  }
0x2202   : > { %s4100_s12 = sand.u32 1, %s6185_s5  }
0x2203   : > { %s4101_s17 = scalar_lea.sflag [#allocation6], %s4100_s12 }
0x2204   : > { %5256 = dma.done.wait (!%p4974_p12), %s4101_s17, 256  }
0x2205   : > { %5258 = vsyncadd (!%p4974_p12), %s4101_s17, 4294967040  ;;  %p81_p5 = scmp.ge.s32.totalorder %s5510_s11, 4   ;;  %s6186_s28 = smov %s5265_s1 }
0x2206   : > { %s6187_s1 = smov %s5269_s2  ;;  %s6188_s2 = smov %s5523_s18 }
0x2207   : > { %s6189_s7 = smov %s5510_s11  ;;  %83 = sbr.rel (!%p81_p5) target bundleno = 69 (0x45), region = 289 }
0x220e   :  { %4115 = vsyncpa [#allocation4], 1 }
0x220f   :  { %4117 = vsyncpa [#allocation4 + $0x1], 1 }
0x2210   :  { %4118 = vsyncpa [#allocation6], 1 }
0x2211   :  { %4120 = vsyncpa [#allocation6 + $0x1], 1 }

</bundles_post_ra>
